<compile_context>
chip_gen: v7x
topology: tpu7x:2x2x1
jax: 0.10.0
libtpu: 0.0.40
codegen_flags: <defaults>
</compile_context>

<pallas_src>
import functools

import numpy as np
import jax
import jax.numpy as jnp
from jax.experimental import pallas as pl
from jax.experimental.pallas import tpu as pltpu


_VMEM_LIMIT = 32 * 1024 * 1024   # safe on v5e/v6e (128 MiB) and v7x (64 MiB)
_LANE = 128


def _pick_batch_tile(batch):
    """Rows per grid step: multiple of 8; >= 2 grid steps once batch >= 16."""
    if batch <= 8:
        return 8
    half = (batch + 1) // 2
    bt = ((half + 7) // 8) * 8
    return max(8, min(64, bt))


# ----------------------------- fused kernel --------------------------------

def _fused_net_kernel(x_ref, w1_ref, b1_ref, w2_ref, b2_ref, w3_ref, b3_ref,
                      w4_ref, b4_ref, w5_ref, b5_ref, o_ref, a2_ref, a3_ref,
                      *, bt, num_classes):
    f32 = jnp.float32

    def conv(read_tap, w_ref, b_ref):
        # 4 tap-row matmuls; column taps + stride are folded into the weights.
        acc = None
        for i in range(4):
            d = jnp.dot(read_tap(i), w_ref[i], preferred_element_type=f32)
            acc = d if acc is None else acc + d
        return jnp.maximum(acc + b_ref[...], 0.0)           # f32 epilogue

    def store_parity(scr, h, ho):
        # h: [ho*bt, N] bf16, rows ordered (output_row, batch).
        # scr: [2, (ho//2 + 1)*bt, N]  -> row-parity split, row-padded input
        # layout for the next conv (all slices contiguous & 8-aligned).
        n = h.shape[-1]
        zero = jnp.zeros((bt, n), h.dtype)
        scr[0, 0:bt, :] = zero                               # padded row 0
        scr[1, (ho // 2) * bt:(ho // 2 + 1) * bt, :] = zero  # padded row ho+1
        for t in range(ho // 2):
            scr[1, t * bt:(t + 1) * bt, :] = h[(2 * t) * bt:(2 * t + 1) * bt, :]
            scr[0, (t + 1) * bt:(t + 2) * bt, :] = h[(2 * t + 1) * bt:(2 * t + 2) * bt, :]

    def tap_from(scr, i, ho):
        p, r0 = i % 2, i // 2
        return scr[p, r0 * bt:(r0 + ho) * bt, :]

    # conv1: taps read straight from the row-parity pre-split input block.
    h1 = conv(lambda i: x_ref[0, i % 2, (i // 2) * bt:(i // 2 + 16) * bt, :],
              w1_ref, b1_ref)                                # [16*bt, 16*32]
    store_parity(a2_ref, h1.astype(jnp.bfloat16), 16)

    # conv2
    h2 = conv(lambda i: tap_from(a2_ref, i, 8), w2_ref, b2_ref)  # [8*bt, 8*64]
    store_parity(a3_ref, h2.astype(jnp.bfloat16), 8)

    # conv3 (output stays in registers/VMEM values; feeds the head directly)
    h3 = conv(lambda i: tap_from(a3_ref, i, 4), w3_ref, b3_ref)  # [4*bt, 4*64]
    h3 = h3.astype(jnp.bfloat16)

    # fc4 + ReLU: the NCHW flatten is folded into 4 per-output-row blocks.
    acc4 = None
    for r in range(4):
        d = jnp.dot(h3[r * bt:(r + 1) * bt, :], w4_ref[r],
                    preferred_element_type=f32)
        acc4 = d if acc4 is None else acc4 + d
    h4 = jnp.maximum(acc4 + b4_ref[...], 0.0)                # [bt, 256] f32

    # fc5 + masked log_softmax over the lane-padded (128) class dim.
    y = jnp.dot(h4.astype(jnp.bfloat16), w5_ref[...],
                preferred_element_type=f32) + b5_ref[...]
    col = jax.lax.broadcasted_iota(jnp.int32, y.shape, 1)
    y = jnp.where(col < num_classes, y, jnp.float32(-1e30))
    m = jnp.max(y, axis=-1, keepdims=True)
    s = y - m
    lse = jnp.log(jnp.sum(jnp.exp(s), axis=-1, keepdims=True))
    o_ref[...] = s - lse


def fused_net(x_blocks, packed, *, bt, num_classes):
    n_tiles, _, rows_in, k1 = x_blocks.shape
    n1 = packed["c1_w"].shape[2]
    k2, n2 = packed["c2_w"].shape[1], packed["c2_w"].shape[2]
    k3, n3 = packed["c3_w"].shape[1], packed["c3_w"].shape[2]
    k4, h4 = packed["fc4_w"].shape[1], packed["fc4_w"].shape[2]
    npad = packed["fc5_w"].shape[1]
    bpad = n_tiles * bt

    # Advisory cost estimate (actual in-kernel dot shapes).
    macs_per_step = (4 * (16 * bt) * k1 * n1 + 4 * (8 * bt) * k2 * n2 +
                     4 * (4 * bt) * k3 * n3 + 4 * bt * k4 * h4 + bt * h4 * npad)
    weight_args = (packed["c1_w"], packed["c1_b"], packed["c2_w"], packed["c2_b"],
                   packed["c3_w"], packed["c3_b"], packed["fc4_w"], packed["fc4_b"],
                   packed["fc5_w"], packed["fc5_b"])
    in_bytes = int(x_blocks.size) * x_blocks.dtype.itemsize + sum(
        int(a.size) * a.dtype.itemsize for a in weight_args)
    cost = pl.CostEstimate(
        flops=int(2 * n_tiles * macs_per_step),
        transcendentals=int(bpad * npad),
        bytes_accessed=int(in_bytes + bpad * npad * 4),
    )

    kernel = functools.partial(_fused_net_kernel, bt=bt, num_classes=num_classes)
    return pl.pallas_call(
        kernel,
        out_shape=jax.ShapeDtypeStruct((bpad, npad), jnp.float32),
        grid=(n_tiles,),
        in_specs=[
            pl.BlockSpec((1, 2, rows_in, k1), lambda i: (i, 0, 0, 0)),  # streamed input
            pl.BlockSpec((4, k1, n1), lambda i: (0, 0, 0)),             # resident weights
            pl.BlockSpec((1, n1), lambda i: (0, 0)),
            pl.BlockSpec((4, k2, n2), lambda i: (0, 0, 0)),
            pl.BlockSpec((1, n2), lambda i: (0, 0)),
            pl.BlockSpec((4, k3, n3), lambda i: (0, 0, 0)),
            pl.BlockSpec((1, n3), lambda i: (0, 0)),
            pl.BlockSpec((4, k4, h4), lambda i: (0, 0, 0)),
            pl.BlockSpec((1, h4), lambda i: (0, 0)),
            pl.BlockSpec((h4, npad), lambda i: (0, 0)),
            pl.BlockSpec((1, npad), lambda i: (0, 0)),
        ],
        out_specs=pl.BlockSpec((bt, npad), lambda i: (i, 0)),
        scratch_shapes=[
            pltpu.VMEM((2, 9 * bt, n1), jnp.bfloat16),   # conv2 input (padded rows)
            pltpu.VMEM((2, 5 * bt, n2), jnp.bfloat16),   # conv3 input (padded rows)
        ],
        compiler_params=pltpu.CompilerParams(
            dimension_semantics=("parallel",),
            vmem_limit_bytes=_VMEM_LIMIT,
        ),
        cost_estimate=cost,
    )(x_blocks, *weight_args)


# ------------------------------ parameters ---------------------------------

def init_params(key, num_classes=10, channel=1):
    """Matches Net.weight_init(mode='normal'): N(0, 0.02) weights, zero bias."""
    ks = jax.random.split(key, 5)

    def nrm(k, shape):
        return 0.02 * jax.random.normal(k, shape, dtype=jnp.float32)

    return {
        "conv1_w": nrm(ks[0], (32, channel, 4, 4)),
        "conv1_b": jnp.zeros((32,), jnp.float32),
        "conv2_w": nrm(ks[1], (64, 32, 4, 4)),
        "conv2_b": jnp.zeros((64,), jnp.float32),
        "conv3_w": nrm(ks[2], (64, 64, 4, 4)),
        "conv3_b": jnp.zeros((64,), jnp.float32),
        "fc4_w": nrm(ks[3], (256, 64 * 4 * 4)),     # torch Linear: [out, in]
        "fc4_b": jnp.zeros((256,), jnp.float32),
        "fc5_w": nrm(ks[4], (num_classes, 256)),
        "fc5_b": jnp.zeros((num_classes,), jnp.float32),
    }


def _conv_tap_weights(w, width_in):
    """Torch conv weight [Cout,Cin,4,4] -> 4 tap matrices [4, W_in*Cin, W_out*Cout]
    with the stride-2 / pad-1 column structure folded in (one per kernel row)."""
    w = np.asarray(w, np.float32)
    cout, cin, kh, kw = w.shape
    width_out = width_in // 2
    big = np.zeros((kh, width_in * cin, width_out * cout), np.float32)
    for i in range(kh):
        for ow in range(width_out):
            for j in range(kw):
                col = 2 * ow + j - 1          # original (unpadded) input column
                if 0 <= col < width_in:
                    big[i, col * cin:(col + 1) * cin,
                        ow * cout:(ow + 1) * cout] = w[:, :, i, j].T
    return jnp.asarray(big, jnp.bfloat16)


def _tiled_bias(b, width_out):
    return jnp.asarray(np.tile(np.asarray(b, np.float32), width_out)[None, :])


def pack_params(p, *, num_classes):
    """One-time repack of torch-layout params into kernel-friendly layouts."""
    # fc4: torch flat index = c*16 + oh*4 + ow; kernel uses (oh) blocks of (ow*64+c).
    w4 = np.asarray(p["fc4_w"], np.float32).reshape(256, 64, 4, 4)
    w4 = np.transpose(w4, (2, 3, 1, 0)).reshape(4, 4 * 64, 256)
    npad = ((num_classes + _LANE - 1) // _LANE) * _LANE
    w5 = np.zeros((256, npad), np.float32)
    w5[:, :num_classes] = np.asarray(p["fc5_w"], np.float32).T
    b5 = np.zeros((npad,), np.float32)
    b5[:num_classes] = np.asarray(p["fc5_b"], np.float32)
    return {
        "c1_w": _conv_tap_weights(p["conv1_w"], 32), "c1_b": _tiled_bias(p["conv1_b"], 16),
        "c2_w": _conv_tap_weights(p["conv2_w"], 16), "c2_b": _tiled_bias(p["conv2_b"], 8),
        "c3_w": _conv_tap_weights(p["conv3_w"], 8), "c3_b": _tiled_bias(p["conv3_b"], 4),
        "fc4_w": jnp.asarray(w4, jnp.bfloat16),
        "fc4_b": jnp.asarray(np.asarray(p["fc4_b"], np.float32)[None, :]),
        "fc5_w": jnp.asarray(w5, jnp.bfloat16),
        "fc5_b": jnp.asarray(b5[None, :]),
    }


# ------------------------------ forward pass -------------------------------

def _prepare_input(x, bt, n_tiles):
    """NCHW -> bf16 NHWC, pad rows by 1, flatten (W,C), split row parity and
    interleave batch so kernel reads are contiguous.  Tiny XLA-side prep."""
    batch, chan, height, width = x.shape
    bpad = n_tiles * bt
    x = jnp.transpose(x, (0, 2, 3, 1)).astype(jnp.bfloat16)          # NHWC
    x = jnp.pad(x, ((0, bpad - batch), (1, 1), (0, 0), (0, 0)))      # batch & row pad
    x = x.reshape(bpad, height + 2, width * chan)
    x = x.reshape(n_tiles, bt, (height + 2) // 2, 2, width * chan)
    x = jnp.transpose(x, (0, 3, 2, 1, 4))                            # [nT, 2, 17, bt, K]
    return x.reshape(n_tiles, 2, (height + 2) // 2 * bt, width * chan)


@functools.partial(jax.jit, static_argnames=("num_classes",))
def net_forward(packed, x, *, num_classes):
    # x: [B, C, 32, 32] (NCHW, torch convention) -> log-probs [B, num_classes]
    batch = x.shape[0]
    assert x.shape[2] == 32 and x.shape[3] == 32, "Net expects 32x32 inputs"
    bt = _pick_batch_tile(batch)
    n_tiles = pl.cdiv(batch, bt)
    x_blocks = _prepare_input(x, bt, n_tiles)
    logp = fused_net(x_blocks, packed, bt=bt, num_classes=num_classes)
    return logp[:batch, :num_classes]


# ------------------------- pure-JAX f32 reference --------------------------

def reference_forward(params, x):
    def conv(h, w, b):
        y = jax.lax.conv_general_dilated(
            h, w, window_strides=(2, 2), padding=((1, 1), (1, 1)),
            dimension_numbers=("NCHW", "OIHW", "NCHW"))
        return jax.nn.relu(y + b[None, :, None, None])
    h = conv(x, params["conv1_w"], params["conv1_b"])
    h = conv(h, params["conv2_w"], params["conv2_b"])
    h = conv(h, params["conv3_w"], params["conv3_b"])
    h = h.reshape(h.shape[0], -1)
    h = jax.nn.relu(h @ params["fc4_w"].T + params["fc4_b"])
    y = h @ params["fc5_w"].T + params["fc5_b"]
    return jax.nn.log_softmax(y, axis=-1)


# ---------------------------------- main ------------------------------------

if __name__ == "__main__":
    key = jax.random.PRNGKey(0)
    k_params, k_x = jax.random.split(key)

    # fc4 expects 64*4*4 features -> input spatial must be 32x32 (32->16->8->4).
    batch, channel, num_classes = 2, 1, 10
    x = jax.random.normal(k_x, (batch, channel, 32, 32), dtype=jnp.float32)

    params = init_params(k_params, num_classes=num_classes, channel=channel)
    packed = pack_params(params, num_classes=num_classes)

    logp = net_forward(packed, x, num_classes=num_classes)
    jax.block_until_ready(logp)

    assert logp.shape == (batch, num_classes)
    # sanity: rows of log_softmax should exp-sum to ~1
    row_sums = jnp.exp(logp).sum(axis=1)
    assert bool(jnp.all(jnp.abs(row_sums - 1.0) < 1e-3))
    # explicit tolerance vs. a float32 XLA reference (bf16 matmul operands)
    ref = reference_forward(params, x)
    max_err = float(jnp.max(jnp.abs(logp - ref)))
    assert max_err < 5e-2, f"mismatch vs f32 reference: {max_err}"

    print("KERNEL_OK")
</pallas_src>

<mosaic_0001>
module attributes {stable_mosaic.version = 11 : i64} {
  func.func @_fused_net_kernel(%arg0: i32, %arg1: memref<1x2x136x32xbf16, #tpu.memory_space<vmem>>, %arg2: memref<4x32x512xbf16, #tpu.memory_space<vmem>>, %arg3: memref<1x512xf32, #tpu.memory_space<vmem>>, %arg4: memref<4x512x512xbf16, #tpu.memory_space<vmem>>, %arg5: memref<1x512xf32, #tpu.memory_space<vmem>>, %arg6: memref<4x512x256xbf16, #tpu.memory_space<vmem>>, %arg7: memref<1x256xf32, #tpu.memory_space<vmem>>, %arg8: memref<4x256x256xbf16, #tpu.memory_space<vmem>>, %arg9: memref<1x256xf32, #tpu.memory_space<vmem>>, %arg10: memref<256x128xbf16, #tpu.memory_space<vmem>>, %arg11: memref<1x128xf32, #tpu.memory_space<vmem>>, %arg12: memref<8x128xf32, #tpu.memory_space<vmem>>, %arg13: memref<2x72x512xbf16, #tpu.memory_space<vmem>>, %arg14: memref<2x40x512xbf16, #tpu.memory_space<vmem>>) attributes {dimension_semantics = [#tpu.dimension_semantics<parallel>], iteration_bounds = array<i64: 1>, scalar_prefetch = 0 : i64, scratch_operands = 2 : i64, tpu.core_type = #tpu.core_type<tc>, window_params = [{transform_indices = @transform_0, window_bounds = array<i64: 1, 2, 136, 32>}, {pipeline_mode = #tpu.pipeline_mode<synchronous>, transform_indices = @transform_1, window_bounds = array<i64: 4, 32, 512>}, {pipeline_mode = #tpu.pipeline_mode<synchronous>, transform_indices = @transform_2, window_bounds = array<i64: 1, 512>}, {pipeline_mode = #tpu.pipeline_mode<synchronous>, transform_indices = @transform_3, window_bounds = array<i64: 4, 512, 512>}, {pipeline_mode = #tpu.pipeline_mode<synchronous>, transform_indices = @transform_4, window_bounds = array<i64: 1, 512>}, {pipeline_mode = #tpu.pipeline_mode<synchronous>, transform_indices = @transform_5, window_bounds = array<i64: 4, 512, 256>}, {pipeline_mode = #tpu.pipeline_mode<synchronous>, transform_indices = @transform_6, window_bounds = array<i64: 1, 256>}, {pipeline_mode = #tpu.pipeline_mode<synchronous>, transform_indices = @transform_7, window_bounds = array<i64: 4, 256, 256>}, {pipeline_mode = #tpu.pipeline_mode<synchronous>, transform_indices = @transform_8, window_bounds = array<i64: 1, 256>}, {pipeline_mode = #tpu.pipeline_mode<synchronous>, transform_indices = @transform_9, window_bounds = array<i64: 256, 128>}, {pipeline_mode = #tpu.pipeline_mode<synchronous>, transform_indices = @transform_10, window_bounds = array<i64: 1, 128>}, {transform_indices = @transform_11, window_bounds = array<i64: 8, 128>}]} {
    %c0 = arith.constant 0 : index
    %c0_0 = arith.constant 0 : index
    %c0_1 = arith.constant 0 : index
    %c0_2 = arith.constant 0 : index
    %0 = vector.load %arg1[%c0, %c0_0, %c0_1, %c0_2] : memref<1x2x136x32xbf16, #tpu.memory_space<vmem>>, vector<1x1x128x32xbf16>
    %1 = vector.shape_cast %0 : vector<1x1x128x32xbf16> to vector<128x32xbf16>
    %c0_3 = arith.constant 0 : index
    %c0_4 = arith.constant 0 : index
    %c0_5 = arith.constant 0 : index
    %2 = vector.load %arg2[%c0_3, %c0_4, %c0_5] : memref<4x32x512xbf16, #tpu.memory_space<vmem>>, vector<1x32x512xbf16>
    %3 = vector.shape_cast %2 : vector<1x32x512xbf16> to vector<32x512xbf16>
    %cst = arith.constant dense<0.000000e+00> : vector<128x512xf32>
    %4 = tpu.matmul %1, %3, %cst {dimension_numbers = #tpu.dot_dimension_numbers<[1], [0], [0], [1], [0, 0, 1, 1], [], []>} : vector<128x32xbf16>, vector<32x512xbf16>, vector<128x512xf32> -> vector<128x512xf32>
    %c0_6 = arith.constant 0 : index
    %c1 = arith.constant 1 : index
    %c0_7 = arith.constant 0 : index
    %c0_8 = arith.constant 0 : index
    %5 = vector.load %arg1[%c0_6, %c1, %c0_7, %c0_8] : memref<1x2x136x32xbf16, #tpu.memory_space<vmem>>, vector<1x1x128x32xbf16>
    %6 = vector.shape_cast %5 : vector<1x1x128x32xbf16> to vector<128x32xbf16>
    %c1_9 = arith.constant 1 : index
    %c0_10 = arith.constant 0 : index
    %c0_11 = arith.constant 0 : index
    %7 = vector.load %arg2[%c1_9, %c0_10, %c0_11] : memref<4x32x512xbf16, #tpu.memory_space<vmem>>, vector<1x32x512xbf16>
    %8 = vector.shape_cast %7 : vector<1x32x512xbf16> to vector<32x512xbf16>
    %cst_12 = arith.constant dense<0.000000e+00> : vector<128x512xf32>
    %9 = tpu.matmul %6, %8, %cst_12 {dimension_numbers = #tpu.dot_dimension_numbers<[1], [0], [0], [1], [0, 0, 1, 1], [], []>} : vector<128x32xbf16>, vector<32x512xbf16>, vector<128x512xf32> -> vector<128x512xf32>
    %10 = arith.addf %4, %9 : vector<128x512xf32>
    %c0_13 = arith.constant 0 : index
    %c0_14 = arith.constant 0 : index
    %c8 = arith.constant 8 : index
    %c0_15 = arith.constant 0 : index
    %11 = vector.load %arg1[%c0_13, %c0_14, %c8, %c0_15] : memref<1x2x136x32xbf16, #tpu.memory_space<vmem>>, vector<1x1x128x32xbf16>
    %12 = vector.shape_cast %11 : vector<1x1x128x32xbf16> to vector<128x32xbf16>
    %c2 = arith.constant 2 : index
    %c0_16 = arith.constant 0 : index
    %c0_17 = arith.constant 0 : index
    %13 = vector.load %arg2[%c2, %c0_16, %c0_17] : memref<4x32x512xbf16, #tpu.memory_space<vmem>>, vector<1x32x512xbf16>
    %14 = vector.shape_cast %13 : vector<1x32x512xbf16> to vector<32x512xbf16>
    %cst_18 = arith.constant dense<0.000000e+00> : vector<128x512xf32>
    %15 = tpu.matmul %12, %14, %cst_18 {dimension_numbers = #tpu.dot_dimension_numbers<[1], [0], [0], [1], [0, 0, 1, 1], [], []>} : vector<128x32xbf16>, vector<32x512xbf16>, vector<128x512xf32> -> vector<128x512xf32>
    %16 = arith.addf %10, %15 : vector<128x512xf32>
    %c0_19 = arith.constant 0 : index
    %c1_20 = arith.constant 1 : index
    %c8_21 = arith.constant 8 : index
    %c0_22 = arith.constant 0 : index
    %17 = vector.load %arg1[%c0_19, %c1_20, %c8_21, %c0_22] : memref<1x2x136x32xbf16, #tpu.memory_space<vmem>>, vector<1x1x128x32xbf16>
    %18 = vector.shape_cast %17 : vector<1x1x128x32xbf16> to vector<128x32xbf16>
    %c3 = arith.constant 3 : index
    %c0_23 = arith.constant 0 : index
    %c0_24 = arith.constant 0 : index
    %19 = vector.load %arg2[%c3, %c0_23, %c0_24] : memref<4x32x512xbf16, #tpu.memory_space<vmem>>, vector<1x32x512xbf16>
    %20 = vector.shape_cast %19 : vector<1x32x512xbf16> to vector<32x512xbf16>
    %cst_25 = arith.constant dense<0.000000e+00> : vector<128x512xf32>
    %21 = tpu.matmul %18, %20, %cst_25 {dimension_numbers = #tpu.dot_dimension_numbers<[1], [0], [0], [1], [0, 0, 1, 1], [], []>} : vector<128x32xbf16>, vector<32x512xbf16>, vector<128x512xf32> -> vector<128x512xf32>
    %22 = arith.addf %16, %21 : vector<128x512xf32>
    %c0_26 = arith.constant 0 : index
    %c0_27 = arith.constant 0 : index
    %23 = vector.load %arg3[%c0_26, %c0_27] : memref<1x512xf32, #tpu.memory_space<vmem>>, vector<1x512xf32>
    %24 = vector.broadcast %23 : vector<1x512xf32> to vector<128x512xf32>
    %25 = arith.addf %22, %24 : vector<128x512xf32>
    %cst_28 = arith.constant 0.000000e+00 : f32
    %26 = vector.broadcast %cst_28 : f32 to vector<128x512xf32>
    %27 = arith.maximumf %25, %26 : vector<128x512xf32>
    %28 = arith.truncf %27 : vector<128x512xf32> to vector<128x512xbf16>
    %cst_29 = arith.constant 0.000000e+00 : bf16
    %29 = vector.broadcast %cst_29 : bf16 to vector<8x512xbf16>
    %c0_30 = arith.constant 0 : index
    %c0_31 = arith.constant 0 : index
    %c0_32 = arith.constant 0 : index
    %30 = vector.load %arg13[%c0_30, %c0_31, %c0_32] : memref<2x72x512xbf16, #tpu.memory_space<vmem>>, vector<1x8x512xbf16>
    %31 = vector.shape_cast %30 : vector<1x8x512xbf16> to vector<8x512xbf16>
    %32 = vector.shape_cast %29 : vector<8x512xbf16> to vector<1x8x512xbf16>
    tpu.vector_store %arg13[%c0_30, %c0_31, %c0_32], %32 {strides = array<i32>} : memref<2x72x512xbf16, #tpu.memory_space<vmem>>, vector<1x8x512xbf16>,
    %c1_33 = arith.constant 1 : index
    %c64 = arith.constant 64 : index
    %c0_34 = arith.constant 0 : index
    %33 = vector.load %arg13[%c1_33, %c64, %c0_34] : memref<2x72x512xbf16, #tpu.memory_space<vmem>>, vector<1x8x512xbf16>
    %34 = vector.shape_cast %33 : vector<1x8x512xbf16> to vector<8x512xbf16>
    %35 = vector.shape_cast %29 : vector<8x512xbf16> to vector<1x8x512xbf16>
    tpu.vector_store %arg13[%c1_33, %c64, %c0_34], %35 {strides = array<i32>} : memref<2x72x512xbf16, #tpu.memory_space<vmem>>, vector<1x8x512xbf16>,
    %36 = vector.extract_strided_slice %28 {offsets = [0, 0], sizes = [8, 512], strides = [1, 1]} : vector<128x512xbf16> to vector<8x512xbf16>
    %c1_35 = arith.constant 1 : index
    %c0_36 = arith.constant 0 : index
    %c0_37 = arith.constant 0 : index
    %37 = vector.load %arg13[%c1_35, %c0_36, %c0_37] : memref<2x72x512xbf16, #tpu.memory_space<vmem>>, vector<1x8x512xbf16>
    %38 = vector.shape_cast %37 : vector<1x8x512xbf16> to vector<8x512xbf16>
    %39 = vector.shape_cast %36 : vector<8x512xbf16> to vector<1x8x512xbf16>
    tpu.vector_store %arg13[%c1_35, %c0_36, %c0_37], %39 {strides = array<i32>} : memref<2x72x512xbf16, #tpu.memory_space<vmem>>, vector<1x8x512xbf16>,
    %40 = vector.extract_strided_slice %28 {offsets = [8, 0], sizes = [8, 512], strides = [1, 1]} : vector<128x512xbf16> to vector<8x512xbf16>
    %c0_38 = arith.constant 0 : index
    %c8_39 = arith.constant 8 : index
    %c0_40 = arith.constant 0 : index
    %41 = vector.load %arg13[%c0_38, %c8_39, %c0_40] : memref<2x72x512xbf16, #tpu.memory_space<vmem>>, vector<1x8x512xbf16>
    %42 = vector.shape_cast %41 : vector<1x8x512xbf16> to vector<8x512xbf16>
    %43 = vector.shape_cast %40 : vector<8x512xbf16> to vector<1x8x512xbf16>
    tpu.vector_store %arg13[%c0_38, %c8_39, %c0_40], %43 {strides = array<i32>} : memref<2x72x512xbf16, #tpu.memory_space<vmem>>, vector<1x8x512xbf16>,
    %44 = vector.extract_strided_slice %28 {offsets = [16, 0], sizes = [8, 512], strides = [1, 1]} : vector<128x512xbf16> to vector<8x512xbf16>
    %c1_41 = arith.constant 1 : index
    %c8_42 = arith.constant 8 : index
    %c0_43 = arith.constant 0 : index
    %45 = vector.load %arg13[%c1_41, %c8_42, %c0_43] : memref<2x72x512xbf16, #tpu.memory_space<vmem>>, vector<1x8x512xbf16>
    %46 = vector.shape_cast %45 : vector<1x8x512xbf16> to vector<8x512xbf16>
    %47 = vector.shape_cast %44 : vector<8x512xbf16> to vector<1x8x512xbf16>
    tpu.vector_store %arg13[%c1_41, %c8_42, %c0_43], %47 {strides = array<i32>} : memref<2x72x512xbf16, #tpu.memory_space<vmem>>, vector<1x8x512xbf16>,
    %48 = vector.extract_strided_slice %28 {offsets = [24, 0], sizes = [8, 512], strides = [1, 1]} : vector<128x512xbf16> to vector<8x512xbf16>
    %c0_44 = arith.constant 0 : index
    %c16 = arith.constant 16 : index
    %c0_45 = arith.constant 0 : index
    %49 = vector.load %arg13[%c0_44, %c16, %c0_45] : memref<2x72x512xbf16, #tpu.memory_space<vmem>>, vector<1x8x512xbf16>
    %50 = vector.shape_cast %49 : vector<1x8x512xbf16> to vector<8x512xbf16>
    %51 = vector.shape_cast %48 : vector<8x512xbf16> to vector<1x8x512xbf16>
    tpu.vector_store %arg13[%c0_44, %c16, %c0_45], %51 {strides = array<i32>} : memref<2x72x512xbf16, #tpu.memory_space<vmem>>, vector<1x8x512xbf16>,
    %52 = vector.extract_strided_slice %28 {offsets = [32, 0], sizes = [8, 512], strides = [1, 1]} : vector<128x512xbf16> to vector<8x512xbf16>
    %c1_46 = arith.constant 1 : index
    %c16_47 = arith.constant 16 : index
    %c0_48 = arith.constant 0 : index
    %53 = vector.load %arg13[%c1_46, %c16_47, %c0_48] : memref<2x72x512xbf16, #tpu.memory_space<vmem>>, vector<1x8x512xbf16>
    %54 = vector.shape_cast %53 : vector<1x8x512xbf16> to vector<8x512xbf16>
    %55 = vector.shape_cast %52 : vector<8x512xbf16> to vector<1x8x512xbf16>
    tpu.vector_store %arg13[%c1_46, %c16_47, %c0_48], %55 {strides = array<i32>} : memref<2x72x512xbf16, #tpu.memory_space<vmem>>, vector<1x8x512xbf16>,
    %56 = vector.extract_strided_slice %28 {offsets = [40, 0], sizes = [8, 512], strides = [1, 1]} : vector<128x512xbf16> to vector<8x512xbf16>
    %c0_49 = arith.constant 0 : index
    %c24 = arith.constant 24 : index
    %c0_50 = arith.constant 0 : index
    %57 = vector.load %arg13[%c0_49, %c24, %c0_50] : memref<2x72x512xbf16, #tpu.memory_space<vmem>>, vector<1x8x512xbf16>
    %58 = vector.shape_cast %57 : vector<1x8x512xbf16> to vector<8x512xbf16>
    %59 = vector.shape_cast %56 : vector<8x512xbf16> to vector<1x8x512xbf16>
    tpu.vector_store %arg13[%c0_49, %c24, %c0_50], %59 {strides = array<i32>} : memref<2x72x512xbf16, #tpu.memory_space<vmem>>, vector<1x8x512xbf16>,
    %60 = vector.extract_strided_slice %28 {offsets = [48, 0], sizes = [8, 512], strides = [1, 1]} : vector<128x512xbf16> to vector<8x512xbf16>
    %c1_51 = arith.constant 1 : index
    %c24_52 = arith.constant 24 : index
    %c0_53 = arith.constant 0 : index
    %61 = vector.load %arg13[%c1_51, %c24_52, %c0_53] : memref<2x72x512xbf16, #tpu.memory_space<vmem>>, vector<1x8x512xbf16>
    %62 = vector.shape_cast %61 : vector<1x8x512xbf16> to vector<8x512xbf16>
    %63 = vector.shape_cast %60 : vector<8x512xbf16> to vector<1x8x512xbf16>
    tpu.vector_store %arg13[%c1_51, %c24_52, %c0_53], %63 {strides = array<i32>} : memref<2x72x512xbf16, #tpu.memory_space<vmem>>, vector<1x8x512xbf16>,
    %64 = vector.extract_strided_slice %28 {offsets = [56, 0], sizes = [8, 512], strides = [1, 1]} : vector<128x512xbf16> to vector<8x512xbf16>
    %c0_54 = arith.constant 0 : index
    %c32 = arith.constant 32 : index
    %c0_55 = arith.constant 0 : index
    %65 = vector.load %arg13[%c0_54, %c32, %c0_55] : memref<2x72x512xbf16, #tpu.memory_space<vmem>>, vector<1x8x512xbf16>
    %66 = vector.shape_cast %65 : vector<1x8x512xbf16> to vector<8x512xbf16>
    %67 = vector.shape_cast %64 : vector<8x512xbf16> to vector<1x8x512xbf16>
    tpu.vector_store %arg13[%c0_54, %c32, %c0_55], %67 {strides = array<i32>} : memref<2x72x512xbf16, #tpu.memory_space<vmem>>, vector<1x8x512xbf16>,
    %68 = vector.extract_strided_slice %28 {offsets = [64, 0], sizes = [8, 512], strides = [1, 1]} : vector<128x512xbf16> to vector<8x512xbf16>
    %c1_56 = arith.constant 1 : index
    %c32_57 = arith.constant 32 : index
    %c0_58 = arith.constant 0 : index
    %69 = vector.load %arg13[%c1_56, %c32_57, %c0_58] : memref<2x72x512xbf16, #tpu.memory_space<vmem>>, vector<1x8x512xbf16>
    %70 = vector.shape_cast %69 : vector<1x8x512xbf16> to vector<8x512xbf16>
    %71 = vector.shape_cast %68 : vector<8x512xbf16> to vector<1x8x512xbf16>
    tpu.vector_store %arg13[%c1_56, %c32_57, %c0_58], %71 {strides = array<i32>} : memref<2x72x512xbf16, #tpu.memory_space<vmem>>, vector<1x8x512xbf16>,
    %72 = vector.extract_strided_slice %28 {offsets = [72, 0], sizes = [8, 512], strides = [1, 1]} : vector<128x512xbf16> to vector<8x512xbf16>
    %c0_59 = arith.constant 0 : index
    %c40 = arith.constant 40 : index
    %c0_60 = arith.constant 0 : index
    %73 = vector.load %arg13[%c0_59, %c40, %c0_60] : memref<2x72x512xbf16, #tpu.memory_space<vmem>>, vector<1x8x512xbf16>
    %74 = vector.shape_cast %73 : vector<1x8x512xbf16> to vector<8x512xbf16>
    %75 = vector.shape_cast %72 : vector<8x512xbf16> to vector<1x8x512xbf16>
    tpu.vector_store %arg13[%c0_59, %c40, %c0_60], %75 {strides = array<i32>} : memref<2x72x512xbf16, #tpu.memory_space<vmem>>, vector<1x8x512xbf16>,
    %76 = vector.extract_strided_slice %28 {offsets = [80, 0], sizes = [8, 512], strides = [1, 1]} : vector<128x512xbf16> to vector<8x512xbf16>
    %c1_61 = arith.constant 1 : index
    %c40_62 = arith.constant 40 : index
    %c0_63 = arith.constant 0 : index
    %77 = vector.load %arg13[%c1_61, %c40_62, %c0_63] : memref<2x72x512xbf16, #tpu.memory_space<vmem>>, vector<1x8x512xbf16>
    %78 = vector.shape_cast %77 : vector<1x8x512xbf16> to vector<8x512xbf16>
    %79 = vector.shape_cast %76 : vector<8x512xbf16> to vector<1x8x512xbf16>
    tpu.vector_store %arg13[%c1_61, %c40_62, %c0_63], %79 {strides = array<i32>} : memref<2x72x512xbf16, #tpu.memory_space<vmem>>, vector<1x8x512xbf16>,
    %80 = vector.extract_strided_slice %28 {offsets = [88, 0], sizes = [8, 512], strides = [1, 1]} : vector<128x512xbf16> to vector<8x512xbf16>
    %c0_64 = arith.constant 0 : index
    %c48 = arith.constant 48 : index
    %c0_65 = arith.constant 0 : index
    %81 = vector.load %arg13[%c0_64, %c48, %c0_65] : memref<2x72x512xbf16, #tpu.memory_space<vmem>>, vector<1x8x512xbf16>
    %82 = vector.shape_cast %81 : vector<1x8x512xbf16> to vector<8x512xbf16>
    %83 = vector.shape_cast %80 : vector<8x512xbf16> to vector<1x8x512xbf16>
    tpu.vector_store %arg13[%c0_64, %c48, %c0_65], %83 {strides = array<i32>} : memref<2x72x512xbf16, #tpu.memory_space<vmem>>, vector<1x8x512xbf16>,
    %84 = vector.extract_strided_slice %28 {offsets = [96, 0], sizes = [8, 512], strides = [1, 1]} : vector<128x512xbf16> to vector<8x512xbf16>
    %c1_66 = arith.constant 1 : index
    %c48_67 = arith.constant 48 : index
    %c0_68 = arith.constant 0 : index
    %85 = vector.load %arg13[%c1_66, %c48_67, %c0_68] : memref<2x72x512xbf16, #tpu.memory_space<vmem>>, vector<1x8x512xbf16>
    %86 = vector.shape_cast %85 : vector<1x8x512xbf16> to vector<8x512xbf16>
    %87 = vector.shape_cast %84 : vector<8x512xbf16> to vector<1x8x512xbf16>
    tpu.vector_store %arg13[%c1_66, %c48_67, %c0_68], %87 {strides = array<i32>} : memref<2x72x512xbf16, #tpu.memory_space<vmem>>, vector<1x8x512xbf16>,
    %88 = vector.extract_strided_slice %28 {offsets = [104, 0], sizes = [8, 512], strides = [1, 1]} : vector<128x512xbf16> to vector<8x512xbf16>
    %c0_69 = arith.constant 0 : index
    %c56 = arith.constant 56 : index
    %c0_70 = arith.constant 0 : index
    %89 = vector.load %arg13[%c0_69, %c56, %c0_70] : memref<2x72x512xbf16, #tpu.memory_space<vmem>>, vector<1x8x512xbf16>
    %90 = vector.shape_cast %89 : vector<1x8x512xbf16> to vector<8x512xbf16>
    %91 = vector.shape_cast %88 : vector<8x512xbf16> to vector<1x8x512xbf16>
    tpu.vector_store %arg13[%c0_69, %c56, %c0_70], %91 {strides = array<i32>} : memref<2x72x512xbf16, #tpu.memory_space<vmem>>, vector<1x8x512xbf16>,
    %92 = vector.extract_strided_slice %28 {offsets = [112, 0], sizes = [8, 512], strides = [1, 1]} : vector<128x512xbf16> to vector<8x512xbf16>
    %c1_71 = arith.constant 1 : index
    %c56_72 = arith.constant 56 : index
    %c0_73 = arith.constant 0 : index
    %93 = vector.load %arg13[%c1_71, %c56_72, %c0_73] : memref<2x72x512xbf16, #tpu.memory_space<vmem>>, vector<1x8x512xbf16>
    %94 = vector.shape_cast %93 : vector<1x8x512xbf16> to vector<8x512xbf16>
    %95 = vector.shape_cast %92 : vector<8x512xbf16> to vector<1x8x512xbf16>
    tpu.vector_store %arg13[%c1_71, %c56_72, %c0_73], %95 {strides = array<i32>} : memref<2x72x512xbf16, #tpu.memory_space<vmem>>, vector<1x8x512xbf16>,
    %96 = vector.extract_strided_slice %28 {offsets = [120, 0], sizes = [8, 512], strides = [1, 1]} : vector<128x512xbf16> to vector<8x512xbf16>
    %c0_74 = arith.constant 0 : index
    %c64_75 = arith.constant 64 : index
    %c0_76 = arith.constant 0 : index
    %97 = vector.load %arg13[%c0_74, %c64_75, %c0_76] : memref<2x72x512xbf16, #tpu.memory_space<vmem>>, vector<1x8x512xbf16>
    %98 = vector.shape_cast %97 : vector<1x8x512xbf16> to vector<8x512xbf16>
    %99 = vector.shape_cast %96 : vector<8x512xbf16> to vector<1x8x512xbf16>
    tpu.vector_store %arg13[%c0_74, %c64_75, %c0_76], %99 {strides = array<i32>} : memref<2x72x512xbf16, #tpu.memory_space<vmem>>, vector<1x8x512xbf16>,
    %c0_77 = arith.constant 0 : index
    %c0_78 = arith.constant 0 : index
    %c0_79 = arith.constant 0 : index
    %100 = vector.load %arg13[%c0_77, %c0_78, %c0_79] : memref<2x72x512xbf16, #tpu.memory_space<vmem>>, vector<1x64x512xbf16>
    %101 = vector.shape_cast %100 : vector<1x64x512xbf16> to vector<64x512xbf16>
    %c0_80 = arith.constant 0 : index
    %c0_81 = arith.constant 0 : index
    %c0_82 = arith.constant 0 : index
    %102 = vector.load %arg4[%c0_80, %c0_81, %c0_82] : memref<4x512x512xbf16, #tpu.memory_space<vmem>>, vector<1x512x512xbf16>
    %103 = vector.shape_cast %102 : vector<1x512x512xbf16> to vector<512x512xbf16>
    %cst_83 = arith.constant dense<0.000000e+00> : vector<64x512xf32>
    %104 = tpu.matmul %101, %103, %cst_83 {dimension_numbers = #tpu.dot_dimension_numbers<[1], [0], [0], [1], [0, 0, 1, 1], [], []>} : vector<64x512xbf16>, vector<512x512xbf16>, vector<64x512xf32> -> vector<64x512xf32>
    %c1_84 = arith.constant 1 : index
    %c0_85 = arith.constant 0 : index
    %c0_86 = arith.constant 0 : index
    %105 = vector.load %arg13[%c1_84, %c0_85, %c0_86] : memref<2x72x512xbf16, #tpu.memory_space<vmem>>, vector<1x64x512xbf16>
    %106 = vector.shape_cast %105 : vector<1x64x512xbf16> to vector<64x512xbf16>
    %c1_87 = arith.constant 1 : index
    %c0_88 = arith.constant 0 : index
    %c0_89 = arith.constant 0 : index
    %107 = vector.load %arg4[%c1_87, %c0_88, %c0_89] : memref<4x512x512xbf16, #tpu.memory_space<vmem>>, vector<1x512x512xbf16>
    %108 = vector.shape_cast %107 : vector<1x512x512xbf16> to vector<512x512xbf16>
    %cst_90 = arith.constant dense<0.000000e+00> : vector<64x512xf32>
    %109 = tpu.matmul %106, %108, %cst_90 {dimension_numbers = #tpu.dot_dimension_numbers<[1], [0], [0], [1], [0, 0, 1, 1], [], []>} : vector<64x512xbf16>, vector<512x512xbf16>, vector<64x512xf32> -> vector<64x512xf32>
    %110 = arith.addf %104, %109 : vector<64x512xf32>
    %c0_91 = arith.constant 0 : index
    %c8_92 = arith.constant 8 : index
    %c0_93 = arith.constant 0 : index
    %111 = vector.load %arg13[%c0_91, %c8_92, %c0_93] : memref<2x72x512xbf16, #tpu.memory_space<vmem>>, vector<1x64x512xbf16>
    %112 = vector.shape_cast %111 : vector<1x64x512xbf16> to vector<64x512xbf16>
    %c2_94 = arith.constant 2 : index
    %c0_95 = arith.constant 0 : index
    %c0_96 = arith.constant 0 : index
    %113 = vector.load %arg4[%c2_94, %c0_95, %c0_96] : memref<4x512x512xbf16, #tpu.memory_space<vmem>>, vector<1x512x512xbf16>
    %114 = vector.shape_cast %113 : vector<1x512x512xbf16> to vector<512x512xbf16>
    %cst_97 = arith.constant dense<0.000000e+00> : vector<64x512xf32>
    %115 = tpu.matmul %112, %114, %cst_97 {dimension_numbers = #tpu.dot_dimension_numbers<[1], [0], [0], [1], [0, 0, 1, 1], [], []>} : vector<64x512xbf16>, vector<512x512xbf16>, vector<64x512xf32> -> vector<64x512xf32>
    %116 = arith.addf %110, %115 : vector<64x512xf32>
    %c1_98 = arith.constant 1 : index
    %c8_99 = arith.constant 8 : index
    %c0_100 = arith.constant 0 : index
    %117 = vector.load %arg13[%c1_98, %c8_99, %c0_100] : memref<2x72x512xbf16, #tpu.memory_space<vmem>>, vector<1x64x512xbf16>
    %118 = vector.shape_cast %117 : vector<1x64x512xbf16> to vector<64x512xbf16>
    %c3_101 = arith.constant 3 : index
    %c0_102 = arith.constant 0 : index
    %c0_103 = arith.constant 0 : index
    %119 = vector.load %arg4[%c3_101, %c0_102, %c0_103] : memref<4x512x512xbf16, #tpu.memory_space<vmem>>, vector<1x512x512xbf16>
    %120 = vector.shape_cast %119 : vector<1x512x512xbf16> to vector<512x512xbf16>
    %cst_104 = arith.constant dense<0.000000e+00> : vector<64x512xf32>
    %121 = tpu.matmul %118, %120, %cst_104 {dimension_numbers = #tpu.dot_dimension_numbers<[1], [0], [0], [1], [0, 0, 1, 1], [], []>} : vector<64x512xbf16>, vector<512x512xbf16>, vector<64x512xf32> -> vector<64x512xf32>
    %122 = arith.addf %116, %121 : vector<64x512xf32>
    %c0_105 = arith.constant 0 : index
    %c0_106 = arith.constant 0 : index
    %123 = vector.load %arg5[%c0_105, %c0_106] : memref<1x512xf32, #tpu.memory_space<vmem>>, vector<1x512xf32>
    %124 = vector.broadcast %123 : vector<1x512xf32> to vector<64x512xf32>
    %125 = arith.addf %122, %124 : vector<64x512xf32>
    %cst_107 = arith.constant 0.000000e+00 : f32
    %126 = vector.broadcast %cst_107 : f32 to vector<64x512xf32>
    %127 = arith.maximumf %125, %126 : vector<64x512xf32>
    %128 = arith.truncf %127 : vector<64x512xf32> to vector<64x512xbf16>
    %cst_108 = arith.constant 0.000000e+00 : bf16
    %129 = vector.broadcast %cst_108 : bf16 to vector<8x512xbf16>
    %c0_109 = arith.constant 0 : index
    %c0_110 = arith.constant 0 : index
    %c0_111 = arith.constant 0 : index
    %130 = vector.load %arg14[%c0_109, %c0_110, %c0_111] : memref<2x40x512xbf16, #tpu.memory_space<vmem>>, vector<1x8x512xbf16>
    %131 = vector.shape_cast %130 : vector<1x8x512xbf16> to vector<8x512xbf16>
    %132 = vector.shape_cast %129 : vector<8x512xbf16> to vector<1x8x512xbf16>
    tpu.vector_store %arg14[%c0_109, %c0_110, %c0_111], %132 {strides = array<i32>} : memref<2x40x512xbf16, #tpu.memory_space<vmem>>, vector<1x8x512xbf16>,
    %c1_112 = arith.constant 1 : index
    %c32_113 = arith.constant 32 : index
    %c0_114 = arith.constant 0 : index
    %133 = vector.load %arg14[%c1_112, %c32_113, %c0_114] : memref<2x40x512xbf16, #tpu.memory_space<vmem>>, vector<1x8x512xbf16>
    %134 = vector.shape_cast %133 : vector<1x8x512xbf16> to vector<8x512xbf16>
    %135 = vector.shape_cast %129 : vector<8x512xbf16> to vector<1x8x512xbf16>
    tpu.vector_store %arg14[%c1_112, %c32_113, %c0_114], %135 {strides = array<i32>} : memref<2x40x512xbf16, #tpu.memory_space<vmem>>, vector<1x8x512xbf16>,
    %136 = vector.extract_strided_slice %128 {offsets = [0, 0], sizes = [8, 512], strides = [1, 1]} : vector<64x512xbf16> to vector<8x512xbf16>
    %c1_115 = arith.constant 1 : index
    %c0_116 = arith.constant 0 : index
    %c0_117 = arith.constant 0 : index
    %137 = vector.load %arg14[%c1_115, %c0_116, %c0_117] : memref<2x40x512xbf16, #tpu.memory_space<vmem>>, vector<1x8x512xbf16>
    %138 = vector.shape_cast %137 : vector<1x8x512xbf16> to vector<8x512xbf16>
    %139 = vector.shape_cast %136 : vector<8x512xbf16> to vector<1x8x512xbf16>
    tpu.vector_store %arg14[%c1_115, %c0_116, %c0_117], %139 {strides = array<i32>} : memref<2x40x512xbf16, #tpu.memory_space<vmem>>, vector<1x8x512xbf16>,
    %140 = vector.extract_strided_slice %128 {offsets = [8, 0], sizes = [8, 512], strides = [1, 1]} : vector<64x512xbf16> to vector<8x512xbf16>
    %c0_118 = arith.constant 0 : index
    %c8_119 = arith.constant 8 : index
    %c0_120 = arith.constant 0 : index
    %141 = vector.load %arg14[%c0_118, %c8_119, %c0_120] : memref<2x40x512xbf16, #tpu.memory_space<vmem>>, vector<1x8x512xbf16>
    %142 = vector.shape_cast %141 : vector<1x8x512xbf16> to vector<8x512xbf16>
    %143 = vector.shape_cast %140 : vector<8x512xbf16> to vector<1x8x512xbf16>
    tpu.vector_store %arg14[%c0_118, %c8_119, %c0_120], %143 {strides = array<i32>} : memref<2x40x512xbf16, #tpu.memory_space<vmem>>, vector<1x8x512xbf16>,
    %144 = vector.extract_strided_slice %128 {offsets = [16, 0], sizes = [8, 512], strides = [1, 1]} : vector<64x512xbf16> to vector<8x512xbf16>
    %c1_121 = arith.constant 1 : index
    %c8_122 = arith.constant 8 : index
    %c0_123 = arith.constant 0 : index
    %145 = vector.load %arg14[%c1_121, %c8_122, %c0_123] : memref<2x40x512xbf16, #tpu.memory_space<vmem>>, vector<1x8x512xbf16>
    %146 = vector.shape_cast %145 : vector<1x8x512xbf16> to vector<8x512xbf16>
    %147 = vector.shape_cast %144 : vector<8x512xbf16> to vector<1x8x512xbf16>
    tpu.vector_store %arg14[%c1_121, %c8_122, %c0_123], %147 {strides = array<i32>} : memref<2x40x512xbf16, #tpu.memory_space<vmem>>, vector<1x8x512xbf16>,
    %148 = vector.extract_strided_slice %128 {offsets = [24, 0], sizes = [8, 512], strides = [1, 1]} : vector<64x512xbf16> to vector<8x512xbf16>
    %c0_124 = arith.constant 0 : index
    %c16_125 = arith.constant 16 : index
    %c0_126 = arith.constant 0 : index
    %149 = vector.load %arg14[%c0_124, %c16_125, %c0_126] : memref<2x40x512xbf16, #tpu.memory_space<vmem>>, vector<1x8x512xbf16>
    %150 = vector.shape_cast %149 : vector<1x8x512xbf16> to vector<8x512xbf16>
    %151 = vector.shape_cast %148 : vector<8x512xbf16> to vector<1x8x512xbf16>
    tpu.vector_store %arg14[%c0_124, %c16_125, %c0_126], %151 {strides = array<i32>} : memref<2x40x512xbf16, #tpu.memory_space<vmem>>, vector<1x8x512xbf16>,
    %152 = vector.extract_strided_slice %128 {offsets = [32, 0], sizes = [8, 512], strides = [1, 1]} : vector<64x512xbf16> to vector<8x512xbf16>
    %c1_127 = arith.constant 1 : index
    %c16_128 = arith.constant 16 : index
    %c0_129 = arith.constant 0 : index
    %153 = vector.load %arg14[%c1_127, %c16_128, %c0_129] : memref<2x40x512xbf16, #tpu.memory_space<vmem>>, vector<1x8x512xbf16>
    %154 = vector.shape_cast %153 : vector<1x8x512xbf16> to vector<8x512xbf16>
    %155 = vector.shape_cast %152 : vector<8x512xbf16> to vector<1x8x512xbf16>
    tpu.vector_store %arg14[%c1_127, %c16_128, %c0_129], %155 {strides = array<i32>} : memref<2x40x512xbf16, #tpu.memory_space<vmem>>, vector<1x8x512xbf16>,
    %156 = vector.extract_strided_slice %128 {offsets = [40, 0], sizes = [8, 512], strides = [1, 1]} : vector<64x512xbf16> to vector<8x512xbf16>
    %c0_130 = arith.constant 0 : index
    %c24_131 = arith.constant 24 : index
    %c0_132 = arith.constant 0 : index
    %157 = vector.load %arg14[%c0_130, %c24_131, %c0_132] : memref<2x40x512xbf16, #tpu.memory_space<vmem>>, vector<1x8x512xbf16>
    %158 = vector.shape_cast %157 : vector<1x8x512xbf16> to vector<8x512xbf16>
    %159 = vector.shape_cast %156 : vector<8x512xbf16> to vector<1x8x512xbf16>
    tpu.vector_store %arg14[%c0_130, %c24_131, %c0_132], %159 {strides = array<i32>} : memref<2x40x512xbf16, #tpu.memory_space<vmem>>, vector<1x8x512xbf16>,
    %160 = vector.extract_strided_slice %128 {offsets = [48, 0], sizes = [8, 512], strides = [1, 1]} : vector<64x512xbf16> to vector<8x512xbf16>
    %c1_133 = arith.constant 1 : index
    %c24_134 = arith.constant 24 : index
    %c0_135 = arith.constant 0 : index
    %161 = vector.load %arg14[%c1_133, %c24_134, %c0_135] : memref<2x40x512xbf16, #tpu.memory_space<vmem>>, vector<1x8x512xbf16>
    %162 = vector.shape_cast %161 : vector<1x8x512xbf16> to vector<8x512xbf16>
    %163 = vector.shape_cast %160 : vector<8x512xbf16> to vector<1x8x512xbf16>
    tpu.vector_store %arg14[%c1_133, %c24_134, %c0_135], %163 {strides = array<i32>} : memref<2x40x512xbf16, #tpu.memory_space<vmem>>, vector<1x8x512xbf16>,
    %164 = vector.extract_strided_slice %128 {offsets = [56, 0], sizes = [8, 512], strides = [1, 1]} : vector<64x512xbf16> to vector<8x512xbf16>
    %c0_136 = arith.constant 0 : index
    %c32_137 = arith.constant 32 : index
    %c0_138 = arith.constant 0 : index
    %165 = vector.load %arg14[%c0_136, %c32_137, %c0_138] : memref<2x40x512xbf16, #tpu.memory_space<vmem>>, vector<1x8x512xbf16>
    %166 = vector.shape_cast %165 : vector<1x8x512xbf16> to vector<8x512xbf16>
    %167 = vector.shape_cast %164 : vector<8x512xbf16> to vector<1x8x512xbf16>
    tpu.vector_store %arg14[%c0_136, %c32_137, %c0_138], %167 {strides = array<i32>} : memref<2x40x512xbf16, #tpu.memory_space<vmem>>, vector<1x8x512xbf16>,
    %c0_139 = arith.constant 0 : index
    %c0_140 = arith.constant 0 : index
    %c0_141 = arith.constant 0 : index
    %168 = vector.load %arg14[%c0_139, %c0_140, %c0_141] : memref<2x40x512xbf16, #tpu.memory_space<vmem>>, vector<1x32x512xbf16>
    %169 = vector.shape_cast %168 : vector<1x32x512xbf16> to vector<32x512xbf16>
    %c0_142 = arith.constant 0 : index
    %c0_143 = arith.constant 0 : index
    %c0_144 = arith.constant 0 : index
    %170 = vector.load %arg6[%c0_142, %c0_143, %c0_144] : memref<4x512x256xbf16, #tpu.memory_space<vmem>>, vector<1x512x256xbf16>
    %171 = vector.shape_cast %170 : vector<1x512x256xbf16> to vector<512x256xbf16>
    %cst_145 = arith.constant dense<0.000000e+00> : vector<32x256xf32>
    %172 = tpu.matmul %169, %171, %cst_145 {dimension_numbers = #tpu.dot_dimension_numbers<[1], [0], [0], [1], [0, 0, 1, 1], [], []>} : vector<32x512xbf16>, vector<512x256xbf16>, vector<32x256xf32> -> vector<32x256xf32>
    %c1_146 = arith.constant 1 : index
    %c0_147 = arith.constant 0 : index
    %c0_148 = arith.constant 0 : index
    %173 = vector.load %arg14[%c1_146, %c0_147, %c0_148] : memref<2x40x512xbf16, #tpu.memory_space<vmem>>, vector<1x32x512xbf16>
    %174 = vector.shape_cast %173 : vector<1x32x512xbf16> to vector<32x512xbf16>
    %c1_149 = arith.constant 1 : index
    %c0_150 = arith.constant 0 : index
    %c0_151 = arith.constant 0 : index
    %175 = vector.load %arg6[%c1_149, %c0_150, %c0_151] : memref<4x512x256xbf16, #tpu.memory_space<vmem>>, vector<1x512x256xbf16>
    %176 = vector.shape_cast %175 : vector<1x512x256xbf16> to vector<512x256xbf16>
    %cst_152 = arith.constant dense<0.000000e+00> : vector<32x256xf32>
    %177 = tpu.matmul %174, %176, %cst_152 {dimension_numbers = #tpu.dot_dimension_numbers<[1], [0], [0], [1], [0, 0, 1, 1], [], []>} : vector<32x512xbf16>, vector<512x256xbf16>, vector<32x256xf32> -> vector<32x256xf32>
    %178 = arith.addf %172, %177 : vector<32x256xf32>
    %c0_153 = arith.constant 0 : index
    %c8_154 = arith.constant 8 : index
    %c0_155 = arith.constant 0 : index
    %179 = vector.load %arg14[%c0_153, %c8_154, %c0_155] : memref<2x40x512xbf16, #tpu.memory_space<vmem>>, vector<1x32x512xbf16>
    %180 = vector.shape_cast %179 : vector<1x32x512xbf16> to vector<32x512xbf16>
    %c2_156 = arith.constant 2 : index
    %c0_157 = arith.constant 0 : index
    %c0_158 = arith.constant 0 : index
    %181 = vector.load %arg6[%c2_156, %c0_157, %c0_158] : memref<4x512x256xbf16, #tpu.memory_space<vmem>>, vector<1x512x256xbf16>
    %182 = vector.shape_cast %181 : vector<1x512x256xbf16> to vector<512x256xbf16>
    %cst_159 = arith.constant dense<0.000000e+00> : vector<32x256xf32>
    %183 = tpu.matmul %180, %182, %cst_159 {dimension_numbers = #tpu.dot_dimension_numbers<[1], [0], [0], [1], [0, 0, 1, 1], [], []>} : vector<32x512xbf16>, vector<512x256xbf16>, vector<32x256xf32> -> vector<32x256xf32>
    %184 = arith.addf %178, %183 : vector<32x256xf32>
    %c1_160 = arith.constant 1 : index
    %c8_161 = arith.constant 8 : index
    %c0_162 = arith.constant 0 : index
    %185 = vector.load %arg14[%c1_160, %c8_161, %c0_162] : memref<2x40x512xbf16, #tpu.memory_space<vmem>>, vector<1x32x512xbf16>
    %186 = vector.shape_cast %185 : vector<1x32x512xbf16> to vector<32x512xbf16>
    %c3_163 = arith.constant 3 : index
    %c0_164 = arith.constant 0 : index
    %c0_165 = arith.constant 0 : index
    %187 = vector.load %arg6[%c3_163, %c0_164, %c0_165] : memref<4x512x256xbf16, #tpu.memory_space<vmem>>, vector<1x512x256xbf16>
    %188 = vector.shape_cast %187 : vector<1x512x256xbf16> to vector<512x256xbf16>
    %cst_166 = arith.constant dense<0.000000e+00> : vector<32x256xf32>
    %189 = tpu.matmul %186, %188, %cst_166 {dimension_numbers = #tpu.dot_dimension_numbers<[1], [0], [0], [1], [0, 0, 1, 1], [], []>} : vector<32x512xbf16>, vector<512x256xbf16>, vector<32x256xf32> -> vector<32x256xf32>
    %190 = arith.addf %184, %189 : vector<32x256xf32>
    %c0_167 = arith.constant 0 : index
    %c0_168 = arith.constant 0 : index
    %191 = vector.load %arg7[%c0_167, %c0_168] : memref<1x256xf32, #tpu.memory_space<vmem>>, vector<1x256xf32>
    %192 = vector.broadcast %191 : vector<1x256xf32> to vector<32x256xf32>
    %193 = arith.addf %190, %192 : vector<32x256xf32>
    %cst_169 = arith.constant 0.000000e+00 : f32
    %194 = vector.broadcast %cst_169 : f32 to vector<32x256xf32>
    %195 = arith.maximumf %193, %194 : vector<32x256xf32>
    %196 = arith.truncf %195 : vector<32x256xf32> to vector<32x256xbf16>
    %197 = vector.extract_strided_slice %196 {offsets = [0, 0], sizes = [8, 256], strides = [1, 1]} : vector<32x256xbf16> to vector<8x256xbf16>
    %c0_170 = arith.constant 0 : index
    %c0_171 = arith.constant 0 : index
    %c0_172 = arith.constant 0 : index
    %198 = vector.load %arg8[%c0_170, %c0_171, %c0_172] : memref<4x256x256xbf16, #tpu.memory_space<vmem>>, vector<1x256x256xbf16>
    %199 = vector.shape_cast %198 : vector<1x256x256xbf16> to vector<256x256xbf16>
    %cst_173 = arith.constant dense<0.000000e+00> : vector<8x256xf32>
    %200 = tpu.matmul %197, %199, %cst_173 {dimension_numbers = #tpu.dot_dimension_numbers<[1], [0], [0], [1], [0, 0, 1, 1], [], []>} : vector<8x256xbf16>, vector<256x256xbf16>, vector<8x256xf32> -> vector<8x256xf32>
    %201 = vector.extract_strided_slice %196 {offsets = [8, 0], sizes = [8, 256], strides = [1, 1]} : vector<32x256xbf16> to vector<8x256xbf16>
    %c1_174 = arith.constant 1 : index
    %c0_175 = arith.constant 0 : index
    %c0_176 = arith.constant 0 : index
    %202 = vector.load %arg8[%c1_174, %c0_175, %c0_176] : memref<4x256x256xbf16, #tpu.memory_space<vmem>>, vector<1x256x256xbf16>
    %203 = vector.shape_cast %202 : vector<1x256x256xbf16> to vector<256x256xbf16>
    %cst_177 = arith.constant dense<0.000000e+00> : vector<8x256xf32>
    %204 = tpu.matmul %201, %203, %cst_177 {dimension_numbers = #tpu.dot_dimension_numbers<[1], [0], [0], [1], [0, 0, 1, 1], [], []>} : vector<8x256xbf16>, vector<256x256xbf16>, vector<8x256xf32> -> vector<8x256xf32>
    %205 = arith.addf %200, %204 : vector<8x256xf32>
    %206 = vector.extract_strided_slice %196 {offsets = [16, 0], sizes = [8, 256], strides = [1, 1]} : vector<32x256xbf16> to vector<8x256xbf16>
    %c2_178 = arith.constant 2 : index
    %c0_179 = arith.constant 0 : index
    %c0_180 = arith.constant 0 : index
    %207 = vector.load %arg8[%c2_178, %c0_179, %c0_180] : memref<4x256x256xbf16, #tpu.memory_space<vmem>>, vector<1x256x256xbf16>
    %208 = vector.shape_cast %207 : vector<1x256x256xbf16> to vector<256x256xbf16>
    %cst_181 = arith.constant dense<0.000000e+00> : vector<8x256xf32>
    %209 = tpu.matmul %206, %208, %cst_181 {dimension_numbers = #tpu.dot_dimension_numbers<[1], [0], [0], [1], [0, 0, 1, 1], [], []>} : vector<8x256xbf16>, vector<256x256xbf16>, vector<8x256xf32> -> vector<8x256xf32>
    %210 = arith.addf %205, %209 : vector<8x256xf32>
    %211 = vector.extract_strided_slice %196 {offsets = [24, 0], sizes = [8, 256], strides = [1, 1]} : vector<32x256xbf16> to vector<8x256xbf16>
    %c3_182 = arith.constant 3 : index
    %c0_183 = arith.constant 0 : index
    %c0_184 = arith.constant 0 : index
    %212 = vector.load %arg8[%c3_182, %c0_183, %c0_184] : memref<4x256x256xbf16, #tpu.memory_space<vmem>>, vector<1x256x256xbf16>
    %213 = vector.shape_cast %212 : vector<1x256x256xbf16> to vector<256x256xbf16>
    %cst_185 = arith.constant dense<0.000000e+00> : vector<8x256xf32>
    %214 = tpu.matmul %211, %213, %cst_185 {dimension_numbers = #tpu.dot_dimension_numbers<[1], [0], [0], [1], [0, 0, 1, 1], [], []>} : vector<8x256xbf16>, vector<256x256xbf16>, vector<8x256xf32> -> vector<8x256xf32>
    %215 = arith.addf %210, %214 : vector<8x256xf32>
    %c0_186 = arith.constant 0 : index
    %c0_187 = arith.constant 0 : index
    %216 = vector.load %arg9[%c0_186, %c0_187] : memref<1x256xf32, #tpu.memory_space<vmem>>, vector<1x256xf32>
    %217 = vector.broadcast %216 : vector<1x256xf32> to vector<8x256xf32>
    %218 = arith.addf %215, %217 : vector<8x256xf32>
    %cst_188 = arith.constant 0.000000e+00 : f32
    %219 = vector.broadcast %cst_188 : f32 to vector<8x256xf32>
    %220 = arith.maximumf %218, %219 : vector<8x256xf32>
    %221 = arith.truncf %220 : vector<8x256xf32> to vector<8x256xbf16>
    %c0_189 = arith.constant 0 : index
    %c0_190 = arith.constant 0 : index
    %222 = vector.load %arg10[%c0_189, %c0_190] : memref<256x128xbf16, #tpu.memory_space<vmem>>, vector<256x128xbf16>
    %cst_191 = arith.constant dense<0.000000e+00> : vector<8x128xf32>
    %223 = tpu.matmul %221, %222, %cst_191 {dimension_numbers = #tpu.dot_dimension_numbers<[1], [0], [0], [1], [0, 0, 1, 1], [], []>} : vector<8x256xbf16>, vector<256x128xbf16>, vector<8x128xf32> -> vector<8x128xf32>
    %c0_192 = arith.constant 0 : index
    %c0_193 = arith.constant 0 : index
    %224 = vector.load %arg11[%c0_192, %c0_193] : memref<1x128xf32, #tpu.memory_space<vmem>>, vector<1x128xf32>
    %225 = vector.broadcast %224 : vector<1x128xf32> to vector<8x128xf32>
    %226 = arith.addf %223, %225 : vector<8x128xf32>
    %227 = tpu.iota {dimensions = array<i32: 1>} : vector<8x128xi32>
    %c10_i32 = arith.constant 10 : i32
    %228 = vector.broadcast %c10_i32 : i32 to vector<8x128xi32>
    %229 = arith.cmpi slt, %227, %228 : vector<8x128xi32>
    %cst_194 = arith.constant -1.000000e+30 : f32
    %230 = vector.broadcast %cst_194 : f32 to vector<8x128xf32>
    %231 = arith.select %229, %226, %230 : vector<8x128xi1>, vector<8x128xf32>
    %cst_195 = arith.constant dense<0xFF800000> : vector<8xf32>
    %232 = vector.multi_reduction <maximumf>, %231, %cst_195 [1] : vector<8x128xf32> to vector<8xf32>
    %233 = vector.shape_cast %232 : vector<8xf32> to vector<8x1xf32>
    %234 = vector.broadcast %233 : vector<8x1xf32> to vector<8x128xf32>
    %235 = arith.subf %231, %234 : vector<8x128xf32>
    %236 = math.exp %235 : vector<8x128xf32>
    %cst_196 = arith.constant dense<0.000000e+00> : vector<8xf32>
    %237 = vector.multi_reduction <add>, %236, %cst_196 [1] : vector<8x128xf32> to vector<8xf32>
    %238 = vector.shape_cast %237 : vector<8xf32> to vector<8x1xf32>
    %239 = math.log %238 : vector<8x1xf32>
    %240 = vector.broadcast %239 : vector<8x1xf32> to vector<8x128xf32>
    %241 = arith.subf %235, %240 : vector<8x128xf32>
    %c0_197 = arith.constant 0 : index
    %c0_198 = arith.constant 0 : index
    %242 = vector.load %arg12[%c0_197, %c0_198] : memref<8x128xf32, #tpu.memory_space<vmem>>, vector<8x128xf32>
    tpu.vector_store %arg12[%c0_197, %c0_198], %241 {strides = array<i32>} : memref<8x128xf32, #tpu.memory_space<vmem>>, vector<8x128xf32>,
    return
  }
  func.func @transform_0(%arg0: i32) -> (i32, i32, i32, i32) {
    %c0_i32 = arith.constant 0 : i32
    %c0_i32_0 = arith.constant 0 : i32
    %c0_i32_1 = arith.constant 0 : i32
    %c0_i32_2 = arith.constant 0 : i32
    return %arg0, %c0_i32, %c0_i32_0, %c0_i32_1 : i32, i32, i32, i32
  }
  func.func @transform_1(%arg0: i32) -> (i32, i32, i32) {
    %c0_i32 = arith.constant 0 : i32
    %c0_i32_0 = arith.constant 0 : i32
    %c0_i32_1 = arith.constant 0 : i32
    %c0_i32_2 = arith.constant 0 : i32
    return %c0_i32, %c0_i32_0, %c0_i32_1 : i32, i32, i32
  }
  func.func @transform_2(%arg0: i32) -> (i32, i32) {
    %c0_i32 = arith.constant 0 : i32
    %c0_i32_0 = arith.constant 0 : i32
    %c0_i32_1 = arith.constant 0 : i32
    return %c0_i32, %c0_i32_0 : i32, i32
  }
  func.func @transform_3(%arg0: i32) -> (i32, i32, i32) {
    %c0_i32 = arith.constant 0 : i32
    %c0_i32_0 = arith.constant 0 : i32
    %c0_i32_1 = arith.constant 0 : i32
    %c0_i32_2 = arith.constant 0 : i32
    return %c0_i32, %c0_i32_0, %c0_i32_1 : i32, i32, i32
  }
  func.func @transform_4(%arg0: i32) -> (i32, i32) {
    %c0_i32 = arith.constant 0 : i32
    %c0_i32_0 = arith.constant 0 : i32
    %c0_i32_1 = arith.constant 0 : i32
    return %c0_i32, %c0_i32_0 : i32, i32
  }
  func.func @transform_5(%arg0: i32) -> (i32, i32, i32) {
    %c0_i32 = arith.constant 0 : i32
    %c0_i32_0 = arith.constant 0 : i32
    %c0_i32_1 = arith.constant 0 : i32
    %c0_i32_2 = arith.constant 0 : i32
    return %c0_i32, %c0_i32_0, %c0_i32_1 : i32, i32, i32
  }
  func.func @transform_6(%arg0: i32) -> (i32, i32) {
    %c0_i32 = arith.constant 0 : i32
    %c0_i32_0 = arith.constant 0 : i32
    %c0_i32_1 = arith.constant 0 : i32
    return %c0_i32, %c0_i32_0 : i32, i32
  }
  func.func @transform_7(%arg0: i32) -> (i32, i32, i32) {
    %c0_i32 = arith.constant 0 : i32
    %c0_i32_0 = arith.constant 0 : i32
    %c0_i32_1 = arith.constant 0 : i32
    %c0_i32_2 = arith.constant 0 : i32
    return %c0_i32, %c0_i32_0, %c0_i32_1 : i32, i32, i32
  }
  func.func @transform_8(%arg0: i32) -> (i32, i32) {
    %c0_i32 = arith.constant 0 : i32
    %c0_i32_0 = arith.constant 0 : i32
    %c0_i32_1 = arith.constant 0 : i32
    return %c0_i32, %c0_i32_0 : i32, i32
  }
  func.func @transform_9(%arg0: i32) -> (i32, i32) {
    %c0_i32 = arith.constant 0 : i32
    %c0_i32_0 = arith.constant 0 : i32
    %c0_i32_1 = arith.constant 0 : i32
    return %c0_i32, %c0_i32_0 : i32, i32
  }
  func.func @transform_10(%arg0: i32) -> (i32, i32) {
    %c0_i32 = arith.constant 0 : i32
    %c0_i32_0 = arith.constant 0 : i32
    %c0_i32_1 = arith.constant 0 : i32
    return %c0_i32, %c0_i32_0 : i32, i32
  }
  func.func @transform_11(%arg0: i32) -> (i32, i32) {
    %c0_i32 = arith.constant 0 : i32
    %c0_i32_0 = arith.constant 0 : i32
    return %arg0, %c0_i32 : i32, i32
  }
}

</mosaic_0001>

<bundles_post_ra>
// kernel: net_forward.1
= control target key start
LH: loop header
LB: loop body
LE: loop exit
PB: predicated region body
PF: predicated region fallthrough
CT: control target
= control target key end

     0   :  { %16 = vsyncpa [#allocation5], 0  ;;  %s15037_s0 = inlined_call_operand.vmem [shape: bf16[1,2,136,32], index: 0, kind: input, shape index: {}]   ;;  %s15038_s1 = inlined_call_operand.hbm [shape: bf16[4,32,512], index: 1, kind: input, shape index: {}]   ;;  %s15039_s2 = inlined_call_operand.hbm [shape: f32[1,512], index: 2, kind: input, shape index: {}]   ;;  %s15040_s3 = inlined_call_operand.hbm [shape: bf16[4,512,512], index: 3, kind: input, shape index: {}]   ;;  %s15041_s4 = inlined_call_operand.hbm [shape: f32[1,512], index: 4, kind: input, shape index: {}]   ;;  %s15042_s5 = inlined_call_operand.hbm [shape: bf16[4,512,256], index: 5, kind: input, shape index: {}]   ;;  %s15043_s6 = inlined_call_operand.hbm [shape: f32[1,256], index: 6, kind: input, shape index: {}]   ;;  %s15044_s7 = inlined_call_operand.hbm [shape: bf16[4,256,256], index: 7, kind: input, shape index: {}]   ;;  %s15045_s8 = inlined_call_operand.hbm [shape: f32[1,256], index: 8, kind: input, shape index: {}]   ;;  %s15046_s9 = inlined_call_operand.hbm [shape: bf16[256,128], index: 9, kind: input, shape index: {}]   ;;  %s15047_s10 = inlined_call_operand.hbm [shape: f32[1,128], index: 10, kind: input, shape index: {}]   ;;  %s15048_s11 = inlined_call_operand.vmem [shape: f32[8,128], index: 11, kind: output, shape index: {}]  }
   0x1   :  { %17 = vsyncpa [#allocation7], 0 }
   0x2   :  { %18 = vsyncpa [#allocation10], 0 }
   0x3   :  { %19 = vsyncpa [#allocation13], 0 }
   0x4   :  { %20 = vsyncpa [#allocation16], 0 }
   0x5   :  { %21 = vsyncpa [#allocation19], 0  ;;  %s13913_s17 = smov [#allocation6]   ;;  %s13914_s19 = smov [#allocation9]  }
   0x6   :  { %s42_s18 = sshll.u32 %s13913_s17, 4  ;;  %s64_s20 = sshll.u32 %s13914_s19, 4  ;;  %s43_s18 = int_to_ptr.vmem [resolvable:$true] %s42_s18  ;;  %s65_s20 = int_to_ptr.vmem [resolvable:$true] %s64_s20 }
   0x7   :  { %s13681_s23 = scalar_lea.hbm %s15039_s2, 64 }
   0x8   :  { %p13682_p0 = scmp.ne.s32.totalorder %s15039_s2, %s13681_s23  ;;  %p13685_p1 = scmp.lt.u32.totalorder %s13681_s23, %s15039_s2 }
   0xa   :  { %p13687_p2 = pnand %p13685_p1, %p13682_p0 }
   0xc   :  { %13690 = shalt.err (!%p13687_p2)
}
   0xd   :  { %s13691_s28 = scalar_lea.vmem %s43_s18, 64  ;;  %p13696_p4 = scmp.lt.s32.totalorder %s43_s18, %s43_s18 }
   0xe   :  { %p13692_p3 = scmp.ne.s32.totalorder %s43_s18, %s13691_s28  ;;  %p13697_p5 = scmp.lt.s32.totalorder %s13691_s28, %s13691_s28 }
  0x10   :  { %p13698_p6 = por %p13697_p5, %p13696_p4 }
  0x12   :  { %p13699_p7 = pnand %p13698_p6, %p13692_p3 }
  0x14   :  { %13702 = shalt.err (!%p13699_p7)
}
  0x15   :  { %45 = dma.hbm_to_vmem [thread:$0]  %s15039_s2, 64, %s43_s18, [#allocation7]  }
  0x16   :  { %s13703_s14 = scalar_lea.hbm %s15041_s4, 64 }
  0x17   :  { %p13704_p8 = scmp.ne.s32.totalorder %s15041_s4, %s13703_s14  ;;  %p13707_p9 = scmp.lt.u32.totalorder %s13703_s14, %s15041_s4 }
  0x19   :  { %p13709_p10 = pnand %p13707_p9, %p13704_p8 }
  0x1b   :  { %13712 = shalt.err (!%p13709_p10)
}
  0x1c   :  { %s13713_s21 = scalar_lea.vmem %s65_s20, 64  ;;  %p13718_p12 = scmp.lt.s32.totalorder %s65_s20, %s65_s20 }
  0x1d   :  { %p13714_p11 = scmp.ne.s32.totalorder %s65_s20, %s13713_s21  ;;  %p13719_p13 = scmp.lt.s32.totalorder %s13713_s21, %s13713_s21 }
  0x1f   :  { %p13720_p0 = por %p13719_p13, %p13718_p12 }
  0x21   :  { %p13721_p1 = pnand %p13720_p0, %p13714_p11 }
  0x23   :  { %13724 = shalt.err (!%p13721_p1)
}
  0x24   :  { %67 = dma.hbm_to_vmem [thread:$0]  %s15041_s4, 64, %s65_s20, [#allocation10]  }
  0x25   :  { %s13915_s22 = smov [#allocation12]   ;;  %s13916_s24 = smov [#allocation15]  }
  0x26   :  { %s86_s23 = sshll.u32 %s13915_s22, 4  ;;  %s108_s25 = sshll.u32 %s13916_s24, 4  ;;  %s87_s23 = int_to_ptr.vmem [resolvable:$true] %s86_s23  ;;  %s109_s25 = int_to_ptr.vmem [resolvable:$true] %s108_s25 }
  0x27   :  { %s13725_s28 = scalar_lea.hbm %s15043_s6, 32 }
  0x28   :  { %p13726_p2 = scmp.ne.s32.totalorder %s15043_s6, %s13725_s28  ;;  %p13729_p3 = scmp.lt.u32.totalorder %s13725_s28, %s15043_s6 }
  0x2a   :  { %p13731_p4 = pnand %p13729_p3, %p13726_p2 }
  0x2c   :  { %13734 = shalt.err (!%p13731_p4)
}
  0x2d   :  { %s13735_s4 = scalar_lea.vmem %s87_s23, 32  ;;  %p13740_p6 = scmp.lt.s32.totalorder %s87_s23, %s87_s23 }
  0x2e   :  { %p13736_p5 = scmp.ne.s32.totalorder %s87_s23, %s13735_s4  ;;  %p13741_p7 = scmp.lt.s32.totalorder %s13735_s4, %s13735_s4 }
  0x30   :  { %p13742_p8 = por %p13741_p7, %p13740_p6 }
  0x32   :  { %p13743_p9 = pnand %p13742_p8, %p13736_p5 }
  0x34   :  { %13746 = shalt.err (!%p13743_p9)
}
  0x35   :  { %89 = dma.hbm_to_vmem [thread:$0]  %s15043_s6, 32, %s87_s23, [#allocation13]  }
  0x36   :  { %s13747_s17 = scalar_lea.hbm %s15045_s8, 32 }
  0x37   :  { %p13748_p10 = scmp.ne.s32.totalorder %s15045_s8, %s13747_s17  ;;  %p13751_p11 = scmp.lt.u32.totalorder %s13747_s17, %s15045_s8 }
  0x39   :  { %p13753_p12 = pnand %p13751_p11, %p13748_p10 }
  0x3b   :  { %13756 = shalt.err (!%p13753_p12)
}
  0x3c   :  { %s13757_s22 = scalar_lea.vmem %s109_s25, 32  ;;  %p13762_p0 = scmp.lt.s32.totalorder %s109_s25, %s109_s25 }
  0x3d   :  { %p13758_p13 = scmp.ne.s32.totalorder %s109_s25, %s13757_s22  ;;  %p13763_p1 = scmp.lt.s32.totalorder %s13757_s22, %s13757_s22 }
  0x3f   :  { %p13764_p2 = por %p13763_p1, %p13762_p0 }
  0x41   :  { %p13765_p3 = pnand %p13764_p2, %p13758_p13 }
  0x43   :  { %13768 = shalt.err (!%p13765_p3)
}
  0x44   :  { %111 = dma.hbm_to_vmem [thread:$0]  %s15045_s8, 32, %s109_s25, [#allocation16]  }
  0x45   :  { %s13917_s24 = smov [#allocation4]   ;;  %s13769_s29 = scalar_lea.hbm %s15038_s1, 4096 }
  0x46   :  { %s29_s26 = sshll.u32 %s13917_s24, 4  ;;  %p13770_p4 = scmp.ne.s32.totalorder %s15038_s1, %s13769_s29  ;;  %s30_s26 = int_to_ptr.vmem [resolvable:$true] %s29_s26 }
  0x47   :  { %p13773_p5 = scmp.lt.u32.totalorder %s13769_s29, %s15038_s1 }
  0x49   :  { %p13775_p6 = pnand %p13773_p5, %p13770_p4 }
  0x4b   :  { %13778 = shalt.err (!%p13775_p6)
}
  0x4c   :  { %s13779_s20 = scalar_lea.vmem %s30_s26, 4096  ;;  %p13784_p8 = scmp.lt.s32.totalorder %s30_s26, %s30_s26 }
  0x4d   :  { %p13780_p7 = scmp.ne.s32.totalorder %s30_s26, %s13779_s20  ;;  %p13785_p9 = scmp.lt.s32.totalorder %s13779_s20, %s13779_s20 }
  0x4f   :  { %p13786_p10 = por %p13785_p9, %p13784_p8 }
  0x51   :  { %p13787_p11 = pnand %p13786_p10, %p13780_p7 }
  0x53   :  { %13790 = shalt.err (!%p13787_p11)
}
  0x54   :  { %s13918_s8 = smov 256   ;;  %s13919_s25 = smov 16  }
  0x55   :  { %35 = dma.hbm_to_vmem [thread:$0]  %s15038_s1, 4096, %s30_s26, [#allocation5], %s13918_s8, %s13918_s8, %s13919_s25  }
  0x56   :  { %s13920_s16 = smov [#allocation8]   ;;  %s13921_s19 = smov [#allocation11]  }
  0x57   :  { %s51_s17 = sshll.u32 %s13920_s16, 4  ;;  %s73_s21 = sshll.u32 %s13921_s19, 4  ;;  %s52_s17 = int_to_ptr.vmem [resolvable:$true] %s51_s17  ;;  %s74_s21 = int_to_ptr.vmem [resolvable:$true] %s73_s21 }
  0x58   :  { %s13791_s22 = scalar_lea.hbm %s15040_s3, 65536 }
  0x59   :  { %p13792_p12 = scmp.ne.s32.totalorder %s15040_s3, %s13791_s22  ;;  %p13795_p13 = scmp.lt.u32.totalorder %s13791_s22, %s15040_s3 }
  0x5b   :  { %p13797_p0 = pnand %p13795_p13, %p13792_p12 }
  0x5d   :  { %13800 = shalt.err (!%p13797_p0)
}
  0x5e   :  { %s13801_s1 = scalar_lea.vmem %s52_s17, 65536  ;;  %p13806_p2 = scmp.lt.s32.totalorder %s52_s17, %s52_s17 }
  0x5f   :  { %p13802_p1 = scmp.ne.s32.totalorder %s52_s17, %s13801_s1  ;;  %p13807_p3 = scmp.lt.s32.totalorder %s13801_s1, %s13801_s1 }
  0x61   :  { %p13808_p4 = por %p13807_p3, %p13806_p2 }
  0x63   :  { %p13809_p5 = pnand %p13808_p4, %p13802_p1 }
  0x65   :  { %13812 = shalt.err (!%p13809_p5)
}
  0x66   :  { %57 = dma.hbm_to_vmem [thread:$0]  %s15040_s3, 65536, %s52_s17, [#allocation7], %s13918_s8, %s13918_s8, %s13919_s25  }
  0x67   :  { %s13813_s12 = scalar_lea.hbm %s15042_s5, 32768 }
  0x68   :  { %p13814_p6 = scmp.ne.s32.totalorder %s15042_s5, %s13813_s12  ;;  %p13817_p7 = scmp.lt.u32.totalorder %s13813_s12, %s15042_s5 }
  0x6a   :  { %p13819_p8 = pnand %p13817_p7, %p13814_p6 }
  0x6c   :  { %13822 = shalt.err (!%p13819_p8)
}
  0x6d   :  { %s13823_s15 = scalar_lea.vmem %s74_s21, 32768  ;;  %p13828_p10 = scmp.lt.s32.totalorder %s74_s21, %s74_s21 }
  0x6e   :  { %p13824_p9 = scmp.ne.s32.totalorder %s74_s21, %s13823_s15  ;;  %p13829_p11 = scmp.lt.s32.totalorder %s13823_s15, %s13823_s15 }
  0x70   :  { %p13830_p12 = por %p13829_p11, %p13828_p10 }
  0x72   :  { %p13831_p13 = pnand %p13830_p12, %p13824_p9 }
  0x74   :  { %13834 = shalt.err (!%p13831_p13)
}
  0x75   :  { %s13922_s3 = smov 128   ;;  %s13923_s8 = smov 8  }
  0x76   :  { %79 = dma.hbm_to_vmem [thread:$0]  %s15042_s5, 32768, %s74_s21, [#allocation10], %s13922_s3, %s13922_s3, %s13923_s8  }
  0x77   :  { %s13924_s17 = smov [#allocation14]   ;;  %s13925_s2 = smov [#allocation17]  }
  0x78   :  { %s95_s19 = sshll.u32 %s13924_s17, 4  ;;  %s117_s18 = sshll.u32 %s13925_s2, 4  ;;  %s96_s19 = int_to_ptr.vmem [resolvable:$true] %s95_s19  ;;  %s118_s18 = int_to_ptr.vmem [resolvable:$true] %s117_s18 }
  0x79   :  { %s13835_s23 = scalar_lea.hbm %s15044_s7, 16384 }
  0x7a   :  { %p13836_p0 = scmp.ne.s32.totalorder %s15044_s7, %s13835_s23  ;;  %p13839_p1 = scmp.lt.u32.totalorder %s13835_s23, %s15044_s7 }
  0x7c   :  { %p13841_p2 = pnand %p13839_p1, %p13836_p0 }
  0x7e   :  { %13844 = shalt.err (!%p13841_p2)
}
  0x7f   :  { %s13845_s5 = scalar_lea.vmem %s96_s19, 16384  ;;  %p13850_p4 = scmp.lt.s32.totalorder %s96_s19, %s96_s19 }
  0x80   :  { %p13846_p3 = scmp.ne.s32.totalorder %s96_s19, %s13845_s5  ;;  %p13851_p5 = scmp.lt.s32.totalorder %s13845_s5, %s13845_s5 }
  0x82   :  { %p13852_p6 = por %p13851_p5, %p13850_p4 }
  0x84   :  { %p13853_p7 = pnand %p13852_p6, %p13846_p3 }
  0x86   :  { %13856 = shalt.err (!%p13853_p7)
}
  0x87   :  { %101 = dma.hbm_to_vmem [thread:$0]  %s15044_s7, 16384, %s96_s19, [#allocation13], %s13922_s3, %s13922_s3, %s13923_s8  }
  0x88   :  { %s13857_s12 = scalar_lea.hbm %s15046_s9, 2048 }
  0x89   :  { %p13858_p8 = scmp.ne.s32.totalorder %s15046_s9, %s13857_s12  ;;  %p13861_p9 = scmp.lt.u32.totalorder %s13857_s12, %s15046_s9 }
  0x8b   :  { %p13863_p10 = pnand %p13861_p9, %p13858_p8 }
  0x8d   :  { %13866 = shalt.err (!%p13863_p10)
}
  0x8e   :  { %s13867_s15 = scalar_lea.vmem %s118_s18, 2048  ;;  %p13872_p12 = scmp.lt.s32.totalorder %s118_s18, %s118_s18 }
  0x8f   :  { %p13868_p11 = scmp.ne.s32.totalorder %s118_s18, %s13867_s15  ;;  %p13873_p13 = scmp.lt.s32.totalorder %s13867_s15, %s13867_s15 }
  0x91   :  { %p13874_p0 = por %p13873_p13, %p13872_p12 }
  0x93   :  { %p13875_p1 = pnand %p13874_p0, %p13868_p11 }
  0x95   :  { %13878 = shalt.err (!%p13875_p1)
}
  0x96   :  { %s13926_s7 = smov 64   ;;  %s13927_s3 = smov 4  }
  0x97   :  { %123 = dma.hbm_to_vmem [thread:$0]  %s15046_s9, 2048, %s118_s18, [#allocation16], %s13926_s7, %s13926_s7, %s13927_s3  }
  0x98   :  { %s13928_s16 = smov [#allocation18]   ;;  %s13879_s22 = scalar_lea.hbm %s15047_s10, 16 }
  0x99   :  { %s130_s17 = sshll.u32 %s13928_s16, 4  ;;  %p13880_p2 = scmp.ne.s32.totalorder %s15047_s10, %s13879_s22  ;;  %s131_s17 = int_to_ptr.vmem [resolvable:$true] %s130_s17 }
  0x9a   :  { %p13883_p3 = scmp.lt.u32.totalorder %s13879_s22, %s15047_s10 }
  0x9c   :  { %p13885_p4 = pnand %p13883_p3, %p13880_p2 }
  0x9e   :  { %13888 = shalt.err (!%p13885_p4)
}
  0x9f   :  { %s13889_s1 = scalar_lea.vmem %s131_s17, 16  ;;  %s13893_s9 = scalar_lea.vmem %s131_s17, 32 }
  0xa0   :  { %p13890_p5 = scmp.ne.s32.totalorder %s131_s17, %s13889_s1  ;;  %p13894_p6 = scmp.lt.s32.totalorder %s131_s17, %s131_s17 }
  0xa1   :  { %p13895_p7 = scmp.lt.s32.totalorder %s13893_s9, %s13889_s1 }
  0xa3   :  { %p13896_p8 = por %p13895_p7, %p13894_p6 }
  0xa5   :  { %p13897_p9 = pnand %p13896_p8, %p13890_p5 }
  0xa7   :  { %13900 = shalt.err (!%p13897_p9)
}
  0xa8   :  { %133 = dma.hbm_to_vmem [thread:$0]  %s15047_s10, 16, %s131_s17, [#allocation19]  }
  0xa9   :  { %13901 = dma.done.wait [#allocation5], 4096  }
  0xaa   :  { %13902 = vsyncadd [#allocation5], 4294963200 }
  0xab   :  { %13903 = dma.done.wait [#allocation7], 65600  }
  0xac   :  { %13904 = vsyncadd [#allocation7], 4294901696 }
  0xad   :  { %13905 = dma.done.wait [#allocation10], 32832  }
  0xae   :  { %13906 = vsyncadd [#allocation10], 4294934464 }
  0xaf   :  { %13907 = dma.done.wait [#allocation13], 16416  }
  0xb0   :  { %13908 = vsyncadd [#allocation13], 4294950880 }
  0xb1   :  { %13909 = dma.done.wait [#allocation16], 2080  }
  0xb2   :  { %13910 = vsyncadd [#allocation16], 4294965216 }
  0xb3   :  { %13911 = dma.done.wait [#allocation19], 16  }
  0xb4   :  { %13912 = vsyncadd [#allocation19], 4294967280  ;;  %v15052_v0 = vmov 0   ;;  %v12219_v1 = vld [vmem:[#allocation4 + $0x44] ss:$16 sps:$4 sm:$0xff]   ;;  %vm295_vm0 = vcmask 261120  }
  0xb5   :  { %352 = vmatprep.mubr.bf16.mxu1 %v15052_v0  ;;  %682 = vmatprep.mubr.bf16.mxu0 %v15052_v0  ;;  %v12221_v2 = vld [vmem:[#allocation4 + $0x4] ss:$16 sps:$4 sm:$0xff]   ;;  %v12223_v3 = vld [vmem:[#allocation4 + $0x40] ss:$16 sps:$4 sm:$0xff]   ;;  %v12232_v10 = vld [vmem:[#allocation4 + $0x48] ss:$16 sps:$4 sm:$0xff]  }
  0xb6   :  { %320 = vmatprep.subr.bf16.mxu1 %v12219_v1  ;;  %v14112_v4 = vld [vmem:[#allocation4] ss:$16 sps:$4 sm:$0xff]   ;;  %650 = vmatprep.subr.bf16.mxu0 %v12221_v2  ;;  %v12225_v5 = vld [vmem:[#allocation4 + $0x64] ss:$16 sps:$4 sm:$0xff]   ;;  %v12234_v11 = vld [vmem:[#allocation4 + $0x4c] ss:$16 sps:$4 sm:$0xff]  }
  0xb7   :  { %321 = vmatpush1.bf16.msra.mxu1 %v12223_v3  ;;  %651 = vmatpush1.bf16.msra.mxu0 %v14112_v4  ;;  %v14115_v6 = vld [vmem:[#allocation4 + $0x24] ss:$16 sps:$4 sm:$0xff]   ;;  %v12229_v7 = vld [vmem:[#allocation4 + $0x60] ss:$16 sps:$4 sm:$0xff]   ;;  %v12249_v19 = vld [vmem:[#allocation4 + $0x68] ss:$16 sps:$4 sm:$0xff]  }
  0xb8   :  { %322 = vmatprep.subr.bf16.mxu1 %v12225_v5  ;;  %v14117_v8 = vld [vmem:[#allocation4 + $0x20] ss:$16 sps:$4 sm:$0xff]   ;;  %652 = vmatprep.subr.bf16.mxu0 %v14115_v6  ;;  %v14123_v9 = vld [vmem:[%s15037_s0 + $0x44] sm:$0xff]   ;;  %v12251_v20 = vld [vmem:[#allocation4 + $0x6c] ss:$16 sps:$4 sm:$0xff]  }
  0xb9   :  { %v12235_v12 = vld [vmem:[%s15037_s0] sm:$0xff]   ;;  %v14137_v17 = vld [vmem:[%s15037_s0 + $0x4c] sm:$0xff]   ;;  %v12244_v21 = vld [vmem:[%s15037_s0 + $0x54] sm:$0xff]  }
  0xba   :  { %v12236_v13 = vld [vmem:[#allocation4 + $0x80] ss:$16 sps:$4 sm:$0xff]   ;;  %v12238_v14 = vld [vmem:[#allocation4 + $0x84] ss:$16 sps:$4 sm:$0xff]   ;;  %v12270_v38 = vld [vmem:[#allocation4 + $0xc] ss:$16 sps:$4 sm:$0xff]  }
  0xbb   :  { %323 = vmatpush1.bf16.msra.mxu1 %v12229_v7  ;;  %653 = vmatpush1.bf16.msra.mxu0 %v14117_v8  ;;  %v12242_v15 = vld [vmem:[#allocation4 + $0xa4] ss:$16 sps:$4 sm:$0xff]   ;;  %v12240_v16 = vld [vmem:[#allocation4 + $0xa0] ss:$16 sps:$4 sm:$0xff]   ;;  %v12266_v39 = vld [vmem:[%s15037_s0 + $0x48] sm:$0xff]  }
  0xbc   :  { %433 = vmatprep.subr.bf16.mxu1 %v12234_v11  ;;  %1005 = vmatprep.subr.bf16.mxu0 %v12238_v14  ;;  %v12243_v18 = vld [vmem:[%s15037_s0 + $0x4] sm:$0xff]   ;;  %v12245_v22 = vld [vmem:[%s15037_s0 + $0xc] sm:$0xff]   ;;  %v12246_v26 = vld [vmem:[%s15037_s0 + $0x5c] sm:$0xff]  }
  0xbd   :  { %v12260_v23 = vld [vmem:[#allocation4 + $0xc0] ss:$16 sps:$4 sm:$0xff]   ;;  %v12262_v24 = vld [vmem:[#allocation4 + $0xc4] ss:$16 sps:$4 sm:$0xff]   ;;  %v12273_v41 = vld [vmem:[%s15037_s0 + $0x58] sm:$0xff]  }
  0xbe   :  { %10391 = vmatmul.mubr.msk.bf16.vlgmr.msra.gmra.mrb[0].mxu1 %vm295_vm0, %v14123_v9  ;;  %10423 = vmatmul.mubr.msk.bf16.vlgmr.msra.gmra.mrb[0].mxu0 %vm295_vm0, %v12235_v12  ;;  %v12265_v25 = vld [vmem:[#allocation4 + $0xe4] ss:$16 sps:$4 sm:$0xff]   ;;  %v12263_v27 = vld [vmem:[#allocation4 + $0xe0] ss:$16 sps:$4 sm:$0xff]   ;;  %v12277_v43 = vld [vmem:[%s15037_s0 + $0x68] sm:$0xff]  }
  0xbf   :  { %434 = vmatpush1.bf16.msra.mxu1 %v12232_v10  ;;  %1006 = vmatpush1.bf16.msra.mxu0 %v12236_v13  ;;  %v12247_v28 = vld [vmem:[%s15037_s0 + $0x14] sm:$0xff]   ;;  %v12248_v29 = vld [vmem:[%s15037_s0 + $0x64] sm:$0xff]   ;;  %v12252_v30 = vld [vmem:[%s15037_s0 + $0x1c] sm:$0xff]  }
  0xc0   :  { %362 = vmatprep.mubr.bf16.mxu1 %v15052_v0  ;;  %1007 = vmatprep.subr.bf16.mxu0 %v12242_v15  ;;  %v12253_v31 = vld [vmem:[%s15037_s0 + $0x6c] sm:$0xff]   ;;  %v12254_v32 = vld [vmem:[%s15037_s0 + $0x24] sm:$0xff]   ;;  %v12255_v33 = vld [vmem:[%s15037_s0 + $0x74] sm:$0xff]  }
  0xc1   :  { %1037 = vmatprep.mubr.bf16.mxu0 %v15052_v0  ;;  %435 = vmatprep.subr.bf16.mxu1 %v12251_v20  ;;  %v12256_v34 = vld [vmem:[%s15037_s0 + $0x2c] sm:$0xff]   ;;  %v12257_v35 = vld [vmem:[%s15037_s0 + $0x7c] sm:$0xff]   ;;  %v12258_v36 = vld [vmem:[%s15037_s0 + $0x34] sm:$0xff]  }
  0xc2   :  { %v12259_v37 = vld [vmem:[%s15037_s0 + $0x3c] sm:$0xff]   ;;  %v12271_v40 = vld [vmem:[%s15037_s0 + $0x50] sm:$0xff]   ;;  %v14269_v46 = vld [vmem:[%s15037_s0 + $0x8] sm:$0xff]  }
  0xc3   :  { %1008 = vmatpush1.bf16.msra.mxu0 %v12240_v16  ;;  %436 = vmatpush1.bf16.msra.mxu1 %v12249_v19  ;;  %v12275_v42 = vld [vmem:[%s15037_s0 + $0x60] sm:$0xff]   ;;  %v12282_v44 = vld [vmem:[%s15037_s0 + $0x70] sm:$0xff]   ;;  %v12284_v45 = vld [vmem:[%s15037_s0 + $0x78] sm:$0xff]  }
  0xc4   :  { %11726 = vmatprep.subr.bf16.mxu1 %v12221_v2  ;;  %1424 = vmatprep.subr.bf16.mxu0 %v12262_v24  ;;  %v12268_v47 = vld [vmem:[#allocation4 + $0x8] ss:$16 sps:$4 sm:$0xff]   ;;  %v12280_v48 = vld [vmem:[#allocation4 + $0x2c] ss:$16 sps:$4 sm:$0xff]   ;;  %v12286_v49 = vld [vmem:[%s15037_s0 + $0x80] sm:$0xff]  }
  0xc5   :  { %v12278_v50 = vld [vmem:[#allocation4 + $0x28] ss:$16 sps:$4 sm:$0xff]   ;;  %v12289_v51 = vld [vmem:[#allocation4 + $0x8c] ss:$16 sps:$4 sm:$0xff]   ;;  %v14282_v52 = vld [vmem:[%s15037_s0 + $0x10] sm:$0xff]  }
  0xc6   :  { %10392 = vmatmul.mubr.msk.bf16.gmra.mrb[4].mxu1 %vm295_vm0, %v14137_v17  ;;  %v14291_v53 = vld [vmem:[%s15037_s0 + $0x18] sm:$0xff]   ;;  %v14299_v54 = vld [vmem:[%s15037_s0 + $0x20] sm:$0xff]   ;;  %v14307_v57 = vld [vmem:[%s15037_s0 + $0x28] sm:$0xff]  }
  0xc7   :  { %372 = vmatprep.mubr.bf16.mxu1 %v15052_v0  ;;  %v12299_v55 = vld [vmem:[#allocation8 + $0x400] ss:$16 sps:$4 sm:$0xff]   ;;  %v12301_v56 = vld [vmem:[#allocation8 + $0x404] ss:$16 sps:$4 sm:$0xff]   ;;  %v12292_v10 = vld [vmem:[#allocation4 + $0xac] ss:$16 sps:$4 sm:$0xff]  }
  0xc8   :  { %v12304_v58 = vld [vmem:[#allocation8 + $0x424] ss:$16 sps:$4 sm:$0xff]   ;;  %v12302_v59 = vld [vmem:[#allocation8 + $0x420] ss:$16 sps:$4 sm:$0xff]   ;;  %v12295_v14 = vld [vmem:[#allocation4 + $0xcc] ss:$16 sps:$4 sm:$0xff]  }
  0xc9   :  { %v14315_v60 = vld [vmem:[%s15037_s0 + $0x30] sm:$0xff]   ;;  %v12307_v61 = vld [vmem:[#allocation8 + $0x444] ss:$16 sps:$4 sm:$0xff]   ;;  %v13663_v11 = vld [vmem:[%s15037_s0] sm:$0xff]  }
  0xca   :  { %10455 = vmatmul.mubr.msk.bf16.vlgmr.msra.gmra.mrb[0].mxu0 %vm295_vm0, %v12243_v18  ;;  %v12305_v62 = vld [vmem:[#allocation8 + $0x440] ss:$16 sps:$4 sm:$0xff]   ;;  %v12310_v63 = vld [vmem:[#allocation8 + $0x464] ss:$16 sps:$4 sm:$0xff]  }
  0xcb   :  { %1047 = vmatprep.mubr.bf16.mxu0 %v15052_v0  ;;  %1425 = vmatpush1.bf16.msra.mxu0 %v12260_v23  ;;  %v12308_v1 = vld [vmem:[#allocation8 + $0x460] ss:$16 sps:$4 sm:$0xff]   ;;  %v14323_v2 = vld [vmem:[%s15037_s0 + $0x38] sm:$0xff]  }
  0xcc   :  { %1426 = vmatprep.subr.bf16.mxu0 %v12265_v25  ;;  %v12311_v3 = vld [vmem:[#allocation8 + $0x480] ss:$16 sps:$4 sm:$0xff]   ;;  %v12325_v12 = vld [vmem:[#allocation8 + $0x4e4] ss:$16 sps:$4 sm:$0xff]  }
  0xcd   :  { %v12314_v5 = vld [vmem:[#allocation8 + $0x4a0] ss:$16 sps:$4 sm:$0xff]   ;;  %v12290_v13 = vld [vmem:[#allocation4 + $0xa8] ss:$16 sps:$4 sm:$0xff]  }
  0xce   :  { %10393 = vmatmul.mubr.msk.bf16.gmra.mrb[8].mxu1 %vm295_vm0, %v12244_v21  ;;  %v12317_v7 = vld [vmem:[#allocation8 + $0x4c0] ss:$16 sps:$4 sm:$0xff]   ;;  %v12331_v16 = vld [vmem:[#allocation8 + $0x504] ss:$16 sps:$4 sm:$0xff]  }
  0xcf   :  { %382 = vmatprep.mubr.bf16.mxu1 %v15052_v0  ;;  %1427 = vmatpush1.bf16.msra.mxu0 %v12263_v27  ;;  %v12323_v15 = vld [vmem:[#allocation8 + $0x4e0] ss:$16 sps:$4 sm:$0xff]   ;;  %v12337_v18 = vld [vmem:[#allocation8 + $0x524] ss:$16 sps:$4 sm:$0xff]  }
  0xd0   :  { %3102 = vmatprep.subr.bf16.mxu0 %v12301_v56  ;;  %v12335_v19 = vld [vmem:[#allocation8 + $0x520] ss:$16 sps:$4 sm:$0xff]   ;;  %v12343_v20 = vld [vmem:[#allocation8 + $0x544] ss:$16 sps:$4 sm:$0xff]  }
  0xd1   :  { %v12347_v23 = vld [vmem:[#allocation8 + $0x560] ss:$16 sps:$4 sm:$0xff]   ;;  %v12355_v24 = vld [vmem:[#allocation8 + $0x584] ss:$16 sps:$4 sm:$0xff]  }
  0xd2   :  { %10456 = vmatmul.mubr.msk.bf16.gmra.mrb[4].mxu0 %vm295_vm0, %v12245_v22  ;;  %v12349_v22 = vld [vmem:[#allocation8 + $0x564] ss:$16 sps:$4 sm:$0xff]   ;;  %v12353_v25 = vld [vmem:[#allocation8 + $0x580] ss:$16 sps:$4 sm:$0xff]  }
  0xd3   :  { %1057 = vmatprep.mubr.bf16.mxu0 %v15052_v0  ;;  %v12359_v27 = vld [vmem:[#allocation8 + $0x5a0] ss:$16 sps:$4 sm:$0xff]  }
  0xd6   :  { %10394 = vmatmul.mubr.msk.bf16.gmra.mrb[12].mxu1 %vm295_vm0, %v12246_v26 }
  0xd7   :  { %392 = vmatprep.mubr.bf16.mxu1 %v15052_v0 }
  0xda   :  { %10457 = vmatmul.mubr.msk.bf16.gmra.mrb[8].mxu0 %vm295_vm0, %v12247_v28 }
  0xdb   :  { %1067 = vmatprep.mubr.bf16.mxu0 %v15052_v0 }
  0xde   :  { %10395 = vmatmul.mubr.msk.bf16.gmra.mrb[16].mxu1 %vm295_vm0, %v12248_v29 }
  0xdf   :  { %402 = vmatprep.mubr.bf16.mxu1 %v15052_v0 }
  0xe2   :  { %10458 = vmatmul.mubr.msk.bf16.gmra.mrb[12].mxu0 %vm295_vm0, %v12252_v30  ;;  %v12367_v30 = vld [vmem:[#allocation8 + $0x5c4] ss:$16 sps:$4 sm:$0xff]  }
  0xe3   :  { %1077 = vmatprep.mubr.bf16.mxu0 %v15052_v0 }
  0xe6   :  { %10396 = vmatmul.mubr.msk.bf16.gmra.mrb[20].mxu1 %vm295_vm0, %v12253_v31 }
  0xe7   :  { %412 = vmatprep.mubr.bf16.mxu1 %v15052_v0 }
  0xea   :  { %10459 = vmatmul.mubr.msk.bf16.gmra.mrb[16].mxu0 %vm295_vm0, %v12254_v32  ;;  %v12365_v32 = vld [vmem:[#allocation8 + $0x5c0] ss:$16 sps:$4 sm:$0xff]  }
  0xeb   :  { %1087 = vmatprep.mubr.bf16.mxu0 %v15052_v0 }
  0xee   :  { %10397 = vmatmul.mubr.msk.bf16.gmra.mrb[24].mxu1 %vm295_vm0, %v12255_v33 }
  0xef   :  { %422 = vmatprep.mubr.bf16.mxu1 %v15052_v0 }
  0xf2   :  { %10460 = vmatmul.mubr.msk.bf16.gmra.mrb[20].mxu0 %vm295_vm0, %v12256_v34  ;;  %v12373_v34 = vld [vmem:[#allocation8 + $0x5e4] ss:$16 sps:$4 sm:$0xff]  }
  0xf3   :  { %1097 = vmatprep.mubr.bf16.mxu0 %v15052_v0 }
  0xf6   :  { %10398 = vmatmul.mubr.msk.bf16.gmra.mrb[28].mxu1 %vm295_vm0, %v12257_v35 }
  0xf7   :  { %465 = vmatprep.mubr.bf16.mxu1 %v15052_v0 }
  0xfa   :  { %10461 = vmatmul.mubr.msk.bf16.gmra.mrb[24].mxu0 %vm295_vm0, %v12258_v36  ;;  %v12293_v36 = vld [vmem:[#allocation4 + $0xc8] ss:$16 sps:$4 sm:$0xff]  }
  0xfb   :  { %1107 = vmatprep.mubr.bf16.mxu0 %v15052_v0 }
  0xfe   :  { %10399 = vmatmul.mubr.msk.bf16.vlgmr.msra.gmra.mrb[32].mxu1 %vm295_vm0, %v14123_v9  ;;  %v12287_v9 = vld [vmem:[#allocation4 + $0x88] ss:$16 sps:$4 sm:$0xff]  }
  0xff   :  { %11728 = vmatpush1.bf16.msra.mxu1 %v14112_v4  ;;  %475 = vmatprep.mubr.bf16.mxu1 %v15052_v0  ;;  %v12313_v4 = vld [vmem:[#allocation8 + $0x484] ss:$16 sps:$4 sm:$0xff]  }
 0x100   :  { %11727 = vmatprep.subr.bf16.mxu1 %v14115_v6  ;;  %v12316_v6 = vld [vmem:[#allocation8 + $0x4a4] ss:$16 sps:$4 sm:$0xff]  }
 0x102   :  { %10462 = vmatmul.mubr.msk.bf16.gmra.mrb[28].mxu0 %vm295_vm0, %v12259_v37  ;;  %v12298_v37 = vld [vmem:[#allocation4 + $0xec] ss:$16 sps:$4 sm:$0xff]  }
 0x103   :  { %1456 = vmatprep.mubr.bf16.mxu0 %v15052_v0  ;;  %11729 = vmatpush1.bf16.msra.mxu1 %v14117_v8  ;;  %v12319_v8 = vld [vmem:[#allocation8 + $0x4c4] ss:$16 sps:$4 sm:$0xff]  }
 0x104   :  { %763 = vmatprep.subr.bf16.mxu1 %v12270_v38  ;;  %v12296_v38 = vld [vmem:[#allocation4 + $0xe8] ss:$16 sps:$4 sm:$0xff]  }
 0x106   :  { %10400 = vmatmul.mubr.msk.bf16.gmra.mrb[36].mxu1 %vm295_vm0, %v14137_v17  ;;  %v12329_v17 = vld [vmem:[#allocation8 + $0x500] ss:$16 sps:$4 sm:$0xff]  }
 0x107   :  { %485 = vmatprep.mubr.bf16.mxu1 %v15052_v0 }
 0x10a   :  { %10503 = vmatmul.mubr.msk.bf16.vlgmr.msra.gmra.mrb[0].mxu0 %vm295_vm0, %v12266_v39  ;;  %v13664_v39 = vld [vmem:[%s15037_s0 + $0x4] sm:$0xff]  }
 0x10b   :  { %1466 = vmatprep.mubr.bf16.mxu0 %v15052_v0  ;;  %3103 = vmatpush1.bf16.msra.mxu0 %v12299_v55 }
 0x10c   :  { %3104 = vmatprep.subr.bf16.mxu0 %v12304_v58 }
 0x10e   :  { %10401 = vmatmul.mubr.msk.bf16.gmra.mrb[40].mxu1 %vm295_vm0, %v12244_v21  ;;  %v12341_v21 = vld [vmem:[#allocation8 + $0x540] ss:$16 sps:$4 sm:$0xff]  }
 0x10f   :  { %495 = vmatprep.mubr.bf16.mxu1 %v15052_v0  ;;  %3105 = vmatpush1.bf16.msra.mxu0 %v12302_v59 }
 0x110   :  { %3106 = vmatprep.subr.bf16.mxu0 %v12307_v61 }
 0x112   :  { %10504 = vmatmul.mubr.msk.bf16.gmra.mrb[4].mxu0 %vm295_vm0, %v12271_v40  ;;  %v12322_v40 = vld [vmem:[#allocation8 + $0x40c] ss:$16 sps:$4 sm:$0xff]  }
 0x113   :  { %1476 = vmatprep.mubr.bf16.mxu0 %v15052_v0  ;;  %3107 = vmatpush1.bf16.msra.mxu0 %v12305_v62 }
 0x114   :  { %3108 = vmatprep.subr.bf16.mxu0 %v12310_v63 }
 0x116   :  { %10402 = vmatmul.mubr.msk.bf16.gmra.mrb[44].mxu1 %vm295_vm0, %v12246_v26  ;;  %v12361_v26 = vld [vmem:[#allocation8 + $0x5a4] ss:$16 sps:$4 sm:$0xff]  }
 0x117   :  { %505 = vmatprep.mubr.bf16.mxu1 %v15052_v0  ;;  %3109 = vmatpush1.bf16.msra.mxu0 %v12308_v1 }
 0x118   :  { %3110 = vmatprep.subr.bf16.mxu0 %v12313_v4  ;;  %v13670_v4 = vld [vmem:[%s15037_s0 + $0x34] sm:$0xff]  }
 0x11a   :  { %10505 = vmatmul.mubr.msk.bf16.gmra.mrb[8].mxu0 %vm295_vm0, %v12273_v41  ;;  %v13665_v41 = vld [vmem:[%s15037_s0 + $0xc] sm:$0xff]  }
 0x11b   :  { %1486 = vmatprep.mubr.bf16.mxu0 %v15052_v0  ;;  %3111 = vmatpush1.bf16.msra.mxu0 %v12311_v3 }
 0x11c   :  { %3112 = vmatprep.subr.bf16.mxu0 %v12316_v6 }
 0x11e   :  { %10403 = vmatmul.mubr.msk.bf16.gmra.mrb[48].mxu1 %vm295_vm0, %v12248_v29 }
 0x11f   :  { %515 = vmatprep.mubr.bf16.mxu1 %v15052_v0  ;;  %3113 = vmatpush1.bf16.msra.mxu0 %v12314_v5 }
 0x120   :  { %3114 = vmatprep.subr.bf16.mxu0 %v12319_v8 }
 0x122   :  { %10506 = vmatmul.mubr.msk.bf16.gmra.mrb[12].mxu0 %vm295_vm0, %v12275_v42  ;;  %v13666_v42 = vld [vmem:[%s15037_s0 + $0x14] sm:$0xff]  }
 0x123   :  { %1496 = vmatprep.mubr.bf16.mxu0 %v15052_v0  ;;  %3115 = vmatpush1.bf16.msra.mxu0 %v12317_v7 }
 0x124   :  { %3116 = vmatprep.subr.bf16.mxu0 %v12325_v12 }
 0x126   :  { %10404 = vmatmul.mubr.msk.bf16.gmra.mrb[52].mxu1 %vm295_vm0, %v12253_v31 }
 0x127   :  { %525 = vmatprep.mubr.bf16.mxu1 %v15052_v0  ;;  %3117 = vmatpush1.bf16.msra.mxu0 %v12323_v15  ;;  %v12328_v15 = vld [vmem:[#allocation8 + $0x42c] ss:$16 sps:$4 sm:$0xff]  }
 0x128   :  { %3118 = vmatprep.subr.bf16.mxu0 %v12331_v16  ;;  %v12326_v16 = vld [vmem:[#allocation8 + $0x428] ss:$16 sps:$4 sm:$0xff]  }
 0x12a   :  { %10507 = vmatmul.mubr.msk.bf16.gmra.mrb[16].mxu0 %vm295_vm0, %v12277_v43  ;;  %v13667_v43 = vld [vmem:[%s15037_s0 + $0x1c] sm:$0xff]  }
 0x12b   :  { %1506 = vmatprep.mubr.bf16.mxu0 %v15052_v0  ;;  %3119 = vmatpush1.bf16.msra.mxu0 %v12329_v17 }
 0x12c   :  { %3120 = vmatprep.subr.bf16.mxu0 %v12337_v18  ;;  %v13672_v18 = vld [vmem:[%s15037_s0 + $0x48] sm:$0xff]  }
 0x12e   :  { %10405 = vmatmul.mubr.msk.bf16.gmra.mrb[56].mxu1 %vm295_vm0, %v12255_v33 }
 0x12f   :  { %535 = vmatprep.mubr.bf16.mxu1 %v15052_v0  ;;  %3121 = vmatpush1.bf16.msra.mxu0 %v12335_v19  ;;  %v12334_v19 = vld [vmem:[#allocation8 + $0x44c] ss:$16 sps:$4 sm:$0xff]  }
 0x130   :  { %3122 = vmatprep.subr.bf16.mxu0 %v12343_v20 }
 0x132   :  { %10508 = vmatmul.mubr.msk.bf16.gmra.mrb[20].mxu0 %vm295_vm0, %v12282_v44  ;;  %v12397_v44 = vld [vmem:[#allocation8 + $0x604] ss:$16 sps:$4 sm:$0xff]  }
 0x133   :  { %1516 = vmatprep.mubr.bf16.mxu0 %v15052_v0  ;;  %3123 = vmatpush1.bf16.msra.mxu0 %v12341_v21 }
 0x134   :  { %3124 = vmatprep.subr.bf16.mxu0 %v12349_v22 }
 0x136   :  { %10406 = vmatmul.mubr.msk.bf16.gmra.mrb[60].mxu1 %vm295_vm0, %v12257_v35  ;;  %v12371_v35 = vld [vmem:[#allocation8 + $0x5e0] ss:$16 sps:$4 sm:$0xff]  }
 0x137   :  { %692 = vmatprep.mubr.bf16.mxu1 %v15052_v0  ;;  %3125 = vmatpush1.bf16.msra.mxu0 %v12347_v23  ;;  %v12332_v23 = vld [vmem:[#allocation8 + $0x448] ss:$16 sps:$4 sm:$0xff]  }
 0x138   :  { %3126 = vmatprep.subr.bf16.mxu0 %v12355_v24  ;;  %v12340_v24 = vld [vmem:[#allocation8 + $0x46c] ss:$16 sps:$4 sm:$0xff]  }
 0x13a   :  { %10509 = vmatmul.mubr.msk.bf16.gmra.mrb[24].mxu0 %vm295_vm0, %v12284_v45  ;;  %v15049_v45 = vlaneseq }
 0x13b   :  { %1526 = vmatprep.mubr.bf16.mxu0 %v15052_v0  ;;  %3127 = vmatpush1.bf16.msra.mxu0 %v12353_v25  ;;  %v12338_v25 = vld [vmem:[#allocation8 + $0x468] ss:$16 sps:$4 sm:$0xff]  }
 0x13c   :  { %3128 = vmatprep.subr.bf16.mxu0 %v12361_v26 }
 0x13e   :  { %10424 = vmatmul.mubr.msk.bf16.vlgmr.msra.gmra.mrb[4].mxu1 %vm295_vm0, %v14269_v46 }
 0x13f   :  { %764 = vmatpush1.bf16.msra.mxu1 %v12268_v47  ;;  %702 = vmatprep.mubr.bf16.mxu1 %v15052_v0  ;;  %v14380_v47 = vshrl.u32 %v15049_v45, 7 }
 0x140   :  { %765 = vmatprep.subr.bf16.mxu1 %v12280_v48  ;;  %3129 = vmatpush1.bf16.msra.mxu0 %v12359_v27  ;;  %v13673_v27 = vld [vmem:[%s15037_s0 + $0x50] sm:$0xff]  }
 0x141   :  { %3130 = vmatprep.subr.bf16.mxu0 %v12367_v30  ;;  %15064 = vst [vmem:[#allocation26_spill] sm:$0xff] %v14380_v47  ;;  %v14383_v48 = vsub.s32 0, %v14380_v47 }
 0x142   :  { %10510 = vmatmul.mubr.msk.bf16.gmra.mrb[28].mxu0 %vm295_vm0, %v12286_v49 }
 0x143   :  { %766 = vmatpush1.bf16.msra.mxu1 %v12278_v50  ;;  %15065 = vst [vmem:[#allocation27_spill] sm:$0xff] %v14383_v48  ;;  %v1714_v50 = vld [vmem:[#allocation6] sm:$0xf] }
 0x144   :  { %1118 = vmatprep.subr.bf16.mxu1 %v12289_v51  ;;  %3131 = vmatpush1.bf16.msra.mxu0 %v12365_v32  ;;  %v14386_v51 = vsub.s32 1, %v14380_v47  ;;  %v12344_v32 = vld [vmem:[#allocation8 + $0x488] ss:$16 sps:$4 sm:$0xff]  }
 0x145   :  { %3132 = vmatprep.subr.bf16.mxu0 %v12373_v34  ;;  %v12350_v34 = vld [vmem:[#allocation8 + $0x4a8] ss:$16 sps:$4 sm:$0xff]  }
 0x146   :  { %10425 = vmatmul.mubr.msk.bf16.gmra.mrb[8].mxu1 %vm295_vm0, %v14282_v52  ;;  %15066 = vst [vmem:[#allocation28_spill] sm:$0xff] %v14386_v51 }
 0x147   :  { %712 = vmatprep.mubr.bf16.mxu1 %v15052_v0 }
 0x148   :  { %3133 = vmatpush1.bf16.msra.mxu0 %v12371_v35 }
 0x149   :  { %3175 = vmatprep.subr.bf16.mxu0 %v12397_v44 }
 0x14e   :  { %10426 = vmatmul.mubr.msk.bf16.gmra.mrb[12].mxu1 %vm295_vm0, %v14291_v53 }
 0x14f   :  { %722 = vmatprep.mubr.bf16.mxu1 %v15052_v0 }
 0x156   :  { %10427 = vmatmul.mubr.msk.bf16.gmra.mrb[16].mxu1 %vm295_vm0, %v14299_v54 }
 0x157   :  { %732 = vmatprep.mubr.bf16.mxu1 %v15052_v0 }
 0x15e   :  { %10428 = vmatmul.mubr.msk.bf16.gmra.mrb[20].mxu1 %vm295_vm0, %v14307_v57 }
 0x15f   :  { %742 = vmatprep.mubr.bf16.mxu1 %v15052_v0 }
 0x166   :  { %10429 = vmatmul.mubr.msk.bf16.gmra.mrb[24].mxu1 %vm295_vm0, %v14315_v60 }
 0x167   :  { %752 = vmatprep.mubr.bf16.mxu1 %v15052_v0 }
 0x16e   :  { %10430 = vmatmul.mubr.msk.bf16.gmra.mrb[28].mxu1 %vm295_vm0, %v14323_v2 }
 0x16f   :  { %795 = vmatprep.mubr.bf16.mxu1 %v15052_v0 }
 0x176   :  { %10431 = vmatmul.mubr.msk.bf16.vlgmr.msra.gmra.mrb[32].mxu1 %vm295_vm0, %v13663_v11 }
 0x177   :  { %1119 = vmatpush1.bf16.msra.mxu1 %v12287_v9  ;;  %805 = vmatprep.mubr.bf16.mxu1 %v15052_v0 }
 0x178   :  { %1120 = vmatprep.subr.bf16.mxu1 %v12292_v10  ;;  %v13671_v10 = vld [vmem:[%s15037_s0 + $0x3c] sm:$0xff]  }
 0x17b   :  { %1121 = vmatpush1.bf16.msra.mxu1 %v12290_v13 }
 0x17c   :  { %1537 = vmatprep.subr.bf16.mxu1 %v12295_v14  ;;  %v12320_v14 = vld [vmem:[#allocation8 + $0x408] ss:$16 sps:$4 sm:$0xff]  }
 0x17e   :  { %10432 = vmatmul.mubr.msk.bf16.gmra.mrb[36].mxu1 %vm295_vm0, %v14269_v46  ;;  %v13668_v46 = vld [vmem:[%s15037_s0 + $0x24] sm:$0xff]  }
 0x17f   :  { %815 = vmatprep.mubr.bf16.mxu1 %v15052_v0 }
 0x186   :  { %10433 = vmatmul.mubr.msk.bf16.gmra.mrb[40].mxu1 %vm295_vm0, %v14282_v52 }
 0x187   :  { %825 = vmatprep.mubr.bf16.mxu1 %v15052_v0 }
 0x18e   :  { %10434 = vmatmul.mubr.msk.bf16.gmra.mrb[44].mxu1 %vm295_vm0, %v14291_v53  ;;  %v13669_v53 = vld [vmem:[%s15037_s0 + $0x2c] sm:$0xff]  }
 0x18f   :  { %835 = vmatprep.mubr.bf16.mxu1 %v15052_v0 }
 0x191   :  { %v354_v28 = vpop.f32.mrb[0].mxu1 }
 0x192   :  { %v356_v29 = vpop.f32.mrb[1].mxu1 }
 0x193   :  { %v358_v31 = vpop.f32.mrb[2].mxu1 }
 0x194   :  { %v360_v33 = vpop.f32.mrb[3].mxu1 }
 0x196   :  { %10435 = vmatmul.mubr.msk.bf16.gmra.mrb[48].mxu1 %vm295_vm0, %v14299_v54 }
 0x197   :  { %845 = vmatprep.mubr.bf16.mxu1 %v15052_v0 }
 0x19e   :  { %10436 = vmatmul.mubr.msk.bf16.gmra.mrb[52].mxu1 %vm295_vm0, %v14307_v57  ;;  %v14398_v57 = vrot.slane %v1714_v50, %v14383_v48 }
 0x19f   :  { %855 = vmatprep.mubr.bf16.mxu1 %v15052_v0 }
 0x1a6   :  { %10437 = vmatmul.mubr.msk.bf16.gmra.mrb[56].mxu1 %vm295_vm0, %v14315_v60  ;;  %v14401_v60 = vrot.slane %v1714_v50, %v14386_v51 }
 0x1a7   :  { %865 = vmatprep.mubr.bf16.mxu1 %v15052_v0 }
 0x1ae   :  { %10438 = vmatmul.mubr.msk.bf16.gmra.mrb[60].mxu1 %vm295_vm0, %v14323_v2 }
 0x1af   :  { %1150 = vmatprep.mubr.bf16.mxu1 %v15052_v0 }
 0x1b6   :  { %10463 = vmatmul.mubr.msk.bf16.vlgmr.msra.gmra.mrb[32].mxu1 %vm295_vm0, %v13664_v39 }
 0x1b7   :  { %1538 = vmatpush1.bf16.msra.mxu1 %v12293_v36  ;;  %1160 = vmatprep.mubr.bf16.mxu1 %v15052_v0  ;;  %v13674_v36 = vld [vmem:[%s15037_s0 + $0x58] sm:$0xff]  }
 0x1b8   :  { %1539 = vmatprep.subr.bf16.mxu1 %v12298_v37  ;;  %v12358_v37 = vld [vmem:[#allocation8 + $0x4cc] ss:$16 sps:$4 sm:$0xff]  }
 0x1bb   :  { %1540 = vmatpush1.bf16.msra.mxu1 %v12296_v38 }
 0x1bc   :  { %3248 = vmatprep.subr.bf16.mxu1 %v12322_v40 }
 0x1be   :  { %10464 = vmatmul.mubr.msk.bf16.gmra.mrb[36].mxu1 %vm295_vm0, %v13665_v41  ;;  %v12356_v41 = vld [vmem:[#allocation8 + $0x4c8] ss:$16 sps:$4 sm:$0xff]  }
 0x1bf   :  { %1170 = vmatprep.mubr.bf16.mxu1 %v15052_v0 }
 0x1c6   :  { %10465 = vmatmul.mubr.msk.bf16.gmra.mrb[40].mxu1 %vm295_vm0, %v13666_v42  ;;  %v12364_v42 = vld [vmem:[#allocation8 + $0x4ec] ss:$16 sps:$4 sm:$0xff]  }
 0x1c7   :  { %1180 = vmatprep.mubr.bf16.mxu1 %v15052_v0 }
 0x1ce   :  { %10466 = vmatmul.mubr.msk.bf16.gmra.mrb[44].mxu1 %vm295_vm0, %v13667_v43  ;;  %v12362_v43 = vld [vmem:[#allocation8 + $0x4e8] ss:$16 sps:$4 sm:$0xff]  }
 0x1cf   :  { %1190 = vmatprep.mubr.bf16.mxu1 %v15052_v0 }
 0x1d6   :  { %10467 = vmatmul.mubr.msk.bf16.gmra.mrb[48].mxu1 %vm295_vm0, %v13668_v46  ;;  %v13675_v46 = vld [vmem:[%s15037_s0 + $0x60] sm:$0xff]  }
 0x1d7   :  { %1200 = vmatprep.mubr.bf16.mxu1 %v15052_v0 }
 0x1dd   :  { %v1458_v49 = vpop.f32.mrb[0].mxu0 }
 0x1de   :  { %v14388_v52 = vadd.f32 %v1458_v49, %v354_v28  ;;  %10468 = vmatmul.mubr.msk.bf16.gmra.mrb[52].mxu1 %vm295_vm0, %v13669_v53  ;;  %v1460_v54 = vpop.f32.mrb[1].mxu0  ;;  %v12346_v28 = vld [vmem:[#allocation8 + $0x48c] ss:$16 sps:$4 sm:$0xff]  }
 0x1df   :  { %v14394_v55 = vadd.f32 %v1460_v54, %v356_v29  ;;  %v1462_v56 = vpop.f32.mrb[2].mxu0  ;;  %1210 = vmatprep.mubr.bf16.mxu1 %v15052_v0  ;;  %v12370_v49 = vld [vmem:[#allocation8 + $0x50c] ss:$16 sps:$4 sm:$0xff]  }
 0x1e0   :  { %v11732_v58 = vadd.f32 %v1462_v56, %v358_v31  ;;  %v1464_v59 = vpop.f32.mrb[3].mxu0 }
 0x1e1   :  { %v11733_v61 = vadd.f32 %v1464_v59, %v360_v33  ;;  %v12352_v33 = vld [vmem:[#allocation8 + $0x4ac] ss:$16 sps:$4 sm:$0xff]   ;;  %v1736_v59 = vadd.f32 %v14388_v52, %v14398_v57 }
 0x1e2   :  { %v14404_v62 = vadd.f32 %v11732_v58, %v14398_v57  ;;  %v12368_v58 = vld [vmem:[#allocation8 + $0x508] ss:$16 sps:$4 sm:$0xff]  }
 0x1e3   :  { %v14407_v63 = vadd.f32 %v11733_v61, %v14401_v60 }
 0x1e4   :  { %v1804_v1 = vmax.f32 %v14404_v62, 0.0 }
 0x1e5   :  { %v1805_v2 = vmax.f32 %v14407_v63, 0.0  ;;  %v14411_v3 = vpop.f32.mrb[4].mxu0 }
 0x1e6   :  { %10469 = vmatmul.mubr.msk.bf16.gmra.mrb[56].mxu1 %vm295_vm0, %v13670_v4  ;;  %v14417_v5 = vpop.f32.mrb[5].mxu0 }
 0x1e7   :  { %v14423_v6 = vpack.c.bf16 %v1805_v2, %v1804_v1  ;;  %1220 = vmatprep.mubr.bf16.mxu1 %v15052_v0  ;;  %v14426_v7 = vpop.f32.mrb[6].mxu0 }
 0x1e8   :  { %v14428_v8 = vpop.f32.mrb[7].mxu0 }
 0x1ed   :  { %v14430_v9 = vpop.f32.mrb[8].mxu0 }
 0x1ee   :  { %10470 = vmatmul.mubr.msk.bf16.gmra.mrb[60].mxu1 %vm295_vm0, %v13671_v10  ;;  %v14436_v11 = vpop.f32.mrb[9].mxu0  ;;  %v12376_v10 = vld [vmem:[#allocation8 + $0x52c] ss:$16 sps:$4 sm:$0xff]  }
 0x1ef   :  { %1569 = vmatprep.mubr.bf16.mxu1 %v15052_v0  ;;  %v14439_v12 = vpop.f32.mrb[10].mxu0 }
 0x1f0   :  { %v14441_v13 = vpop.f32.mrb[11].mxu0 }
 0x1f5   :  { %v14443_v17 = vpop.f32.mrb[12].mxu0 }
 0x1f6   :  { %10511 = vmatmul.mubr.msk.bf16.vlgmr.msra.gmra.mrb[32].mxu1 %vm295_vm0, %v13672_v18  ;;  %v14449_v20 = vpop.f32.mrb[13].mxu0 }
 0x1f7   :  { %3249 = vmatpush1.bf16.msra.mxu1 %v12320_v14  ;;  %1579 = vmatprep.mubr.bf16.mxu1 %v15052_v0  ;;  %v14452_v21 = vpop.f32.mrb[14].mxu0  ;;  %v1737_v14 = vadd.f32 %v14394_v55, %v14401_v60  ;;  %v1800_v55 = vmax.f32 %v1736_v59, 0.0 }
 0x1f8   :  { %3250 = vmatprep.subr.bf16.mxu1 %v12328_v15  ;;  %v14454_v22 = vpop.f32.mrb[15].mxu0 }
 0x1fb   :  { %3251 = vmatpush1.bf16.msra.mxu1 %v12326_v16 }
 0x1fc   :  { %3252 = vmatprep.subr.bf16.mxu1 %v12334_v19 }
 0x1fd   :  { %v14456_v26 = vpop.f32.mrb[16].mxu0 }
 0x1fe   :  { %10512 = vmatmul.mubr.msk.bf16.gmra.mrb[36].mxu1 %vm295_vm0, %v13673_v27  ;;  %v14462_v29 = vpop.f32.mrb[17].mxu0 }
 0x1ff   :  { %3253 = vmatpush1.bf16.msra.mxu1 %v12332_v23  ;;  %1589 = vmatprep.mubr.bf16.mxu1 %v15052_v0  ;;  %v14465_v30 = vpop.f32.mrb[18].mxu0 }
 0x200   :  { %3254 = vmatprep.subr.bf16.mxu1 %v12340_v24  ;;  %v14467_v31 = vpop.f32.mrb[19].mxu0  ;;  %v12374_v24 = vld [vmem:[#allocation8 + $0x528] ss:$16 sps:$4 sm:$0xff]  }
 0x203   :  { %3255 = vmatpush1.bf16.msra.mxu1 %v12338_v25 }
 0x204   :  { %3256 = vmatprep.subr.bf16.mxu1 %v12346_v28  ;;  %v12379_v28 = vld [vmem:[#allocation8 + $0x54c] ss:$16 sps:$4 sm:$0xff]  }
 0x205   :  { %v14469_v35 = vpop.f32.mrb[20].mxu0 }
 0x206   :  { %10513 = vmatmul.mubr.msk.bf16.gmra.mrb[40].mxu1 %vm295_vm0, %v13674_v36  ;;  %v14475_v38 = vpop.f32.mrb[21].mxu0 }
 0x207   :  { %3257 = vmatpush1.bf16.msra.mxu1 %v12344_v32  ;;  %1599 = vmatprep.mubr.bf16.mxu1 %v15052_v0  ;;  %v14478_v39 = vpop.f32.mrb[22].mxu0 }
 0x208   :  { %3258 = vmatprep.subr.bf16.mxu1 %v12352_v33  ;;  %v14480_v40 = vpop.f32.mrb[23].mxu0  ;;  %v1801_v33 = vmax.f32 %v1737_v14, 0.0 }
 0x20b   :  { %3259 = vmatpush1.bf16.msra.mxu1 %v12350_v34 }
 0x20c   :  { %3260 = vmatprep.subr.bf16.mxu1 %v12358_v37  ;;  %v12395_v37 = vld [vmem:[#allocation8 + $0x600] ss:$16 sps:$4 sm:$0xff]  }
 0x20d   :  { %v14482_v44 = vpop.f32.mrb[24].mxu0 }
 0x20e   :  { %10514 = vmatmul.mubr.msk.bf16.gmra.mrb[44].mxu1 %vm295_vm0, %v13675_v46  ;;  %v14488_v50 = vpop.f32.mrb[25].mxu0  ;;  %v12403_v46 = vld [vmem:[#allocation8 + $0x624] ss:$16 sps:$4 sm:$0xff]  }
 0x20f   :  { %3261 = vmatpush1.bf16.msra.mxu1 %v12356_v41  ;;  %1609 = vmatprep.mubr.bf16.mxu1 %v15052_v0  ;;  %v14491_v53 = vpop.f32.mrb[26].mxu0 }
 0x210   :  { %3262 = vmatprep.subr.bf16.mxu1 %v12364_v42  ;;  %v14493_v54 = vpop.f32.mrb[27].mxu0 }
 0x211   :  { %v694_v56 = vpop.f32.mrb[4].mxu1 }
 0x212   :  { %v11734_v61 = vadd.f32 %v14411_v3, %v694_v56  ;;  %v696_v4 = vpop.f32.mrb[5].mxu1 }
 0x213   :  { %v11735_v15 = vadd.f32 %v14417_v5, %v696_v4  ;;  %v698_v16 = vpop.f32.mrb[6].mxu1  ;;  %3263 = vmatpush1.bf16.msra.mxu1 %v12362_v43 }
 0x214   :  { %v14502_v18 = vadd.f32 %v11734_v61, %v14398_v57  ;;  %v11736_v19 = vadd.f32 %v14426_v7, %v698_v16  ;;  %v700_v23 = vpop.f32.mrb[7].mxu1  ;;  %3264 = vmatprep.subr.bf16.mxu1 %v12370_v49  ;;  %v13676_v7 = vld [vmem:[%s15037_s0 + $0x68] sm:$0xff]  }
 0x215   :  { %v14506_v52 = vadd.f32 %v11735_v15, %v14401_v60  ;;  %v11737_v3 = vadd.f32 %v14428_v8, %v700_v23  ;;  %v14509_v25 = vpop.f32.mrb[28].mxu0  ;;  %v12377_v61 = vld [vmem:[#allocation8 + $0x548] ss:$16 sps:$4 sm:$0xff]   ;;  %v12382_v15 = vld [vmem:[#allocation8 + $0x56c] ss:$16 sps:$4 sm:$0xff]  }
 0x216   :  { %v1808_v5 = vmax.f32 %v14502_v18, 0.0  ;;  %v14513_v27 = vadd.f32 %v11736_v19, %v14398_v57  ;;  %10515 = vmatmul.mubr.msk.bf16.gmra.mrb[48].mxu1 %vm295_vm0, %v13676_v7  ;;  %v14519_v32 = vpop.f32.mrb[29].mxu0  ;;  %v12401_v18 = vld [vmem:[#allocation8 + $0x620] ss:$16 sps:$4 sm:$0xff]  }
 0x217   :  { %v1809_v8 = vmax.f32 %v14506_v52, 0.0  ;;  %v14523_v34 = vadd.f32 %v11737_v3, %v14401_v60  ;;  %3265 = vmatpush1.bf16.msra.mxu1 %v12368_v58  ;;  %1619 = vmatprep.mubr.bf16.mxu1 %v15052_v0  ;;  %v14526_v36 = vpop.f32.mrb[30].mxu0  ;;  %v12380_v3 = vld [vmem:[#allocation8 + $0x568] ss:$16 sps:$4 sm:$0xff]  }
 0x218   :  { %v14528_v41 = vpack.c.bf16 %v1808_v5, %v1800_v55  ;;  %v1812_v42 = vmax.f32 %v14513_v27, 0.0  ;;  %3266 = vmatprep.subr.bf16.mxu1 %v12376_v10  ;;  %v14531_v43 = vpop.f32.mrb[31].mxu0 }
 0x219   :  { %v1813_v49 = vmax.f32 %v14523_v34, 0.0  ;;  %v704_v56 = vpop.f32.mrb[8].mxu1  ;;  %v14534_v59 = vpack.c.bf16 %v1809_v8, %v1801_v33  ;;  %v12415_v33 = vld [vmem:[#allocation8 + $0x664] ss:$16 sps:$4 sm:$0xff]  }
 0x21a   :  { %v14538_v58 = vpack.c.bf16 %v1812_v42, %v1804_v1  ;;  %v11738_v4 = vadd.f32 %v14430_v9, %v704_v56  ;;  %v706_v14 = vpop.f32.mrb[9].mxu1  ;;  %v12409_v9 = vld [vmem:[#allocation8 + $0x644] ss:$16 sps:$4 sm:$0xff]   ;;  %v12383_v56 = vld [vmem:[#allocation8 + $0x588] ss:$16 sps:$4 sm:$0xff]  }
 0x21b   :  { %v11739_v16 = vadd.f32 %v14436_v11, %v706_v14  ;;  %v708_v10 = vpop.f32.mrb[10].mxu1  ;;  %3134 = vmatprep.mubr.bf16.mxu0 %v14534_v59  ;;  %3267 = vmatpush1.bf16.msra.mxu1 %v12374_v24  ;;  %v14545_v19 = vpack.c.bf16 %v1813_v49, %v1805_v2  ;;  %v12385_v24 = vld [vmem:[#allocation8 + $0x58c] ss:$16 sps:$4 sm:$0xff]  }
 0x21c   :  { %v14548_v23 = vadd.f32 %v11738_v4, %v14398_v57  ;;  %v11740_v62 = vadd.f32 %v14439_v12, %v708_v10  ;;  %v710_v1 = vpop.f32.mrb[11].mxu1  ;;  %3135 = vmatmul.mubr.bf16.vlgmr.msra.gmra.mrb[32].mxu0 %v14528_v41  ;;  %3268 = vmatprep.subr.bf16.mxu1 %v12379_v28  ;;  %v13677_v12 = vld [vmem:[%s15037_s0 + $0x70] sm:$0xff]  }
 0x21d   :  { %v1753_v11 = vadd.f32 %v11739_v16, %v14401_v60  ;;  %v11741_v52 = vadd.f32 %v14441_v13, %v710_v1  ;;  %3176 = vmatpush1.bf16.msra.mxu0 %v12395_v37  ;;  %v12407_v13 = vld [vmem:[#allocation8 + $0x640] ss:$16 sps:$4 sm:$0xff]  }
 0x21e   :  { %v1816_v63 = vmax.f32 %v14548_v23, 0.0  ;;  %v14556_v2 = vadd.f32 %v11740_v62, %v14398_v57  ;;  %10516 = vmatmul.mubr.msk.bf16.gmra.mrb[52].mxu1 %vm295_vm0, %v13677_v12  ;;  %3177 = vmatprep.subr.bf16.mxu0 %v12403_v46 }
 0x21f   :  { %v1817_v55 = vmax.f32 %v1753_v11, 0.0  ;;  %v14563_v27 = vadd.f32 %v11741_v52, %v14401_v60  ;;  %3269 = vmatpush1.bf16.msra.mxu1 %v12377_v61  ;;  %1629 = vmatprep.mubr.bf16.mxu1 %v15052_v0  ;;  %v12388_v61 = vld [vmem:[#allocation8 + $0x5ac] ss:$16 sps:$4 sm:$0xff]   ;;  %v13678_v11 = vld [vmem:[%s15037_s0 + $0x78] sm:$0xff]  }
 0x220   :  { %v14566_v7 = vpack.c.bf16 %v1816_v63, %v1808_v5  ;;  %v1820_v28 = vmax.f32 %v14556_v2, 0.0  ;;  %3270 = vmatprep.subr.bf16.mxu1 %v12382_v15  ;;  %v12413_v15 = vld [vmem:[#allocation8 + $0x660] ss:$16 sps:$4 sm:$0xff]  }
 0x221   :  { %v1821_v34 = vmax.f32 %v14563_v27, 0.0  ;;  %v714_v37 = vpop.f32.mrb[12].mxu1  ;;  %3178 = vmatpush1.bf16.msra.mxu0 %v12401_v18  ;;  %v14570_v46 = vpack.c.bf16 %v1817_v55, %v1809_v8 }
 0x222   :  { %v11742_v4 = vadd.f32 %v14443_v17, %v714_v37  ;;  %v716_v14 = vpop.f32.mrb[13].mxu1  ;;  %3179 = vmatprep.subr.bf16.mxu0 %v12409_v9  ;;  %v14573_v16 = vpack.c.bf16 %v1820_v28, %v1812_v42  ;;  %v12421_v17 = vld [vmem:[#allocation8 + $0x684] ss:$16 sps:$4 sm:$0xff]   ;;  %v12386_v9 = vld [vmem:[#allocation8 + $0x5a8] ss:$16 sps:$4 sm:$0xff]  }
 0x223   :  { %v11743_v5 = vadd.f32 %v14449_v20, %v716_v14  ;;  %v718_v10 = vpop.f32.mrb[14].mxu1  ;;  %3271 = vmatpush1.bf16.msra.mxu1 %v12380_v3  ;;  %v14576_v23 = vpack.c.bf16 %v1821_v34, %v1813_v49 }
 0x224   :  { %v14579_v62 = vadd.f32 %v11742_v4, %v14398_v57  ;;  %v11744_v8 = vadd.f32 %v14452_v21, %v718_v10  ;;  %v720_v18 = vpop.f32.mrb[15].mxu1  ;;  %3272 = vmatprep.subr.bf16.mxu1 %v12385_v24  ;;  %v12391_v21 = vld [vmem:[#allocation8 + $0x5cc] ss:$16 sps:$4 sm:$0xff]   ;;  %v12427_v24 = vld [vmem:[#allocation8 + $0x6a4] ss:$16 sps:$4 sm:$0xff]  }
 0x225   :  { %v14583_v1 = vadd.f32 %v11743_v5, %v14401_v60  ;;  %v11745_v42 = vadd.f32 %v14454_v22, %v720_v18  ;;  %3180 = vmatpush1.bf16.msra.mxu0 %v12407_v13  ;;  %v12419_v22 = vld [vmem:[#allocation8 + $0x680] ss:$16 sps:$4 sm:$0xff]   ;;  %v12392_v18 = vld [vmem:[#allocation8 + $0x5e8] ss:$16 sps:$4 sm:$0xff]  }
 0x226   :  { %v1824_v20 = vmax.f32 %v14579_v62, 0.0  ;;  %v14588_v49 = vadd.f32 %v11744_v8, %v14398_v57  ;;  %10517 = vmatmul.mubr.msk.bf16.gmra.mrb[56].mxu1 %vm295_vm0, %v13678_v11  ;;  %3181 = vmatprep.subr.bf16.mxu0 %v12415_v33  ;;  %v12389_v33 = vld [vmem:[#allocation8 + $0x5c8] ss:$16 sps:$4 sm:$0xff]   ;;  %v12439_v11 = vld [vmem:[#allocation8 + $0x6e4] ss:$16 sps:$4 sm:$0xff]  }
 0x227   :  { %v1825_v52 = vmax.f32 %v14583_v1, 0.0  ;;  %v14596_v3 = vadd.f32 %v11745_v42, %v14401_v60  ;;  %3273 = vmatpush1.bf16.msra.mxu1 %v12383_v56  ;;  %1639 = vmatprep.mubr.bf16.mxu1 %v15052_v0  ;;  %v12394_v56 = vld [vmem:[#allocation8 + $0x5ec] ss:$16 sps:$4 sm:$0xff]  }
 0x228   :  { %v1828_v2 = vmax.f32 %v14588_v49, 0.0  ;;  %3274 = vmatprep.subr.bf16.mxu1 %v12388_v61  ;;  %v14600_v12 = vpack.c.bf16 %v1824_v20, %v1816_v63  ;;  %v12425_v63 = vld [vmem:[#allocation8 + $0x6a0] ss:$16 sps:$4 sm:$0xff]  }
 0x229   :  { %v1829_v27 = vmax.f32 %v14596_v3, 0.0  ;;  %v724_v13 = vpop.f32.mrb[16].mxu1  ;;  %v14603_v37 = vpack.c.bf16 %v1825_v52, %v1817_v55  ;;  %3182 = vmatpush1.bf16.msra.mxu0 %v12413_v15 }
 0x22a   :  { %v11746_v4 = vadd.f32 %v14456_v26, %v724_v13  ;;  %v726_v14 = vpop.f32.mrb[17].mxu1  ;;  %3183 = vmatprep.subr.bf16.mxu0 %v12421_v17  ;;  %v14606_v5 = vpack.c.bf16 %v1828_v2, %v1820_v28  ;;  %v12433_v26 = vld [vmem:[#allocation8 + $0x6c4] ss:$16 sps:$4 sm:$0xff]   ;;  %v12398_v13 = vld [vmem:[#allocation8 + $0x608] ss:$16 sps:$4 sm:$0xff]  }
 0x22b   :  { %v11747_v10 = vadd.f32 %v14462_v29, %v726_v14  ;;  %v728_v61 = vpop.f32.mrb[18].mxu1  ;;  %3144 = vmatprep.mubr.bf16.mxu0 %v14603_v37  ;;  %3275 = vmatpush1.bf16.msra.mxu1 %v12386_v9  ;;  %v14610_v62 = vpack.c.bf16 %v1829_v27, %v1821_v34  ;;  %v13679_v34 = vld [vmem:[%s15037_s0 + $0x80] sm:$0xff]  }
 0x22c   :  { %v1768_v55 = vadd.f32 %v11746_v4, %v14398_v57  ;;  %v11748_v15 = vadd.f32 %v14465_v30, %v728_v61  ;;  %v730_v8 = vpop.f32.mrb[19].mxu1  ;;  %3145 = vmatmul.mubr.bf16.gmra.mrb[36].mxu0 %v14600_v12  ;;  %3276 = vmatprep.subr.bf16.mxu1 %v12391_v21  ;;  %v12400_v30 = vld [vmem:[#allocation8 + $0x60c] ss:$16 sps:$4 sm:$0xff]  }
 0x22d   :  { %v1769_v28 = vadd.f32 %v11747_v10, %v14401_v60  ;;  %v11749_v29 = vadd.f32 %v14467_v31, %v730_v8  ;;  %3184 = vmatpush1.bf16.msra.mxu0 %v12419_v22  ;;  %v12431_v31 = vld [vmem:[#allocation8 + $0x6c0] ss:$16 sps:$4 sm:$0xff]   ;;  %v12406_v10 = vld [vmem:[#allocation8 + $0x62c] ss:$16 sps:$4 sm:$0xff]   ;;  %v12404_v8 = vld [vmem:[#allocation8 + $0x628] ss:$16 sps:$4 sm:$0xff]  }
 0x22e   :  { %v1832_v17 = vmax.f32 %v1768_v55, 0.0  ;;  %v1772_v1 = vadd.f32 %v11748_v15, %v14398_v57  ;;  %10518 = vmatmul.mubr.msk.bf16.gmra.mrb[60].mxu1 %vm295_vm0, %v13679_v34  ;;  %3185 = vmatprep.subr.bf16.mxu0 %v12427_v24 }
 0x22f   :  { %v1833_v42 = vmax.f32 %v1769_v28, 0.0  ;;  %v1773_v9 = vadd.f32 %v11749_v29, %v14401_v60  ;;  %3277 = vmatpush1.bf16.msra.mxu1 %v12389_v33  ;;  %3280 = vmatprep.mubr.bf16.mxu1 %v14534_v59 }
 0x230   :  { %v1836_v49 = vmax.f32 %v1772_v1, 0.0  ;;  %3278 = vmatprep.subr.bf16.mxu1 %v12394_v56  ;;  %v14624_v21 = vpack.c.bf16 %v1832_v17, %v1824_v20  ;;  %v12437_v56 = vld [vmem:[#allocation8 + $0x6e0] ss:$16 sps:$4 sm:$0xff]   ;;  %v12451_v1 = vld [vmem:[#allocation8 + $0x724] ss:$16 sps:$4 sm:$0xff]  }
 0x231   :  { %v1837_v3 = vmax.f32 %v1773_v9, 0.0  ;;  %v734_v22 = vpop.f32.mrb[20].mxu1  ;;  %3186 = vmatpush1.bf16.msra.mxu0 %v12425_v63  ;;  %v14626_v4 = vpack.c.bf16 %v1833_v42, %v1825_v52  ;;  %v12410_v9 = vld [vmem:[#allocation8 + $0x648] ss:$16 sps:$4 sm:$0xff]  }
 0x232   :  { %v11750_v24 = vadd.f32 %v14469_v35, %v734_v22  ;;  %v736_v14 = vpop.f32.mrb[21].mxu1  ;;  %3187 = vmatprep.subr.bf16.mxu0 %v12433_v26  ;;  %v14629_v33 = vpack.c.bf16 %v1836_v49, %v1828_v2  ;;  %v12445_v35 = vld [vmem:[#allocation8 + $0x704] ss:$16 sps:$4 sm:$0xff]   ;;  %v12412_v26 = vld [vmem:[#allocation8 + $0x64c] ss:$16 sps:$4 sm:$0xff]  }
 0x233   :  { %v11751_v59 = vadd.f32 %v14475_v38, %v736_v14  ;;  %v738_v61 = vpop.f32.mrb[22].mxu1  ;;  %3279 = vmatpush1.bf16.msra.mxu1 %v12392_v18  ;;  %v14632_v20 = vpack.c.bf16 %v1837_v3, %v1829_v27  ;;  %v12418_v22 = vld [vmem:[#allocation8 + $0x66c] ss:$16 sps:$4 sm:$0xff]  }
 0x234   :  { %v14635_v55 = vadd.f32 %v11750_v24, %v14398_v57  ;;  %v11752_v52 = vadd.f32 %v14478_v39, %v738_v61  ;;  %v740_v63 = vpop.f32.mrb[23].mxu1  ;;  %3321 = vmatprep.subr.bf16.mxu1 %v12400_v30 }
 0x235   :  { %v14639_v15 = vadd.f32 %v11751_v59, %v14401_v60  ;;  %v11753_v2 = vadd.f32 %v14480_v40, %v740_v63  ;;  %3188 = vmatpush1.bf16.msra.mxu0 %v12431_v31  ;;  %v12443_v40 = vld [vmem:[#allocation8 + $0x700] ss:$16 sps:$4 sm:$0xff]  }
 0x236   :  { %v1840_v38 = vmax.f32 %v14635_v55, 0.0  ;;  %v14644_v27 = vadd.f32 %v11752_v52, %v14398_v57  ;;  %3281 = vmatmul.mubr.bf16.vlgmr.msra.gmra.mrb[64].mxu1 %v14528_v41  ;;  %3189 = vmatprep.subr.bf16.mxu0 %v12439_v11  ;;  %v12455_v63 = vld [vmem:[#allocation8 + $0x740] ss:$16 sps:$4 sm:$0xff]  }
 0x237   :  { %v1841_v39 = vmax.f32 %v14639_v15, 0.0  ;;  %v14649_v28 = vadd.f32 %v11753_v2, %v14401_v60  ;;  %3290 = vmatprep.mubr.bf16.mxu1 %v14603_v37  ;;  %3322 = vmatpush1.bf16.msra.mxu1 %v12398_v13  ;;  %v12463_v15 = vld [vmem:[#allocation8 + $0x764] ss:$16 sps:$4 sm:$0xff]  }
 0x238   :  { %v1844_v29 = vmax.f32 %v14644_v27, 0.0  ;;  %v14653_v18 = vpack.c.bf16 %v1840_v38, %v1832_v17  ;;  %3323 = vmatprep.subr.bf16.mxu1 %v12406_v10  ;;  %v12449_v17 = vld [vmem:[#allocation8 + $0x720] ss:$16 sps:$4 sm:$0xff]   ;;  %v12422_v27 = vld [vmem:[#allocation8 + $0x688] ss:$16 sps:$4 sm:$0xff]  }
 0x239   :  { %v1845_v34 = vmax.f32 %v14649_v28, 0.0  ;;  %v744_v41 = vpop.f32.mrb[24].mxu1  ;;  %v11633_v30 = vpack.c.bf16 %v1841_v39, %v1833_v42  ;;  %3190 = vmatpush1.bf16.msra.mxu0 %v12437_v56 }
 0x23a   :  { %v11754_v31 = vadd.f32 %v14482_v44, %v744_v41  ;;  %v746_v11 = vpop.f32.mrb[25].mxu1  ;;  %3191 = vmatprep.subr.bf16.mxu0 %v12445_v35  ;;  %v14657_v37 = vpack.c.bf16 %v1844_v29, %v1836_v49  ;;  %v12457_v44 = vld [vmem:[#allocation8 + $0x744] ss:$16 sps:$4 sm:$0xff]  }
 0x23b   :  { %v11755_v13 = vadd.f32 %v14488_v50, %v746_v11  ;;  %v748_v24 = vpop.f32.mrb[26].mxu1  ;;  %3154 = vmatprep.mubr.bf16.mxu0 %v11633_v30  ;;  %3324 = vmatpush1.bf16.msra.mxu1 %v12404_v8  ;;  %v14660_v14 = vpack.c.bf16 %v1845_v34, %v1837_v3  ;;  %v12416_v50 = vld [vmem:[#allocation8 + $0x668] ss:$16 sps:$4 sm:$0xff]   ;;  %v12424_v3 = vld [vmem:[#allocation8 + $0x68c] ss:$16 sps:$4 sm:$0xff]  }
 0x23c   :  { %v1784_v10 = vadd.f32 %v11754_v31, %v14398_v57  ;;  %v11756_v42 = vadd.f32 %v14491_v53, %v748_v24  ;;  %v750_v59 = vpop.f32.mrb[27].mxu1  ;;  %3155 = vmatmul.mubr.bf16.gmra.mrb[40].mxu0 %v14653_v18  ;;  %3325 = vmatprep.subr.bf16.mxu1 %v12412_v26  ;;  %v12469_v24 = vld [vmem:[#allocation8 + $0x784] ss:$16 sps:$4 sm:$0xff]  }
 0x23d   :  { %v1785_v49 = vadd.f32 %v11755_v13, %v14401_v60  ;;  %v11757_v61 = vadd.f32 %v14493_v54, %v750_v59  ;;  %3192 = vmatpush1.bf16.msra.mxu0 %v12443_v40  ;;  %v12430_v40 = vld [vmem:[#allocation8 + $0x6ac] ss:$16 sps:$4 sm:$0xff]  }
 0x23e   :  { %v1848_v56 = vmax.f32 %v1784_v10, 0.0  ;;  %v1788_v55 = vadd.f32 %v11756_v42, %v14398_v57  ;;  %3291 = vmatmul.mubr.bf16.gmra.mrb[68].mxu1 %v14600_v12  ;;  %3193 = vmatprep.subr.bf16.mxu0 %v12451_v1  ;;  %v12428_v10 = vld [vmem:[#allocation8 + $0x6a8] ss:$16 sps:$4 sm:$0xff]   ;;  %v12436_v42 = vld [vmem:[#allocation8 + $0x6cc] ss:$16 sps:$4 sm:$0xff]  }
 0x23f   :  { %v1849_v52 = vmax.f32 %v1785_v49, 0.0  ;;  %v1789_v53 = vadd.f32 %v11757_v61, %v14401_v60  ;;  %3300 = vmatprep.mubr.bf16.mxu1 %v11633_v30  ;;  %3326 = vmatpush1.bf16.msra.mxu1 %v12410_v9  ;;  %v12461_v9 = vld [vmem:[#allocation8 + $0x760] ss:$16 sps:$4 sm:$0xff]   ;;  %v12434_v61 = vld [vmem:[#allocation8 + $0x6c8] ss:$16 sps:$4 sm:$0xff]  }
 0x240   :  { %v1852_v35 = vmax.f32 %v1788_v55, 0.0  ;;  %3327 = vmatprep.subr.bf16.mxu1 %v12418_v22  ;;  %v14670_v2 = vpack.c.bf16 %v1848_v56, %v1840_v38  ;;  %v12467_v49 = vld [vmem:[#allocation8 + $0x780] ss:$16 sps:$4 sm:$0xff]   ;;  %v12481_v55 = vld [vmem:[#allocation8 + $0x7c4] ss:$16 sps:$4 sm:$0xff]  }
 0x241   :  { %v1853_v54 = vmax.f32 %v1789_v53, 0.0  ;;  %v754_v8 = vpop.f32.mrb[28].mxu1  ;;  %3194 = vmatpush1.bf16.msra.mxu0 %v12449_v17  ;;  %v14672_v26 = vpack.c.bf16 %v1849_v52, %v1841_v39  ;;  %v12479_v53 = vld [vmem:[#allocation8 + $0x7c0] ss:$16 sps:$4 sm:$0xff]  }
 0x242   :  { %v11758_v12 = vadd.f32 %v14509_v25, %v754_v8  ;;  %v756_v28 = vpop.f32.mrb[29].mxu1  ;;  %3195 = vmatprep.subr.bf16.mxu0 %v12457_v44  ;;  %v14675_v1 = vpack.c.bf16 %v1852_v35, %v1844_v29  ;;  %v12493_v8 = vld [vmem:[#allocation8 + $0x4] ss:$16 sps:$4 sm:$0xff]  }
 0x243   :  { %v11759_v41 = vadd.f32 %v14519_v32, %v756_v28  ;;  %v758_v30 = vpop.f32.mrb[30].mxu1  ;;  %3328 = vmatpush1.bf16.msra.mxu1 %v12416_v50  ;;  %v14678_v38 = vpack.c.bf16 %v1853_v54, %v1845_v34  ;;  %v12442_v50 = vld [vmem:[#allocation8 + $0x6ec] ss:$16 sps:$4 sm:$0xff]   ;;  %v12458_v28 = vld [vmem:[#allocation8 + $0x748] ss:$16 sps:$4 sm:$0xff]  }
 0x244   :  { %v1792_v31 = vadd.f32 %v11758_v12, %v14398_v57  ;;  %v11760_v11 = vadd.f32 %v14526_v36, %v758_v30  ;;  %v760_v39 = vpop.f32.mrb[31].mxu1  ;;  %3329 = vmatprep.subr.bf16.mxu1 %v12424_v3  ;;  %v12440_v3 = vld [vmem:[#allocation8 + $0x6e8] ss:$16 sps:$4 sm:$0xff]   ;;  %v12460_v12 = vld [vmem:[#allocation8 + $0x74c] ss:$16 sps:$4 sm:$0xff]  }
 0x245   :  { %v1793_v25 = vadd.f32 %v11759_v41, %v14401_v60  ;;  %v11761_v22 = vadd.f32 %v14531_v43, %v760_v39  ;;  %3196 = vmatpush1.bf16.msra.mxu0 %v12455_v63  ;;  %v12487_v63 = vld [vmem:[#allocation8 + $0x7e4] ss:$16 sps:$4 sm:$0xff]   ;;  %v12464_v41 = vld [vmem:[#allocation8 + $0x768] ss:$16 sps:$4 sm:$0xff]   ;;  %v12472_v30 = vld [vmem:[#allocation8 + $0x78c] ss:$16 sps:$4 sm:$0xff]  }
 0x246   :  { %v1856_v29 = vmax.f32 %v1792_v31, 0.0  ;;  %v1796_v13 = vadd.f32 %v11760_v11, %v14398_v57  ;;  %3301 = vmatmul.mubr.bf16.gmra.mrb[72].mxu1 %v14653_v18  ;;  %3197 = vmatprep.subr.bf16.mxu0 %v12463_v15  ;;  %v12475_v18 = vld [vmem:[#allocation8 + $0x7a4] ss:$16 sps:$4 sm:$0xff]   ;;  %v12454_v15 = vld [vmem:[#allocation8 + $0x72c] ss:$16 sps:$4 sm:$0xff]  }
 0x247   :  { %v1857_v32 = vmax.f32 %v1793_v25, 0.0  ;;  %v1797_v34 = vadd.f32 %v11761_v22, %v14401_v60  ;;  %3330 = vmatpush1.bf16.msra.mxu1 %v12422_v27  ;;  %v12452_v27 = vld [vmem:[#allocation8 + $0x728] ss:$16 sps:$4 sm:$0xff]   ;;  %v12478_v31 = vld [vmem:[#allocation8 + $0x7ac] ss:$16 sps:$4 sm:$0xff]  }
 0x248   :  { %v1860_v17 = vmax.f32 %v1796_v13, 0.0  ;;  %v11636_v36 = vpack.c.bf16 %v1856_v29, %v1848_v56  ;;  %3331 = vmatprep.subr.bf16.mxu1 %v12430_v40  ;;  %v12473_v56 = vld [vmem:[#allocation8 + $0x7a0] ss:$16 sps:$4 sm:$0xff]   ;;  %v12466_v40 = vld [vmem:[#allocation8 + $0x76c] ss:$16 sps:$4 sm:$0xff]  }
 0x249   :  { %v14687_v59 = vpack.c.bf16 %v1857_v32, %v1856_v29  ;;  %v1861_v43 = vmax.f32 %v1797_v34, 0.0  ;;  %v11637_v44 = vpack.c.bf16 %v1857_v32, %v1849_v52  ;;  %3198 = vmatpush1.bf16.msra.mxu0 %v12461_v9  ;;  %v12448_v52 = vld [vmem:[#allocation8 + $0x70c] ss:$16 sps:$4 sm:$0xff]   ;;  %v12470_v9 = vld [vmem:[#allocation8 + $0x788] ss:$16 sps:$4 sm:$0xff]   ;;  %v15051_v32 = vsub.s32 2, %v14380_v47 }
 0x24a   :  { %3199 = vmatprep.subr.bf16.mxu0 %v12469_v24  ;;  %v14689_v57 = vpack.c.bf16 %v1860_v17, %v1852_v35  ;;  %v12446_v35 = vld [vmem:[#allocation8 + $0x708] ss:$16 sps:$4 sm:$0xff]   ;;  %v12484_v39 = vld [vmem:[#allocation8 + $0x7cc] ss:$16 sps:$4 sm:$0xff]   ;;  %v15050_v34 = vsub.s32 3, %v14380_v47 }
 0x24b   :  { %3164 = vmatprep.mubr.bf16.mxu0 %v11637_v44  ;;  %3310 = vmatprep.mubr.bf16.mxu1 %v11637_v44  ;;  %v14691_v60 = vpack.c.bf16 %v1861_v43, %v1853_v54  ;;  %v12485_v54 = vld [vmem:[#allocation8 + $0x7e0] ss:$16 sps:$4 sm:$0xff]   ;;  %v12476_v11 = vld [vmem:[#allocation8 + $0x7a8] ss:$16 sps:$4 sm:$0xff]   ;;  %v12490_v22 = vld [vmem:[#allocation8 + $0x7ec] ss:$16 sps:$4 sm:$0xff]  }
 0x24c   :  { %3165 = vmatmul.mubr.bf16.gmra.mrb[44].mxu0 %v11636_v36  ;;  %3332 = vmatpush1.bf16.msra.mxu1 %v12428_v10  ;;  %v12482_v25 = vld [vmem:[#allocation8 + $0x7c8] ss:$16 sps:$4 sm:$0xff]   ;;  %v12496_v13 = vld [vmem:[#allocation8 + $0xc] ss:$16 sps:$4 sm:$0xff]  }
 0x24d   :  { %3333 = vmatprep.subr.bf16.mxu1 %v12436_v42  ;;  %3200 = vmatpush1.bf16.msra.mxu0 %v12467_v49  ;;  %v12488_v29 = vld [vmem:[#allocation8 + $0x7e8] ss:$16 sps:$4 sm:$0xff]   ;;  %v13680_v17 = vld [vmem:[#allocation6] sm:$0xf] }
 0x24e   :  { %3311 = vmatmul.mubr.bf16.gmra.mrb[76].mxu1 %v11636_v36  ;;  %3201 = vmatprep.subr.bf16.mxu0 %v12475_v18  ;;  %v14697_v36 = vrot.slane %v13680_v17, %v15051_v32  ;;  %v14701_v42 = vrot.slane %v13680_v17, %v15050_v34 }
 0x250   :  { %3334 = vmatpush1.bf16.msra.mxu1 %v12434_v61 }
 0x251   :  { %3335 = vmatprep.subr.bf16.mxu1 %v12442_v50  ;;  %3202 = vmatpush1.bf16.msra.mxu0 %v12473_v56 }
 0x252   :  { %3203 = vmatprep.subr.bf16.mxu0 %v12481_v55 }
 0x254   :  { %3336 = vmatpush1.bf16.msra.mxu1 %v12440_v3 }
 0x255   :  { %3337 = vmatprep.subr.bf16.mxu1 %v12448_v52  ;;  %3204 = vmatpush1.bf16.msra.mxu0 %v12479_v53 }
 0x256   :  { %3205 = vmatprep.subr.bf16.mxu0 %v12487_v63 }
 0x258   :  { %3338 = vmatpush1.bf16.msra.mxu1 %v12446_v35 }
 0x259   :  { %3339 = vmatprep.subr.bf16.mxu1 %v12454_v15  ;;  %3206 = vmatpush1.bf16.msra.mxu0 %v12485_v54 }
 0x25a   :  { %4114 = vmatprep.subr.bf16.mxu0 %v12493_v8 }
 0x25c   :  { %3340 = vmatpush1.bf16.msra.mxu1 %v12452_v27 }
 0x25d   :  { %3341 = vmatprep.subr.bf16.mxu1 %v12460_v12 }
 0x260   :  { %3342 = vmatpush1.bf16.msra.mxu1 %v12458_v28 }
 0x261   :  { %3343 = vmatprep.subr.bf16.mxu1 %v12466_v40 }
 0x264   :  { %3344 = vmatpush1.bf16.msra.mxu1 %v12464_v41 }
 0x265   :  { %3345 = vmatprep.subr.bf16.mxu1 %v12472_v30 }
 0x268   :  { %3346 = vmatpush1.bf16.msra.mxu1 %v12470_v9 }
 0x269   :  { %3347 = vmatprep.subr.bf16.mxu1 %v12478_v31 }
 0x26c   :  { %3348 = vmatpush1.bf16.msra.mxu1 %v12476_v11 }
 0x26d   :  { %3349 = vmatprep.subr.bf16.mxu1 %v12484_v39  ;;  %v12491_v39 = vld [vmem:[#allocation8] ss:$16 sps:$4 sm:$0xff]  }
 0x270   :  { %3350 = vmatpush1.bf16.msra.mxu1 %v12482_v25  ;;  %v12494_v25 = vld [vmem:[#allocation8 + $0x8] ss:$16 sps:$4 sm:$0xff]  }
 0x271   :  { %3351 = vmatprep.subr.bf16.mxu1 %v12490_v22 }
 0x274   :  { %3352 = vmatpush1.bf16.msra.mxu1 %v12488_v29  ;;  %v12499_v29 = vld [vmem:[#allocation8 + $0x24] ss:$16 sps:$4 sm:$0xff]  }
 0x275   :  { %4260 = vmatprep.subr.bf16.mxu1 %v12496_v13  ;;  %v12502_v13 = vld [vmem:[#allocation8 + $0x2c] ss:$16 sps:$4 sm:$0xff]  }
 0x2c9   :  { %v1571_v24 = vpop.f32.mrb[32].mxu1 }
 0x2ca   :  { %v1573_v10 = vpop.f32.mrb[33].mxu1  ;;  %v1738_v56 = vadd.f32 %v14697_v36, %v1571_v24 }
 0x2cb   :  { %v1575_v43 = vpop.f32.mrb[34].mxu1  ;;  %v1739_v55 = vadd.f32 %v14701_v42, %v1573_v10 }
 0x2cc   :  { %v1742_v44 = vadd.f32 %v14697_v36, %v1575_v43  ;;  %v1577_v49 = vpop.f32.mrb[35].mxu1  ;;  %v1802_v54 = vmax.f32 %v1738_v56, 0.0 }
 0x2cd   :  { %v1743_v18 = vadd.f32 %v14701_v42, %v1577_v49  ;;  %v1803_v28 = vmax.f32 %v1739_v55, 0.0 }
 0x2ce   :  { %v1806_v61 = vmax.f32 %v1742_v44, 0.0 }
 0x2cf   :  { %v1807_v50 = vmax.f32 %v1743_v18, 0.0  ;;  %v12497_v18 = vld [vmem:[#allocation8 + $0x20] ss:$16 sps:$4 sm:$0xff]  }
 0x2d1   :  { %v14707_v3 = vpack.c.bf16 %v1807_v50, %v1806_v61  ;;  %v1581_v52 = vpop.f32.mrb[36].mxu1 }
 0x2d2   :  { %v1746_v53 = vadd.f32 %v14697_v36, %v1581_v52  ;;  %v1583_v63 = vpop.f32.mrb[37].mxu1  ;;  %v12505_v52 = vld [vmem:[#allocation8 + $0x44] ss:$16 sps:$4 sm:$0xff]  }
 0x2d3   :  { %v1747_v35 = vadd.f32 %v14701_v42, %v1583_v63  ;;  %v1585_v15 = vpop.f32.mrb[38].mxu1 }
 0x2d4   :  { %v1810_v8 = vmax.f32 %v1746_v53, 0.0  ;;  %v1750_v27 = vadd.f32 %v14697_v36, %v1585_v15  ;;  %v1587_v12 = vpop.f32.mrb[39].mxu1  ;;  %v12508_v53 = vld [vmem:[#allocation8 + $0x4c] ss:$16 sps:$4 sm:$0xff]  }
 0x2d5   :  { %v1811_v40 = vmax.f32 %v1747_v35, 0.0  ;;  %v1751_v41 = vadd.f32 %v14701_v42, %v1587_v12 }
 0x2d6   :  { %v11626_v30 = vpack.c.bf16 %v1810_v8, %v1802_v54  ;;  %v1814_v9 = vmax.f32 %v1750_v27, 0.0 }
 0x2d7   :  { %v11627_v31 = vpack.c.bf16 %v1811_v40, %v1803_v28  ;;  %v1815_v11 = vmax.f32 %v1751_v41, 0.0  ;;  %v12503_v28 = vld [vmem:[#allocation8 + $0x40] ss:$16 sps:$4 sm:$0xff]   ;;  %v12506_v41 = vld [vmem:[#allocation8 + $0x48] ss:$16 sps:$4 sm:$0xff]  }
 0x2d8   :  { %v14713_v22 = vpack.c.bf16 %v1814_v9, %v1806_v61  ;;  %v12500_v61 = vld [vmem:[#allocation8 + $0x28] ss:$16 sps:$4 sm:$0xff]  }
 0x2d9   :  { %v14715_v24 = vpack.c.bf16 %v1815_v11, %v1807_v50  ;;  %v1591_v17 = vpop.f32.mrb[40].mxu1  ;;  %3207 = vmatprep.mubr.bf16.mxu0 %v11627_v31  ;;  %3353 = vmatprep.mubr.bf16.mxu1 %v11627_v31  ;;  %v12511_v31 = vld [vmem:[#allocation8 + $0x64] ss:$16 sps:$4 sm:$0xff]  }
 0x2da   :  { %v1754_v10 = vadd.f32 %v14697_v36, %v1591_v17  ;;  %v1593_v43 = vpop.f32.mrb[41].mxu1  ;;  %3208 = vmatmul.mubr.bf16.vlgmr.msra.gmra.mrb[32].mxu0 %v11626_v30  ;;  %3354 = vmatmul.mubr.bf16.vlgmr.msra.gmra.mrb[64].mxu1 %v11626_v30 }
 0x2db   :  { %v1755_v44 = vadd.f32 %v14701_v42, %v1593_v43  ;;  %4115 = vmatpush1.bf16.msra.mxu0 %v12491_v39  ;;  %4261 = vmatpush1.bf16.msra.mxu1 %v12494_v25  ;;  %v1595_v49 = vpop.f32.mrb[42].mxu1  ;;  %v12514_v39 = vld [vmem:[#allocation8 + $0x6c] ss:$16 sps:$4 sm:$0xff]   ;;  %v12512_v43 = vld [vmem:[#allocation8 + $0x68] ss:$16 sps:$4 sm:$0xff]  }
 0x2dc   :  { %v1818_v56 = vmax.f32 %v1754_v10, 0.0  ;;  %v1758_v55 = vadd.f32 %v14697_v36, %v1595_v49  ;;  %v1597_v50 = vpop.f32.mrb[43].mxu1  ;;  %4116 = vmatprep.subr.bf16.mxu0 %v12499_v29  ;;  %4262 = vmatprep.subr.bf16.mxu1 %v12502_v13  ;;  %v12509_v10 = vld [vmem:[#allocation8 + $0x60] ss:$16 sps:$4 sm:$0xff]  }
 0x2dd   :  { %v1819_v63 = vmax.f32 %v1755_v44, 0.0  ;;  %v1759_v35 = vadd.f32 %v14701_v42, %v1597_v50 }
 0x2de   :  { %v14721_v15 = vpack.c.bf16 %v1818_v56, %v1810_v8  ;;  %v1822_v54 = vmax.f32 %v1758_v55, 0.0 }
 0x2df   :  { %v14723_v27 = vpack.c.bf16 %v1819_v63, %v1811_v40  ;;  %v1823_v12 = vmax.f32 %v1759_v35, 0.0  ;;  %4117 = vmatpush1.bf16.msra.mxu0 %v12497_v18  ;;  %4263 = vmatpush1.bf16.msra.mxu1 %v12500_v61  ;;  %v12517_v18 = vld [vmem:[#allocation8 + $0x84] ss:$16 sps:$4 sm:$0xff]  }
 0x2e0   :  { %v14725_v30 = vpack.c.bf16 %v1822_v54, %v1814_v9  ;;  %4118 = vmatprep.subr.bf16.mxu0 %v12505_v52  ;;  %4264 = vmatprep.subr.bf16.mxu1 %v12508_v53 }
 0x2e1   :  { %v14727_v25 = vpack.c.bf16 %v1823_v12, %v1815_v11  ;;  %v1601_v29 = vpop.f32.mrb[44].mxu1  ;;  %v12520_v11 = vld [vmem:[#allocation8 + $0x8c] ss:$16 sps:$4 sm:$0xff]  }
 0x2e2   :  { %v1762_v8 = vadd.f32 %v14697_v36, %v1601_v29  ;;  %v1603_v13 = vpop.f32.mrb[45].mxu1 }
 0x2e3   :  { %v1763_v40 = vadd.f32 %v14701_v42, %v1603_v13  ;;  %4119 = vmatpush1.bf16.msra.mxu0 %v12503_v28  ;;  %4265 = vmatpush1.bf16.msra.mxu1 %v12506_v41  ;;  %v1605_v17 = vpop.f32.mrb[46].mxu1  ;;  %v12515_v28 = vld [vmem:[#allocation8 + $0x80] ss:$16 sps:$4 sm:$0xff]   ;;  %v12518_v41 = vld [vmem:[#allocation8 + $0x88] ss:$16 sps:$4 sm:$0xff]  }
 0x2e4   :  { %v1826_v44 = vmax.f32 %v1762_v8, 0.0  ;;  %v1766_v9 = vadd.f32 %v14697_v36, %v1605_v17  ;;  %v1607_v49 = vpop.f32.mrb[47].mxu1  ;;  %4120 = vmatprep.subr.bf16.mxu0 %v12511_v31  ;;  %4266 = vmatprep.subr.bf16.mxu1 %v12514_v39  ;;  %v12523_v8 = vld [vmem:[#allocation8 + $0xa4] ss:$16 sps:$4 sm:$0xff]   ;;  %v12526_v31 = vld [vmem:[#allocation8 + $0xac] ss:$16 sps:$4 sm:$0xff]  }
 0x2e5   :  { %v1827_v61 = vmax.f32 %v1763_v40, 0.0  ;;  %v1767_v55 = vadd.f32 %v14701_v42, %v1607_v49  ;;  %v12521_v17 = vld [vmem:[#allocation8 + $0xa0] ss:$16 sps:$4 sm:$0xff]   ;;  %v12529_v49 = vld [vmem:[#allocation8 + $0xc4] ss:$16 sps:$4 sm:$0xff]  }
 0x2e6   :  { %v11630_v50 = vpack.c.bf16 %v1826_v44, %v1818_v56  ;;  %v1830_v52 = vmax.f32 %v1766_v9, 0.0 }
 0x2e7   :  { %v11631_v53 = vpack.c.bf16 %v1827_v61, %v1819_v63  ;;  %v1831_v35 = vmax.f32 %v1767_v55, 0.0  ;;  %4121 = vmatpush1.bf16.msra.mxu0 %v12509_v10  ;;  %4267 = vmatpush1.bf16.msra.mxu1 %v12512_v43  ;;  %v12524_v10 = vld [vmem:[#allocation8 + $0xa8] ss:$16 sps:$4 sm:$0xff]  }
 0x2e8   :  { %v14733_v29 = vpack.c.bf16 %v1830_v52, %v1822_v54  ;;  %4122 = vmatprep.subr.bf16.mxu0 %v12517_v18  ;;  %4268 = vmatprep.subr.bf16.mxu1 %v12520_v11  ;;  %v12532_v18 = vld [vmem:[#allocation8 + $0xcc] ss:$16 sps:$4 sm:$0xff]  }
 0x2e9   :  { %v14735_v39 = vpack.c.bf16 %v1831_v35, %v1823_v12  ;;  %v1611_v13 = vpop.f32.mrb[48].mxu1  ;;  %3217 = vmatprep.mubr.bf16.mxu0 %v11631_v53  ;;  %3363 = vmatprep.mubr.bf16.mxu1 %v11631_v53 }
 0x2ea   :  { %v1770_v56 = vadd.f32 %v14697_v36, %v1611_v13  ;;  %v1613_v40 = vpop.f32.mrb[49].mxu1  ;;  %3218 = vmatmul.mubr.bf16.gmra.mrb[36].mxu0 %v11630_v50  ;;  %3364 = vmatmul.mubr.bf16.gmra.mrb[68].mxu1 %v11630_v50 }
 0x2eb   :  { %v1771_v63 = vadd.f32 %v14701_v42, %v1613_v40  ;;  %4123 = vmatpush1.bf16.msra.mxu0 %v12515_v28  ;;  %4269 = vmatpush1.bf16.msra.mxu1 %v12518_v41  ;;  %v1615_v54 = vpop.f32.mrb[50].mxu1  ;;  %v12527_v41 = vld [vmem:[#allocation8 + $0xc0] ss:$16 sps:$4 sm:$0xff]  }
 0x2ec   :  { %v1834_v43 = vmax.f32 %v1770_v56, 0.0  ;;  %v1774_v9 = vadd.f32 %v14697_v36, %v1615_v54  ;;  %v1617_v12 = vpop.f32.mrb[51].mxu1  ;;  %4124 = vmatprep.subr.bf16.mxu0 %v12523_v8  ;;  %4270 = vmatprep.subr.bf16.mxu1 %v12526_v31  ;;  %v12530_v56 = vld [vmem:[#allocation8 + $0xc8] ss:$16 sps:$4 sm:$0xff]   ;;  %v12535_v8 = vld [vmem:[#allocation8 + $0xe4] ss:$16 sps:$4 sm:$0xff]  }
 0x2ed   :  { %v1835_v11 = vmax.f32 %v1771_v63, 0.0  ;;  %v1775_v55 = vadd.f32 %v14701_v42, %v1617_v12  ;;  %v12538_v31 = vld [vmem:[#allocation8 + $0xec] ss:$16 sps:$4 sm:$0xff]  }
 0x2ee   :  { %v14741_v53 = vpack.c.bf16 %v1834_v43, %v1826_v44  ;;  %v1838_v50 = vmax.f32 %v1774_v9, 0.0  ;;  %v12536_v9 = vld [vmem:[#allocation8 + $0xe8] ss:$16 sps:$4 sm:$0xff]  }
 0x2ef   :  { %v14743_v13 = vpack.c.bf16 %v1835_v11, %v1827_v61  ;;  %v1839_v28 = vmax.f32 %v1775_v55, 0.0  ;;  %4125 = vmatpush1.bf16.msra.mxu0 %v12521_v17  ;;  %4271 = vmatpush1.bf16.msra.mxu1 %v12524_v10  ;;  %v12533_v10 = vld [vmem:[#allocation8 + $0xe0] ss:$16 sps:$4 sm:$0xff]  }
 0x2f0   :  { %15067 = vst [vmem:[#allocation29_spill] sm:$0xff] %v14741_v53  ;;  %v14745_v40 = vpack.c.bf16 %v1838_v50, %v1830_v52  ;;  %4126 = vmatprep.subr.bf16.mxu0 %v12529_v49  ;;  %4272 = vmatprep.subr.bf16.mxu1 %v12532_v18  ;;  %v12541_v18 = vld [vmem:[#allocation8 + $0x104] ss:$16 sps:$4 sm:$0xff]  }
 0x2f1   :  { %15068 = vst [vmem:[#allocation30_spill] sm:$0xff] %v14743_v13  ;;  %v14747_v54 = vpack.c.bf16 %v1839_v28, %v1831_v35  ;;  %v1621_v63 = vpop.f32.mrb[52].mxu1  ;;  %v12544_v35 = vld [vmem:[#allocation8 + $0x10c] ss:$16 sps:$4 sm:$0xff]  }
 0x2f2   :  { %v1778_v44 = vadd.f32 %v14697_v36, %v1621_v63  ;;  %v1623_v12 = vpop.f32.mrb[53].mxu1 }
 0x2f3   :  { %v1779_v61 = vadd.f32 %v14701_v42, %v1623_v12  ;;  %4127 = vmatpush1.bf16.msra.mxu0 %v12527_v41  ;;  %4273 = vmatpush1.bf16.msra.mxu1 %v12530_v56  ;;  %v1625_v17 = vpop.f32.mrb[54].mxu1  ;;  %v12539_v41 = vld [vmem:[#allocation8 + $0x100] ss:$16 sps:$4 sm:$0xff]   ;;  %v12542_v56 = vld [vmem:[#allocation8 + $0x108] ss:$16 sps:$4 sm:$0xff]  }
 0x2f4   :  { %v1842_v55 = vmax.f32 %v1778_v44, 0.0  ;;  %v1782_v52 = vadd.f32 %v14697_v36, %v1625_v17  ;;  %v1627_v49 = vpop.f32.mrb[55].mxu1  ;;  %4128 = vmatprep.subr.bf16.mxu0 %v12535_v8  ;;  %4274 = vmatprep.subr.bf16.mxu1 %v12538_v31  ;;  %v12547_v44 = vld [vmem:[#allocation8 + $0x124] ss:$16 sps:$4 sm:$0xff]   ;;  %v12550_v8 = vld [vmem:[#allocation8 + $0x12c] ss:$16 sps:$4 sm:$0xff]  }
 0x2f5   :  { %v1843_v45 = vmax.f32 %v1779_v61, 0.0  ;;  %v1783_v34 = vadd.f32 %v14701_v42, %v1627_v49  ;;  %v12553_v49 = vld [vmem:[#allocation8 + $0x144] ss:$16 sps:$4 sm:$0xff]  }
 0x2f6   :  { %v11634_v63 = vpack.c.bf16 %v1842_v55, %v1834_v43  ;;  %v1846_v32 = vmax.f32 %v1782_v52, 0.0 }
 0x2f7   :  { %v11635_v0 = vpack.c.bf16 %v1843_v45, %v1835_v11  ;;  %v1847_v12 = vmax.f32 %v1783_v34, 0.0  ;;  %4129 = vmatpush1.bf16.msra.mxu0 %v12533_v10  ;;  %4275 = vmatpush1.bf16.msra.mxu1 %v12536_v9  ;;  %v12548_v10 = vld [vmem:[#allocation8 + $0x128] ss:$16 sps:$4 sm:$0xff]  }
 0x2f8   :  { %v14753_v51 = vpack.c.bf16 %v1846_v32, %v1838_v50  ;;  %4130 = vmatprep.subr.bf16.mxu0 %v12541_v18  ;;  %4276 = vmatprep.subr.bf16.mxu1 %v12544_v35  ;;  %v12545_v50 = vld [vmem:[#allocation8 + $0x120] ss:$16 sps:$4 sm:$0xff]  }
 0x2f9   :  { %v14755_v31 = vpack.c.bf16 %v1847_v12, %v1839_v28  ;;  %v1631_v17 = vpop.f32.mrb[56].mxu1  ;;  %3227 = vmatprep.mubr.bf16.mxu0 %v11635_v0  ;;  %3373 = vmatprep.mubr.bf16.mxu1 %v11635_v0  ;;  %v12556_v0 = vld [vmem:[#allocation8 + $0x14c] ss:$16 sps:$4 sm:$0xff]  }
 0x2fa   :  { %v1786_v43 = vadd.f32 %v14697_v36, %v1631_v17  ;;  %v1633_v61 = vpop.f32.mrb[57].mxu1  ;;  %3228 = vmatmul.mubr.bf16.gmra.mrb[40].mxu0 %v11634_v63  ;;  %3374 = vmatmul.mubr.bf16.gmra.mrb[72].mxu1 %v11634_v63 }
 0x2fb   :  { %v1787_v34 = vadd.f32 %v14701_v42, %v1633_v61  ;;  %4131 = vmatpush1.bf16.msra.mxu0 %v12539_v41  ;;  %4277 = vmatpush1.bf16.msra.mxu1 %v12542_v56  ;;  %v1635_v11 = vpop.f32.mrb[58].mxu1  ;;  %v12551_v56 = vld [vmem:[#allocation8 + $0x140] ss:$16 sps:$4 sm:$0xff]  }
 0x2fc   :  { %v1850_v9 = vmax.f32 %v1786_v43, 0.0  ;;  %v1790_v52 = vadd.f32 %v14697_v36, %v1635_v11  ;;  %v1637_v28 = vpop.f32.mrb[59].mxu1  ;;  %4132 = vmatprep.subr.bf16.mxu0 %v12547_v44  ;;  %4278 = vmatprep.subr.bf16.mxu1 %v12550_v8  ;;  %v12554_v43 = vld [vmem:[#allocation8 + $0x148] ss:$16 sps:$4 sm:$0xff]   ;;  %v12559_v44 = vld [vmem:[#allocation8 + $0x164] ss:$16 sps:$4 sm:$0xff]  }
 0x2fd   :  { %v1851_v18 = vmax.f32 %v1787_v34, 0.0  ;;  %v1791_v35 = vadd.f32 %v14701_v42, %v1637_v28  ;;  %v12562_v8 = vld [vmem:[#allocation8 + $0x16c] ss:$16 sps:$4 sm:$0xff]  }
 0x2fe   :  { %v14761_v17 = vpack.c.bf16 %v1850_v9, %v1842_v55  ;;  %v1854_v63 = vmax.f32 %v1790_v52, 0.0  ;;  %v12560_v52 = vld [vmem:[#allocation8 + $0x168] ss:$16 sps:$4 sm:$0xff]  }
 0x2ff   :  { %v14763_v61 = vpack.c.bf16 %v1851_v18, %v1843_v45  ;;  %v1855_v41 = vmax.f32 %v1791_v35, 0.0  ;;  %4133 = vmatpush1.bf16.msra.mxu0 %v12545_v50  ;;  %4279 = vmatpush1.bf16.msra.mxu1 %v12548_v10  ;;  %v12557_v10 = vld [vmem:[#allocation8 + $0x160] ss:$16 sps:$4 sm:$0xff]  }
 0x300   :  { %15069 = vst [vmem:[#allocation31_spill] sm:$0xff] %v14761_v17  ;;  %v14765_v48 = vpack.c.bf16 %v1854_v63, %v1846_v32  ;;  %4134 = vmatprep.subr.bf16.mxu0 %v12553_v49  ;;  %4280 = vmatprep.subr.bf16.mxu1 %v12556_v0  ;;  %v12565_v0 = vld [vmem:[#allocation8 + $0x184] ss:$16 sps:$4 sm:$0xff]  }
 0x301   :  { %15070 = vst [vmem:[#allocation32_spill] sm:$0xff] %v14763_v61  ;;  %v14767_v11 = vpack.c.bf16 %v1855_v41, %v1847_v12  ;;  %v1641_v34 = vpop.f32.mrb[60].mxu1  ;;  %v12568_v12 = vld [vmem:[#allocation8 + $0x18c] ss:$16 sps:$4 sm:$0xff]  }
 0x302   :  { %v1794_v55 = vadd.f32 %v14697_v36, %v1641_v34  ;;  %v1643_v28 = vpop.f32.mrb[61].mxu1 }
 0x303   :  { %v1795_v45 = vadd.f32 %v14701_v42, %v1643_v28  ;;  %4135 = vmatpush1.bf16.msra.mxu0 %v12551_v56  ;;  %4281 = vmatpush1.bf16.msra.mxu1 %v12554_v43  ;;  %v1645_v50 = vpop.f32.mrb[62].mxu1  ;;  %v12563_v28 = vld [vmem:[#allocation8 + $0x180] ss:$16 sps:$4 sm:$0xff]  }
 0x304   :  { %v1858_v35 = vmax.f32 %v1794_v55, 0.0  ;;  %v1798_v32 = vadd.f32 %v14697_v36, %v1645_v50  ;;  %v1647_v49 = vpop.f32.mrb[63].mxu1  ;;  %4136 = vmatprep.subr.bf16.mxu0 %v12559_v44  ;;  %4282 = vmatprep.subr.bf16.mxu1 %v12562_v8  ;;  %v12566_v55 = vld [vmem:[#allocation8 + $0x188] ss:$16 sps:$4 sm:$0xff]   ;;  %v12571_v44 = vld [vmem:[#allocation8 + $0x1a4] ss:$16 sps:$4 sm:$0xff]  }
 0x305   :  { %v1859_v47 = vmax.f32 %v1795_v45, 0.0  ;;  %v1799_v17 = vadd.f32 %v14701_v42, %v1647_v49  ;;  %v12574_v42 = vld [vmem:[#allocation8 + $0x1ac] ss:$16 sps:$4 sm:$0xff]   ;;  %v12578_v8 = vld [vmem:[#allocation8 + $0x1c8] ss:$16 sps:$4 sm:$0xff]  }
 0x306   :  { %v11638_v34 = vpack.c.bf16 %v1858_v35, %v1850_v9  ;;  %v1862_v61 = vmax.f32 %v1798_v32, 0.0  ;;  %v15071_v9 = vmov 0   ;;  %v12583_v45 = vld [vmem:[#allocation8 + $0x1e4] ss:$16 sps:$4 sm:$0xff]   ;;  %v12586_v50 = vld [vmem:[#allocation8 + $0x1ec] ss:$16 sps:$4 sm:$0xff]  }
 0x307   :  { %v14773_v53 = vpack.c.bf16 %v1859_v47, %v1858_v35  ;;  %v11639_v56 = vpack.c.bf16 %v1859_v47, %v1851_v18  ;;  %v1863_v43 = vmax.f32 %v1799_v17, 0.0  ;;  %4137 = vmatpush1.bf16.msra.mxu0 %v12557_v10  ;;  %4283 = vmatpush1.bf16.msra.mxu1 %v12560_v52  ;;  %v10696_v47 = vcombine.high %v15071_v9, %v14423_v6  ;;  %v12569_v18 = vld [vmem:[#allocation8 + $0x1a0] ss:$16 sps:$4 sm:$0xff]   ;;  %v12572_v17 = vld [vmem:[#allocation8 + $0x1a8] ss:$16 sps:$4 sm:$0xff]  }
 0x308   :  { %v14775_v13 = vpack.c.bf16 %v1862_v61, %v1854_v63  ;;  %4138 = vmatprep.subr.bf16.mxu0 %v12565_v0  ;;  %4284 = vmatprep.subr.bf16.mxu1 %v12568_v12  ;;  %v12577_v63 = vld [vmem:[#allocation8 + $0x1c4] ss:$16 sps:$4 sm:$0xff]   ;;  %v12580_v61 = vld [vmem:[#allocation8 + $0x1cc] ss:$16 sps:$4 sm:$0xff]   ;;  %v12581_v10 = vld [vmem:[#allocation8 + $0x1e0] ss:$16 sps:$4 sm:$0xff]   ;;  %v10695_v0 = vcombine.low %v15071_v9, %v14423_v6 }
 0x309   :  { %v14777_v36 = vpack.c.bf16 %v1863_v43, %v1855_v41  ;;  %3237 = vmatprep.mubr.bf16.mxu0 %v11639_v56  ;;  %3383 = vmatprep.mubr.bf16.mxu1 %v11639_v56  ;;  %v12575_v41 = vld [vmem:[#allocation8 + $0x1c0] ss:$16 sps:$4 sm:$0xff]   ;;  %v12584_v52 = vld [vmem:[#allocation8 + $0x1e8] ss:$16 sps:$4 sm:$0xff]   ;;  %v12589_v35 = vld [vmem:[#allocation8 + $0x204] ss:$16 sps:$4 sm:$0xff]  }
 0x30a   :  { %3238 = vmatmul.mubr.bf16.gmra.mrb[44].mxu0 %v11638_v34  ;;  %3384 = vmatmul.mubr.bf16.gmra.mrb[76].mxu1 %v11638_v34  ;;  %v12592_v32 = vld [vmem:[#allocation8 + $0x20c] ss:$16 sps:$4 sm:$0xff]   ;;  %v12587_v49 = vld [vmem:[#allocation8 + $0x200] ss:$16 sps:$4 sm:$0xff]   ;;  %v12590_v12 = vld [vmem:[#allocation8 + $0x208] ss:$16 sps:$4 sm:$0xff]  }
 0x30b   :  { %4139 = vmatpush1.bf16.msra.mxu0 %v12563_v28  ;;  %4285 = vmatpush1.bf16.msra.mxu1 %v12566_v55  ;;  %v12595_v34 = vld [vmem:[#allocation8 + $0x224] ss:$16 sps:$4 sm:$0xff]   ;;  %v12598_v56 = vld [vmem:[#allocation8 + $0x22c] ss:$16 sps:$4 sm:$0xff]   ;;  %v12593_v43 = vld [vmem:[#allocation8 + $0x220] ss:$16 sps:$4 sm:$0xff]  }
 0x30c   :  { %4146 = vmatprep.mubr.bf16.mxu0 %v10696_v47  ;;  %4292 = vmatprep.mubr.bf16.mxu1 %v10696_v47  ;;  %v12596_v28 = vld [vmem:[#allocation8 + $0x228] ss:$16 sps:$4 sm:$0xff]   ;;  %v12601_v55 = vld [vmem:[#allocation8 + $0x244] ss:$16 sps:$4 sm:$0xff]   ;;  %v12599_v6 = vld [vmem:[#allocation8 + $0x240] ss:$16 sps:$4 sm:$0xff]  }
 0x30d   :  { %4140 = vmatprep.subr.bf16.mxu0 %v12571_v44  ;;  %4286 = vmatprep.subr.bf16.mxu1 %v12574_v42  ;;  %v12604_v44 = vld [vmem:[#allocation8 + $0x24c] ss:$16 sps:$4 sm:$0xff]   ;;  %v12602_v42 = vld [vmem:[#allocation8 + $0x248] ss:$16 sps:$4 sm:$0xff]   ;;  %v12607_v47 = vld [vmem:[#allocation8 + $0x264] ss:$16 sps:$4 sm:$0xff]  }
 0x30f   :  { %4141 = vmatpush1.bf16.msra.mxu0 %v12569_v18  ;;  %4287 = vmatpush1.bf16.msra.mxu1 %v12572_v17  ;;  %v12610_v18 = vld [vmem:[#allocation8 + $0x26c] ss:$16 sps:$4 sm:$0xff]   ;;  %v12608_v17 = vld [vmem:[#allocation8 + $0x268] ss:$16 sps:$4 sm:$0xff]  }
 0x310   :  { %4142 = vmatprep.subr.bf16.mxu0 %v12577_v63  ;;  %4288 = vmatprep.subr.bf16.mxu1 %v12580_v61  ;;  %v12613_v63 = vld [vmem:[#allocation8 + $0x284] ss:$16 sps:$4 sm:$0xff]   ;;  %v12616_v61 = vld [vmem:[#allocation8 + $0x28c] ss:$16 sps:$4 sm:$0xff]  }
 0x313   :  { %4143 = vmatpush1.bf16.msra.mxu0 %v12575_v41  ;;  %4289 = vmatpush1.bf16.msra.mxu1 %v12578_v8  ;;  %v12611_v41 = vld [vmem:[#allocation8 + $0x280] ss:$16 sps:$4 sm:$0xff]   ;;  %v12614_v8 = vld [vmem:[#allocation8 + $0x288] ss:$16 sps:$4 sm:$0xff]  }
 0x314   :  { %4144 = vmatprep.subr.bf16.mxu0 %v12583_v45  ;;  %4290 = vmatprep.subr.bf16.mxu1 %v12586_v50  ;;  %v12619_v45 = vld [vmem:[#allocation8 + $0x2a4] ss:$16 sps:$4 sm:$0xff]   ;;  %v12620_v50 = vld [vmem:[#allocation8 + $0x2a8] ss:$16 sps:$4 sm:$0xff]  }
 0x317   :  { %4145 = vmatpush1.bf16.msra.mxu0 %v12581_v10  ;;  %4291 = vmatpush1.bf16.msra.mxu1 %v12584_v52  ;;  %v12625_v10 = vld [vmem:[#allocation8 + $0x2c4] ss:$16 sps:$4 sm:$0xff]   ;;  %v12628_v52 = vld [vmem:[#allocation8 + $0x2cc] ss:$16 sps:$4 sm:$0xff]  }
 0x318   :  { %4187 = vmatprep.subr.bf16.mxu0 %v12589_v35  ;;  %4333 = vmatprep.subr.bf16.mxu1 %v12592_v32  ;;  %v12623_v35 = vld [vmem:[#allocation8 + $0x2c0] ss:$16 sps:$4 sm:$0xff]   ;;  %v12626_v32 = vld [vmem:[#allocation8 + $0x2c8] ss:$16 sps:$4 sm:$0xff]  }
 0x31a   :  { %4147 = vmatmul.mubr.bf16.vlgmr.msra.gmra.mrb[32].mxu0 %v10695_v0  ;;  %4293 = vmatmul.mubr.bf16.vlgmr.msra.gmra.mrb[64].mxu1 %v10695_v0  ;;  %v12634_v0 = vld [vmem:[#allocation8 + $0x2ec] ss:$16 sps:$4 sm:$0xff]  }
 0x31b   :  { %4156 = vmatprep.mubr.bf16.mxu0 %v14576_v23  ;;  %4188 = vmatpush1.bf16.msra.mxu0 %v12587_v49  ;;  %v12631_v49 = vld [vmem:[#allocation8 + $0x2e4] ss:$16 sps:$4 sm:$0xff]  }
 0x31c   :  { %4302 = vmatprep.mubr.bf16.mxu1 %v14576_v23  ;;  %4334 = vmatpush1.bf16.msra.mxu1 %v12590_v12  ;;  %v12605_v23 = vld [vmem:[#allocation8 + $0x260] ss:$16 sps:$4 sm:$0xff]   ;;  %v12632_v12 = vld [vmem:[#allocation8 + $0x2e8] ss:$16 sps:$4 sm:$0xff]  }
 0x31d   :  { %4189 = vmatprep.subr.bf16.mxu0 %v12595_v34  ;;  %4335 = vmatprep.subr.bf16.mxu1 %v12598_v56  ;;  %v12637_v34 = vld [vmem:[#allocation8 + $0x304] ss:$16 sps:$4 sm:$0xff]   ;;  %v12640_v56 = vld [vmem:[#allocation8 + $0x30c] ss:$16 sps:$4 sm:$0xff]  }
 0x31f   :  { %4190 = vmatpush1.bf16.msra.mxu0 %v12593_v43  ;;  %v12635_v43 = vld [vmem:[#allocation8 + $0x300] ss:$16 sps:$4 sm:$0xff]  }
 0x320   :  { %4336 = vmatpush1.bf16.msra.mxu1 %v12596_v28  ;;  %4191 = vmatprep.subr.bf16.mxu0 %v12601_v55  ;;  %v12638_v28 = vld [vmem:[#allocation8 + $0x308] ss:$16 sps:$4 sm:$0xff]   ;;  %v12643_v55 = vld [vmem:[#allocation8 + $0x324] ss:$16 sps:$4 sm:$0xff]  }
 0x321   :  { %4337 = vmatprep.subr.bf16.mxu1 %v12604_v44  ;;  %v12646_v44 = vld [vmem:[#allocation8 + $0x32c] ss:$16 sps:$4 sm:$0xff]  }
 0x322   :  { %4157 = vmatmul.mubr.bf16.gmra.mrb[36].mxu0 %v14573_v16  ;;  %4303 = vmatmul.mubr.bf16.gmra.mrb[68].mxu1 %v14573_v16  ;;  %v12622_v16 = vld [vmem:[#allocation8 + $0x2ac] ss:$16 sps:$4 sm:$0xff]  }
 0x323   :  { %4166 = vmatprep.mubr.bf16.mxu0 %v14632_v20  ;;  %4192 = vmatpush1.bf16.msra.mxu0 %v12599_v6  ;;  %v12644_v6 = vld [vmem:[#allocation8 + $0x328] ss:$16 sps:$4 sm:$0xff]  }
 0x324   :  { %4312 = vmatprep.mubr.bf16.mxu1 %v14632_v20  ;;  %4338 = vmatpush1.bf16.msra.mxu1 %v12602_v42  ;;  %v12617_v20 = vld [vmem:[#allocation8 + $0x2a0] ss:$16 sps:$4 sm:$0xff]   ;;  %v12649_v42 = vld [vmem:[#allocation8 + $0x344] ss:$16 sps:$4 sm:$0xff]  }
 0x325   :  { %4193 = vmatprep.subr.bf16.mxu0 %v12607_v47  ;;  %4339 = vmatprep.subr.bf16.mxu1 %v12610_v18  ;;  %v12652_v47 = vld [vmem:[#allocation8 + $0x34c] ss:$16 sps:$4 sm:$0xff]   ;;  %v12647_v18 = vld [vmem:[#allocation8 + $0x340] ss:$16 sps:$4 sm:$0xff]  }
 0x327   :  { %4194 = vmatpush1.bf16.msra.mxu0 %v12605_v23  ;;  %v12650_v23 = vld [vmem:[#allocation8 + $0x348] ss:$16 sps:$4 sm:$0xff]  }
 0x328   :  { %4340 = vmatpush1.bf16.msra.mxu1 %v12608_v17  ;;  %4195 = vmatprep.subr.bf16.mxu0 %v12613_v63  ;;  %v12655_v17 = vld [vmem:[#allocation8 + $0x364] ss:$16 sps:$4 sm:$0xff]   ;;  %v12658_v63 = vld [vmem:[#allocation8 + $0x36c] ss:$16 sps:$4 sm:$0xff]  }
 0x329   :  { %4341 = vmatprep.subr.bf16.mxu1 %v12616_v61  ;;  %v12653_v61 = vld [vmem:[#allocation8 + $0x360] ss:$16 sps:$4 sm:$0xff]  }
 0x32a   :  { %4167 = vmatmul.mubr.bf16.gmra.mrb[40].mxu0 %v14629_v33  ;;  %4313 = vmatmul.mubr.bf16.gmra.mrb[72].mxu1 %v14629_v33  ;;  %v10698_v33 = vcombine.high %v15071_v9, %v14707_v3 }
 0x32b   :  { %4176 = vmatprep.mubr.bf16.mxu0 %v14678_v38  ;;  %4196 = vmatpush1.bf16.msra.mxu0 %v12611_v41  ;;  %v12656_v41 = vld [vmem:[#allocation8 + $0x368] ss:$16 sps:$4 sm:$0xff]  }
 0x32c   :  { %4322 = vmatprep.mubr.bf16.mxu1 %v14678_v38  ;;  %4342 = vmatpush1.bf16.msra.mxu1 %v12614_v8  ;;  %v12629_v38 = vld [vmem:[#allocation8 + $0x2e0] ss:$16 sps:$4 sm:$0xff]   ;;  %v12661_v8 = vld [vmem:[#allocation8 + $0x384] ss:$16 sps:$4 sm:$0xff]  }
 0x32d   :  { %4197 = vmatprep.subr.bf16.mxu0 %v12619_v45  ;;  %4343 = vmatprep.subr.bf16.mxu1 %v12622_v16  ;;  %v12664_v45 = vld [vmem:[#allocation8 + $0x38c] ss:$16 sps:$4 sm:$0xff]   ;;  %v12659_v16 = vld [vmem:[#allocation8 + $0x380] ss:$16 sps:$4 sm:$0xff]  }
 0x32f   :  { %4198 = vmatpush1.bf16.msra.mxu0 %v12617_v20  ;;  %v12662_v20 = vld [vmem:[#allocation8 + $0x388] ss:$16 sps:$4 sm:$0xff]  }
 0x330   :  { %4344 = vmatpush1.bf16.msra.mxu1 %v12620_v50  ;;  %4199 = vmatprep.subr.bf16.mxu0 %v12625_v10  ;;  %v12667_v50 = vld [vmem:[#allocation8 + $0x3a4] ss:$16 sps:$4 sm:$0xff]   ;;  %v12670_v10 = vld [vmem:[#allocation8 + $0x3ac] ss:$16 sps:$4 sm:$0xff]  }
 0x331   :  { %4345 = vmatprep.subr.bf16.mxu1 %v12628_v52  ;;  %v12665_v52 = vld [vmem:[#allocation8 + $0x3a0] ss:$16 sps:$4 sm:$0xff]  }
 0x332   :  { %4177 = vmatmul.mubr.bf16.gmra.mrb[44].mxu0 %v14675_v1  ;;  %4323 = vmatmul.mubr.bf16.gmra.mrb[76].mxu1 %v14675_v1  ;;  %v12641_v1 = vld [vmem:[#allocation8 + $0x320] ss:$16 sps:$4 sm:$0xff]  }
 0x333   :  { %4200 = vmatpush1.bf16.msra.mxu0 %v12623_v35  ;;  %4219 = vmatprep.mubr.bf16.mxu0 %v10698_v33  ;;  %v12668_v35 = vld [vmem:[#allocation8 + $0x3a8] ss:$16 sps:$4 sm:$0xff]  }
 0x334   :  { %4346 = vmatpush1.bf16.msra.mxu1 %v12626_v32  ;;  %4365 = vmatprep.mubr.bf16.mxu1 %v10698_v33  ;;  %v12673_v32 = vld [vmem:[#allocation8 + $0x3c4] ss:$16 sps:$4 sm:$0xff]   ;;  %v12676_v33 = vld [vmem:[#allocation8 + $0x3cc] ss:$16 sps:$4 sm:$0xff]  }
 0x335   :  { %4201 = vmatprep.subr.bf16.mxu0 %v12631_v49  ;;  %4347 = vmatprep.subr.bf16.mxu1 %v12634_v0  ;;  %v12671_v49 = vld [vmem:[#allocation8 + $0x3c0] ss:$16 sps:$4 sm:$0xff]   ;;  %v12674_v0 = vld [vmem:[#allocation8 + $0x3c8] ss:$16 sps:$4 sm:$0xff]  }
 0x337   :  { %4202 = vmatpush1.bf16.msra.mxu0 %v12629_v38  ;;  %v12679_v38 = vld [vmem:[#allocation8 + $0x3e4] ss:$16 sps:$4 sm:$0xff]  }
 0x338   :  { %4348 = vmatpush1.bf16.msra.mxu1 %v12632_v12  ;;  %4203 = vmatprep.subr.bf16.mxu0 %v12637_v34  ;;  %v12682_v12 = vld [vmem:[#allocation8 + $0x3ec] ss:$16 sps:$4 sm:$0xff]   ;;  %v12677_v34 = vld [vmem:[#allocation8 + $0x3e0] ss:$16 sps:$4 sm:$0xff]  }
 0x339   :  { %4349 = vmatprep.subr.bf16.mxu1 %v12640_v56  ;;  %v12680_v56 = vld [vmem:[#allocation8 + $0x3e8] ss:$16 sps:$4 sm:$0xff]  }
 0x33b   :  { %4204 = vmatpush1.bf16.msra.mxu0 %v12635_v43  ;;  %v12685_v43 = vld [vmem:[#allocation8 + $0x804] ss:$16 sps:$4 sm:$0xff]  }
 0x33c   :  { %4350 = vmatpush1.bf16.msra.mxu1 %v12638_v28  ;;  %4205 = vmatprep.subr.bf16.mxu0 %v12643_v55  ;;  %v12688_v28 = vld [vmem:[#allocation8 + $0x80c] ss:$16 sps:$4 sm:$0xff]   ;;  %v10697_v55 = vcombine.low %v15071_v9, %v14707_v3 }
 0x33d   :  { %4351 = vmatprep.subr.bf16.mxu1 %v12646_v44  ;;  %v12683_v44 = vld [vmem:[#allocation8 + $0x800] ss:$16 sps:$4 sm:$0xff]   ;;  %v12700_v3 = vld [vmem:[#allocation8 + $0x84c] ss:$16 sps:$4 sm:$0xff]  }
 0x33f   :  { %4206 = vmatpush1.bf16.msra.mxu0 %v12641_v1  ;;  %v12686_v1 = vld [vmem:[#allocation8 + $0x808] ss:$16 sps:$4 sm:$0xff]  }
 0x340   :  { %4352 = vmatpush1.bf16.msra.mxu1 %v12644_v6  ;;  %4207 = vmatprep.subr.bf16.mxu0 %v12649_v42  ;;  %v12691_v6 = vld [vmem:[#allocation8 + $0x824] ss:$16 sps:$4 sm:$0xff]   ;;  %v12694_v42 = vld [vmem:[#allocation8 + $0x82c] ss:$16 sps:$4 sm:$0xff]  }
 0x341   :  { %4353 = vmatprep.subr.bf16.mxu1 %v12652_v47  ;;  %v12689_v47 = vld [vmem:[#allocation8 + $0x820] ss:$16 sps:$4 sm:$0xff]  }
 0x343   :  { %4208 = vmatpush1.bf16.msra.mxu0 %v12647_v18  ;;  %v12692_v18 = vld [vmem:[#allocation8 + $0x828] ss:$16 sps:$4 sm:$0xff]  }
 0x344   :  { %4354 = vmatpush1.bf16.msra.mxu1 %v12650_v23  ;;  %4209 = vmatprep.subr.bf16.mxu0 %v12655_v17  ;;  %v12697_v23 = vld [vmem:[#allocation8 + $0x844] ss:$16 sps:$4 sm:$0xff]   ;;  %v12695_v17 = vld [vmem:[#allocation8 + $0x840] ss:$16 sps:$4 sm:$0xff]  }
 0x345   :  { %4355 = vmatprep.subr.bf16.mxu1 %v12658_v63  ;;  %v12698_v63 = vld [vmem:[#allocation8 + $0x848] ss:$16 sps:$4 sm:$0xff]  }
 0x347   :  { %4210 = vmatpush1.bf16.msra.mxu0 %v12653_v61  ;;  %v12703_v61 = vld [vmem:[#allocation8 + $0x864] ss:$16 sps:$4 sm:$0xff]  }
 0x348   :  { %4356 = vmatpush1.bf16.msra.mxu1 %v12656_v41  ;;  %4211 = vmatprep.subr.bf16.mxu0 %v12661_v8  ;;  %v12706_v41 = vld [vmem:[#allocation8 + $0x86c] ss:$16 sps:$4 sm:$0xff]   ;;  %v12704_v8 = vld [vmem:[#allocation8 + $0x868] ss:$16 sps:$4 sm:$0xff]  }
 0x349   :  { %4357 = vmatprep.subr.bf16.mxu1 %v12664_v45  ;;  %v12709_v45 = vld [vmem:[#allocation8 + $0x884] ss:$16 sps:$4 sm:$0xff]  }
 0x34b   :  { %4212 = vmatpush1.bf16.msra.mxu0 %v12659_v16  ;;  %v12712_v16 = vld [vmem:[#allocation8 + $0x88c] ss:$16 sps:$4 sm:$0xff]  }
 0x34c   :  { %4358 = vmatpush1.bf16.msra.mxu1 %v12662_v20  ;;  %4213 = vmatprep.subr.bf16.mxu0 %v12667_v50  ;;  %v12707_v20 = vld [vmem:[#allocation8 + $0x880] ss:$16 sps:$4 sm:$0xff]   ;;  %v12710_v50 = vld [vmem:[#allocation8 + $0x888] ss:$16 sps:$4 sm:$0xff]  }
 0x34d   :  { %4359 = vmatprep.subr.bf16.mxu1 %v12670_v10  ;;  %v12715_v10 = vld [vmem:[#allocation8 + $0x8a4] ss:$16 sps:$4 sm:$0xff]  }
 0x34f   :  { %4214 = vmatpush1.bf16.msra.mxu0 %v12665_v52  ;;  %v12716_v52 = vld [vmem:[#allocation8 + $0x8a8] ss:$16 sps:$4 sm:$0xff]  }
 0x350   :  { %4360 = vmatpush1.bf16.msra.mxu1 %v12668_v35  ;;  %4215 = vmatprep.subr.bf16.mxu0 %v12673_v32  ;;  %v12721_v35 = vld [vmem:[#allocation8 + $0x8c4] ss:$16 sps:$4 sm:$0xff]   ;;  %v12724_v32 = vld [vmem:[#allocation8 + $0x8cc] ss:$16 sps:$4 sm:$0xff]  }
 0x351   :  { %4361 = vmatprep.subr.bf16.mxu1 %v12676_v33  ;;  %v12719_v33 = vld [vmem:[#allocation8 + $0x8c0] ss:$16 sps:$4 sm:$0xff]  }
 0x353   :  { %4216 = vmatpush1.bf16.msra.mxu0 %v12671_v49  ;;  %v12722_v49 = vld [vmem:[#allocation8 + $0x8c8] ss:$16 sps:$4 sm:$0xff]  }
 0x354   :  { %4362 = vmatpush1.bf16.msra.mxu1 %v12674_v0  ;;  %4217 = vmatprep.subr.bf16.mxu0 %v12679_v38  ;;  %v12727_v0 = vld [vmem:[#allocation8 + $0x8e4] ss:$16 sps:$4 sm:$0xff]   ;;  %v12728_v38 = vld [vmem:[#allocation8 + $0x8e8] ss:$16 sps:$4 sm:$0xff]  }
 0x355   :  { %4363 = vmatprep.subr.bf16.mxu1 %v12682_v12  ;;  %v12733_v12 = vld [vmem:[#allocation8 + $0x904] ss:$16 sps:$4 sm:$0xff]  }
 0x357   :  { %4218 = vmatpush1.bf16.msra.mxu0 %v12677_v34  ;;  %v12736_v34 = vld [vmem:[#allocation8 + $0x90c] ss:$16 sps:$4 sm:$0xff]  }
 0x358   :  { %4364 = vmatpush1.bf16.msra.mxu1 %v12680_v56  ;;  %5271 = vmatprep.subr.bf16.mxu0 %v12685_v43  ;;  %v12731_v56 = vld [vmem:[#allocation8 + $0x900] ss:$16 sps:$4 sm:$0xff]   ;;  %v12734_v43 = vld [vmem:[#allocation8 + $0x908] ss:$16 sps:$4 sm:$0xff]  }
 0x359   :  { %5417 = vmatprep.subr.bf16.mxu1 %v12688_v28  ;;  %v12739_v28 = vld [vmem:[#allocation8 + $0x924] ss:$16 sps:$4 sm:$0xff]  }
 0x35a   :  { %4220 = vmatmul.mubr.bf16.vlgmr.msra.gmra.mrb[32].mxu0 %v10697_v55 }
 0x35b   :  { %4366 = vmatmul.mubr.bf16.vlgmr.msra.gmra.mrb[64].mxu1 %v10697_v55  ;;  %4229 = vmatprep.mubr.bf16.mxu0 %v14727_v25  ;;  %v12737_v55 = vld [vmem:[#allocation8 + $0x920] ss:$16 sps:$4 sm:$0xff]  }
 0x35c   :  { %4375 = vmatprep.mubr.bf16.mxu1 %v14727_v25  ;;  %5272 = vmatpush1.bf16.msra.mxu0 %v12683_v44  ;;  %v12701_v25 = vld [vmem:[#allocation8 + $0x860] ss:$16 sps:$4 sm:$0xff]   ;;  %v12745_v44 = vld [vmem:[#allocation8 + $0x944] ss:$16 sps:$4 sm:$0xff]  }
 0x35d   :  { %5418 = vmatpush1.bf16.msra.mxu1 %v12686_v1  ;;  %5273 = vmatprep.subr.bf16.mxu0 %v12691_v6  ;;  %v12748_v1 = vld [vmem:[#allocation8 + $0x94c] ss:$16 sps:$4 sm:$0xff]   ;;  %v12743_v6 = vld [vmem:[#allocation8 + $0x940] ss:$16 sps:$4 sm:$0xff]  }
 0x35e   :  { %5419 = vmatprep.subr.bf16.mxu1 %v12694_v42  ;;  %v12746_v42 = vld [vmem:[#allocation8 + $0x948] ss:$16 sps:$4 sm:$0xff]  }
 0x360   :  { %5274 = vmatpush1.bf16.msra.mxu0 %v12689_v47  ;;  %v12751_v47 = vld [vmem:[#allocation8 + $0x964] ss:$16 sps:$4 sm:$0xff]  }
 0x361   :  { %5420 = vmatpush1.bf16.msra.mxu1 %v12692_v18  ;;  %5275 = vmatprep.subr.bf16.mxu0 %v12697_v23  ;;  %v12754_v18 = vld [vmem:[#allocation8 + $0x96c] ss:$16 sps:$4 sm:$0xff]   ;;  %v12749_v23 = vld [vmem:[#allocation8 + $0x960] ss:$16 sps:$4 sm:$0xff]  }
 0x362   :  { %4230 = vmatmul.mubr.bf16.gmra.mrb[36].mxu0 %v14725_v30  ;;  %5421 = vmatprep.subr.bf16.mxu1 %v12700_v3  ;;  %v12752_v3 = vld [vmem:[#allocation8 + $0x968] ss:$16 sps:$4 sm:$0xff]  }
 0x363   :  { %4376 = vmatmul.mubr.bf16.gmra.mrb[68].mxu1 %v14725_v30  ;;  %4239 = vmatprep.mubr.bf16.mxu0 %v14747_v54  ;;  %v12718_v30 = vld [vmem:[#allocation8 + $0x8ac] ss:$16 sps:$4 sm:$0xff]  }
 0x364   :  { %4385 = vmatprep.mubr.bf16.mxu1 %v14747_v54  ;;  %5276 = vmatpush1.bf16.msra.mxu0 %v12695_v17  ;;  %v12713_v54 = vld [vmem:[#allocation8 + $0x8a0] ss:$16 sps:$4 sm:$0xff]   ;;  %v12757_v17 = vld [vmem:[#allocation8 + $0x984] ss:$16 sps:$4 sm:$0xff]  }
 0x365   :  { %5422 = vmatpush1.bf16.msra.mxu1 %v12698_v63  ;;  %5277 = vmatprep.subr.bf16.mxu0 %v12703_v61  ;;  %v12760_v63 = vld [vmem:[#allocation8 + $0x98c] ss:$16 sps:$4 sm:$0xff]   ;;  %v12755_v61 = vld [vmem:[#allocation8 + $0x980] ss:$16 sps:$4 sm:$0xff]  }
 0x366   :  { %5423 = vmatprep.subr.bf16.mxu1 %v12706_v41  ;;  %v12758_v41 = vld [vmem:[#allocation8 + $0x988] ss:$16 sps:$4 sm:$0xff]  }
 0x368   :  { %5278 = vmatpush1.bf16.msra.mxu0 %v12701_v25  ;;  %v12763_v25 = vld [vmem:[#allocation8 + $0x9a4] ss:$16 sps:$4 sm:$0xff]  }
 0x369   :  { %5424 = vmatpush1.bf16.msra.mxu1 %v12704_v8  ;;  %5279 = vmatprep.subr.bf16.mxu0 %v12709_v45  ;;  %v12766_v8 = vld [vmem:[#allocation8 + $0x9ac] ss:$16 sps:$4 sm:$0xff]   ;;  %v12761_v45 = vld [vmem:[#allocation8 + $0x9a0] ss:$16 sps:$4 sm:$0xff]  }
 0x36a   :  { %4240 = vmatmul.mubr.bf16.gmra.mrb[40].mxu0 %v14745_v40  ;;  %5425 = vmatprep.subr.bf16.mxu1 %v12712_v16  ;;  %v12764_v16 = vld [vmem:[#allocation8 + $0x9a8] ss:$16 sps:$4 sm:$0xff]  }
 0x36b   :  { %4386 = vmatmul.mubr.bf16.gmra.mrb[72].mxu1 %v14745_v40  ;;  %4249 = vmatprep.mubr.bf16.mxu0 %v14767_v11  ;;  %v12730_v40 = vld [vmem:[#allocation8 + $0x8ec] ss:$16 sps:$4 sm:$0xff]  }
 0x36c   :  { %4395 = vmatprep.mubr.bf16.mxu1 %v14767_v11  ;;  %5280 = vmatpush1.bf16.msra.mxu0 %v12707_v20  ;;  %v12725_v11 = vld [vmem:[#allocation8 + $0x8e0] ss:$16 sps:$4 sm:$0xff]   ;;  %v12769_v20 = vld [vmem:[#allocation8 + $0x9c4] ss:$16 sps:$4 sm:$0xff]  }
 0x36d   :  { %5426 = vmatpush1.bf16.msra.mxu1 %v12710_v50  ;;  %5281 = vmatprep.subr.bf16.mxu0 %v12715_v10  ;;  %v12772_v50 = vld [vmem:[#allocation8 + $0x9cc] ss:$16 sps:$4 sm:$0xff]   ;;  %v12767_v10 = vld [vmem:[#allocation8 + $0x9c0] ss:$16 sps:$4 sm:$0xff]  }
 0x36e   :  { %5427 = vmatprep.subr.bf16.mxu1 %v12718_v30  ;;  %v12770_v30 = vld [vmem:[#allocation8 + $0x9c8] ss:$16 sps:$4 sm:$0xff]  }
 0x370   :  { %5282 = vmatpush1.bf16.msra.mxu0 %v12713_v54  ;;  %v12775_v54 = vld [vmem:[#allocation8 + $0x9e4] ss:$16 sps:$4 sm:$0xff]  }
 0x371   :  { %5428 = vmatpush1.bf16.msra.mxu1 %v12716_v52  ;;  %5283 = vmatprep.subr.bf16.mxu0 %v12721_v35  ;;  %v12778_v52 = vld [vmem:[#allocation8 + $0x9ec] ss:$16 sps:$4 sm:$0xff]   ;;  %v12773_v35 = vld [vmem:[#allocation8 + $0x9e0] ss:$16 sps:$4 sm:$0xff]  }
 0x372   :  { %4250 = vmatmul.mubr.bf16.gmra.mrb[44].mxu0 %v14765_v48  ;;  %5429 = vmatprep.subr.bf16.mxu1 %v12724_v32  ;;  %v12776_v32 = vld [vmem:[#allocation8 + $0x9e8] ss:$16 sps:$4 sm:$0xff]  }
 0x373   :  { %4396 = vmatmul.mubr.bf16.gmra.mrb[76].mxu1 %v14765_v48  ;;  %5303 = vmatprep.mubr.bf16.mxu0 %v14545_v19  ;;  %v12742_v48 = vld [vmem:[#allocation8 + $0x92c] ss:$16 sps:$4 sm:$0xff]  }
 0x374   :  { %5284 = vmatpush1.bf16.msra.mxu0 %v12719_v33  ;;  %5449 = vmatprep.mubr.bf16.mxu1 %v14545_v19  ;;  %v12740_v19 = vld [vmem:[#allocation8 + $0x928] ss:$16 sps:$4 sm:$0xff]   ;;  %v12781_v33 = vld [vmem:[#allocation8 + $0xa04] ss:$16 sps:$4 sm:$0xff]  }
 0x375   :  { %5430 = vmatpush1.bf16.msra.mxu1 %v12722_v49  ;;  %5285 = vmatprep.subr.bf16.mxu0 %v12727_v0  ;;  %v12784_v49 = vld [vmem:[#allocation8 + $0xa0c] ss:$16 sps:$4 sm:$0xff]   ;;  %v12779_v0 = vld [vmem:[#allocation8 + $0xa00] ss:$16 sps:$4 sm:$0xff]  }
 0x376   :  { %5431 = vmatprep.subr.bf16.mxu1 %v12730_v40  ;;  %v12782_v40 = vld [vmem:[#allocation8 + $0xa08] ss:$16 sps:$4 sm:$0xff]  }
 0x378   :  { %5286 = vmatpush1.bf16.msra.mxu0 %v12725_v11  ;;  %v12787_v11 = vld [vmem:[#allocation8 + $0xa24] ss:$16 sps:$4 sm:$0xff]  }
 0x379   :  { %5432 = vmatpush1.bf16.msra.mxu1 %v12728_v38  ;;  %5287 = vmatprep.subr.bf16.mxu0 %v12733_v12  ;;  %v12790_v38 = vld [vmem:[#allocation8 + $0xa2c] ss:$16 sps:$4 sm:$0xff]   ;;  %v12785_v12 = vld [vmem:[#allocation8 + $0xa20] ss:$16 sps:$4 sm:$0xff]  }
 0x37a   :  { %5433 = vmatprep.subr.bf16.mxu1 %v12736_v34  ;;  %v12788_v34 = vld [vmem:[#allocation8 + $0xa28] ss:$16 sps:$4 sm:$0xff]  }
 0x37c   :  { %5288 = vmatpush1.bf16.msra.mxu0 %v12731_v56  ;;  %v12793_v56 = vld [vmem:[#allocation8 + $0xa44] ss:$16 sps:$4 sm:$0xff]  }
 0x37d   :  { %5434 = vmatpush1.bf16.msra.mxu1 %v12734_v43  ;;  %5289 = vmatprep.subr.bf16.mxu0 %v12739_v28  ;;  %v12796_v43 = vld [vmem:[#allocation8 + $0xa4c] ss:$16 sps:$4 sm:$0xff]   ;;  %v12791_v28 = vld [vmem:[#allocation8 + $0xa40] ss:$16 sps:$4 sm:$0xff]  }
 0x37e   :  { %5435 = vmatprep.subr.bf16.mxu1 %v12742_v48  ;;  %v12794_v48 = vld [vmem:[#allocation8 + $0xa48] ss:$16 sps:$4 sm:$0xff]  }
 0x380   :  { %5290 = vmatpush1.bf16.msra.mxu0 %v12737_v55  ;;  %v12799_v55 = vld [vmem:[#allocation8 + $0xa64] ss:$16 sps:$4 sm:$0xff]  }
 0x381   :  { %5436 = vmatpush1.bf16.msra.mxu1 %v12740_v19  ;;  %5291 = vmatprep.subr.bf16.mxu0 %v12745_v44  ;;  %v12800_v19 = vld [vmem:[#allocation8 + $0xa68] ss:$16 sps:$4 sm:$0xff]   ;;  %v12805_v44 = vld [vmem:[#allocation8 + $0xa84] ss:$16 sps:$4 sm:$0xff]  }
 0x382   :  { %5437 = vmatprep.subr.bf16.mxu1 %v12748_v1  ;;  %v12808_v1 = vld [vmem:[#allocation8 + $0xa8c] ss:$16 sps:$4 sm:$0xff]  }
 0x384   :  { %5292 = vmatpush1.bf16.msra.mxu0 %v12743_v6  ;;  %v12803_v6 = vld [vmem:[#allocation8 + $0xa80] ss:$16 sps:$4 sm:$0xff]  }
 0x385   :  { %5438 = vmatpush1.bf16.msra.mxu1 %v12746_v42  ;;  %5293 = vmatprep.subr.bf16.mxu0 %v12751_v47  ;;  %v12806_v42 = vld [vmem:[#allocation8 + $0xa88] ss:$16 sps:$4 sm:$0xff]   ;;  %v12811_v47 = vld [vmem:[#allocation8 + $0xaa4] ss:$16 sps:$4 sm:$0xff]  }
 0x386   :  { %5439 = vmatprep.subr.bf16.mxu1 %v12754_v18  ;;  %v12812_v18 = vld [vmem:[#allocation8 + $0xaa8] ss:$16 sps:$4 sm:$0xff]  }
 0x388   :  { %5294 = vmatpush1.bf16.msra.mxu0 %v12749_v23  ;;  %v12817_v23 = vld [vmem:[#allocation8 + $0xac4] ss:$16 sps:$4 sm:$0xff]  }
 0x389   :  { %5440 = vmatpush1.bf16.msra.mxu1 %v12752_v3  ;;  %5295 = vmatprep.subr.bf16.mxu0 %v12757_v17  ;;  %v12820_v3 = vld [vmem:[#allocation8 + $0xacc] ss:$16 sps:$4 sm:$0xff]   ;;  %v12815_v17 = vld [vmem:[#allocation8 + $0xac0] ss:$16 sps:$4 sm:$0xff]  }
 0x38a   :  { %5441 = vmatprep.subr.bf16.mxu1 %v12760_v63  ;;  %v12818_v63 = vld [vmem:[#allocation8 + $0xac8] ss:$16 sps:$4 sm:$0xff]  }
 0x38c   :  { %5296 = vmatpush1.bf16.msra.mxu0 %v12755_v61  ;;  %v12823_v61 = vld [vmem:[#allocation8 + $0xae4] ss:$16 sps:$4 sm:$0xff]  }
 0x38d   :  { %5442 = vmatpush1.bf16.msra.mxu1 %v12758_v41  ;;  %5297 = vmatprep.subr.bf16.mxu0 %v12763_v25  ;;  %v12824_v41 = vld [vmem:[#allocation8 + $0xae8] ss:$16 sps:$4 sm:$0xff]   ;;  %v12829_v25 = vld [vmem:[#allocation8 + $0xb04] ss:$16 sps:$4 sm:$0xff]  }
 0x38e   :  { %5443 = vmatprep.subr.bf16.mxu1 %v12766_v8  ;;  %v12832_v8 = vld [vmem:[#allocation8 + $0xb0c] ss:$16 sps:$4 sm:$0xff]  }
 0x390   :  { %5298 = vmatpush1.bf16.msra.mxu0 %v12761_v45  ;;  %v12827_v45 = vld [vmem:[#allocation8 + $0xb00] ss:$16 sps:$4 sm:$0xff]  }
 0x391   :  { %5444 = vmatpush1.bf16.msra.mxu1 %v12764_v16  ;;  %5299 = vmatprep.subr.bf16.mxu0 %v12769_v20  ;;  %v12830_v16 = vld [vmem:[#allocation8 + $0xb08] ss:$16 sps:$4 sm:$0xff]   ;;  %v12835_v20 = vld [vmem:[#allocation8 + $0xb24] ss:$16 sps:$4 sm:$0xff]  }
 0x392   :  { %5445 = vmatprep.subr.bf16.mxu1 %v12772_v50  ;;  %v12833_v50 = vld [vmem:[#allocation8 + $0xb20] ss:$16 sps:$4 sm:$0xff]  }
 0x394   :  { %5300 = vmatpush1.bf16.msra.mxu0 %v12767_v10  ;;  %v12841_v10 = vld [vmem:[#allocation8 + $0xb44] ss:$16 sps:$4 sm:$0xff]  }
 0x395   :  { %5446 = vmatpush1.bf16.msra.mxu1 %v12770_v30  ;;  %5301 = vmatprep.subr.bf16.mxu0 %v12775_v54  ;;  %v12844_v30 = vld [vmem:[#allocation8 + $0xb4c] ss:$16 sps:$4 sm:$0xff]   ;;  %v12839_v54 = vld [vmem:[#allocation8 + $0xb40] ss:$16 sps:$4 sm:$0xff]  }
 0x396   :  { %5447 = vmatprep.subr.bf16.mxu1 %v12778_v52  ;;  %v12842_v52 = vld [vmem:[#allocation8 + $0xb48] ss:$16 sps:$4 sm:$0xff]  }
 0x398   :  { %5302 = vmatpush1.bf16.msra.mxu0 %v12773_v35  ;;  %v12847_v35 = vld [vmem:[#allocation8 + $0xb64] ss:$16 sps:$4 sm:$0xff]  }
 0x399   :  { %5448 = vmatpush1.bf16.msra.mxu1 %v12776_v32  ;;  %5344 = vmatprep.subr.bf16.mxu0 %v12781_v33  ;;  %v12850_v32 = vld [vmem:[#allocation8 + $0xb6c] ss:$16 sps:$4 sm:$0xff]   ;;  %v12845_v33 = vld [vmem:[#allocation8 + $0xb60] ss:$16 sps:$4 sm:$0xff]  }
 0x39a   :  { %5490 = vmatprep.subr.bf16.mxu1 %v12784_v49  ;;  %v12848_v49 = vld [vmem:[#allocation8 + $0xb68] ss:$16 sps:$4 sm:$0xff]  }
 0x39b   :  { %5304 = vmatmul.mubr.bf16.vlgmr.msra.gmra.mrb[32].mxu0 %v14538_v58 }
 0x39c   :  { %5450 = vmatmul.mubr.bf16.vlgmr.msra.gmra.mrb[64].mxu1 %v14538_v58  ;;  %5313 = vmatprep.mubr.bf16.mxu0 %v14610_v62  ;;  %v12802_v58 = vld [vmem:[#allocation8 + $0xa6c] ss:$16 sps:$4 sm:$0xff]  }
 0x39d   :  { %5345 = vmatpush1.bf16.msra.mxu0 %v12779_v0  ;;  %5459 = vmatprep.mubr.bf16.mxu1 %v14610_v62  ;;  %v12797_v62 = vld [vmem:[#allocation8 + $0xa60] ss:$16 sps:$4 sm:$0xff]   ;;  %v12853_v0 = vld [vmem:[#allocation8 + $0xb84] ss:$16 sps:$4 sm:$0xff]  }
 0x39e   :  { %5491 = vmatpush1.bf16.msra.mxu1 %v12782_v40  ;;  %5346 = vmatprep.subr.bf16.mxu0 %v12787_v11  ;;  %v12856_v40 = vld [vmem:[#allocation8 + $0xb8c] ss:$16 sps:$4 sm:$0xff]   ;;  %v12851_v11 = vld [vmem:[#allocation8 + $0xb80] ss:$16 sps:$4 sm:$0xff]  }
 0x39f   :  { %5492 = vmatprep.subr.bf16.mxu1 %v12790_v38  ;;  %v12854_v38 = vld [vmem:[#allocation8 + $0xb88] ss:$16 sps:$4 sm:$0xff]  }
 0x3a1   :  { %5347 = vmatpush1.bf16.msra.mxu0 %v12785_v12  ;;  %v12859_v12 = vld [vmem:[#allocation8 + $0xba4] ss:$16 sps:$4 sm:$0xff]  }
 0x3a2   :  { %5493 = vmatpush1.bf16.msra.mxu1 %v12788_v34  ;;  %5348 = vmatprep.subr.bf16.mxu0 %v12793_v56  ;;  %v12862_v34 = vld [vmem:[#allocation8 + $0xbac] ss:$16 sps:$4 sm:$0xff]   ;;  %v12857_v56 = vld [vmem:[#allocation8 + $0xba0] ss:$16 sps:$4 sm:$0xff]  }
 0x3a3   :  { %5314 = vmatmul.mubr.bf16.gmra.mrb[36].mxu0 %v14606_v5  ;;  %5494 = vmatprep.subr.bf16.mxu1 %v12796_v43  ;;  %v12860_v43 = vld [vmem:[#allocation8 + $0xba8] ss:$16 sps:$4 sm:$0xff]  }
 0x3a4   :  { %5460 = vmatmul.mubr.bf16.gmra.mrb[68].mxu1 %v14606_v5  ;;  %5323 = vmatprep.mubr.bf16.mxu0 %v14660_v14  ;;  %v12814_v5 = vld [vmem:[#allocation8 + $0xaac] ss:$16 sps:$4 sm:$0xff]  }
 0x3a5   :  { %5349 = vmatpush1.bf16.msra.mxu0 %v12791_v28  ;;  %5469 = vmatprep.mubr.bf16.mxu1 %v14660_v14  ;;  %v12809_v14 = vld [vmem:[#allocation8 + $0xaa0] ss:$16 sps:$4 sm:$0xff]   ;;  %v12865_v28 = vld [vmem:[#allocation8 + $0xbc4] ss:$16 sps:$4 sm:$0xff]  }
 0x3a6   :  { %5495 = vmatpush1.bf16.msra.mxu1 %v12794_v48  ;;  %5350 = vmatprep.subr.bf16.mxu0 %v12799_v55  ;;  %v12868_v48 = vld [vmem:[#allocation8 + $0xbcc] ss:$16 sps:$4 sm:$0xff]   ;;  %v12863_v55 = vld [vmem:[#allocation8 + $0xbc0] ss:$16 sps:$4 sm:$0xff]  }
 0x3a7   :  { %5496 = vmatprep.subr.bf16.mxu1 %v12802_v58  ;;  %v12866_v58 = vld [vmem:[#allocation8 + $0xbc8] ss:$16 sps:$4 sm:$0xff]  }
 0x3a9   :  { %5351 = vmatpush1.bf16.msra.mxu0 %v12797_v62  ;;  %v12871_v62 = vld [vmem:[#allocation8 + $0xbe4] ss:$16 sps:$4 sm:$0xff]  }
 0x3aa   :  { %5497 = vmatpush1.bf16.msra.mxu1 %v12800_v19  ;;  %5352 = vmatprep.subr.bf16.mxu0 %v12805_v44  ;;  %v12874_v19 = vld [vmem:[#allocation8 + $0xbec] ss:$16 sps:$4 sm:$0xff]   ;;  %v12869_v44 = vld [vmem:[#allocation8 + $0xbe0] ss:$16 sps:$4 sm:$0xff]  }
 0x3ab   :  { %5324 = vmatmul.mubr.bf16.gmra.mrb[40].mxu0 %v14657_v37  ;;  %5498 = vmatprep.subr.bf16.mxu1 %v12808_v1  ;;  %v12872_v1 = vld [vmem:[#allocation8 + $0xbe8] ss:$16 sps:$4 sm:$0xff]  }
 0x3ac   :  { %5470 = vmatmul.mubr.bf16.gmra.mrb[72].mxu1 %v14657_v37  ;;  %5333 = vmatprep.mubr.bf16.mxu0 %v14691_v60  ;;  %v12826_v37 = vld [vmem:[#allocation8 + $0xaec] ss:$16 sps:$4 sm:$0xff]  }
 0x3ad   :  { %5353 = vmatpush1.bf16.msra.mxu0 %v12803_v6  ;;  %5479 = vmatprep.mubr.bf16.mxu1 %v14691_v60  ;;  %v12821_v60 = vld [vmem:[#allocation8 + $0xae0] ss:$16 sps:$4 sm:$0xff]   ;;  %v12877_v6 = vld [vmem:[#allocation8 + $0xc04] ss:$16 sps:$4 sm:$0xff]  }
 0x3ae   :  { %5499 = vmatpush1.bf16.msra.mxu1 %v12806_v42  ;;  %5354 = vmatprep.subr.bf16.mxu0 %v12811_v47  ;;  %v12880_v42 = vld [vmem:[#allocation8 + $0xc0c] ss:$16 sps:$4 sm:$0xff]   ;;  %v12875_v47 = vld [vmem:[#allocation8 + $0xc00] ss:$16 sps:$4 sm:$0xff]  }
 0x3af   :  { %5500 = vmatprep.subr.bf16.mxu1 %v12814_v5  ;;  %v12878_v5 = vld [vmem:[#allocation8 + $0xc08] ss:$16 sps:$4 sm:$0xff]  }
 0x3b1   :  { %5355 = vmatpush1.bf16.msra.mxu0 %v12809_v14  ;;  %v12883_v14 = vld [vmem:[#allocation8 + $0xc24] ss:$16 sps:$4 sm:$0xff]  }
 0x3b2   :  { %5501 = vmatpush1.bf16.msra.mxu1 %v12812_v18  ;;  %5356 = vmatprep.subr.bf16.mxu0 %v12817_v23  ;;  %v12886_v18 = vld [vmem:[#allocation8 + $0xc2c] ss:$16 sps:$4 sm:$0xff]   ;;  %v12881_v23 = vld [vmem:[#allocation8 + $0xc20] ss:$16 sps:$4 sm:$0xff]  }
 0x3b3   :  { %5334 = vmatmul.mubr.bf16.gmra.mrb[44].mxu0 %v14689_v57  ;;  %5502 = vmatprep.subr.bf16.mxu1 %v12820_v3  ;;  %v12884_v3 = vld [vmem:[#allocation8 + $0xc28] ss:$16 sps:$4 sm:$0xff]  }
 0x3b4   :  { %5480 = vmatmul.mubr.bf16.gmra.mrb[76].mxu1 %v14689_v57  ;;  %5376 = vmatprep.mubr.bf16.mxu0 %v14715_v24  ;;  %v12838_v57 = vld [vmem:[#allocation8 + $0xb2c] ss:$16 sps:$4 sm:$0xff]  }
 0x3b5   :  { %5357 = vmatpush1.bf16.msra.mxu0 %v12815_v17  ;;  %5522 = vmatprep.mubr.bf16.mxu1 %v14715_v24  ;;  %v12836_v24 = vld [vmem:[#allocation8 + $0xb28] ss:$16 sps:$4 sm:$0xff]   ;;  %v12889_v17 = vld [vmem:[#allocation8 + $0xc44] ss:$16 sps:$4 sm:$0xff]  }
 0x3b6   :  { %5503 = vmatpush1.bf16.msra.mxu1 %v12818_v63  ;;  %5358 = vmatprep.subr.bf16.mxu0 %v12823_v61  ;;  %v12892_v63 = vld [vmem:[#allocation8 + $0xc4c] ss:$16 sps:$4 sm:$0xff]   ;;  %v12887_v61 = vld [vmem:[#allocation8 + $0xc40] ss:$16 sps:$4 sm:$0xff]  }
 0x3b7   :  { %5504 = vmatprep.subr.bf16.mxu1 %v12826_v37  ;;  %v12890_v37 = vld [vmem:[#allocation8 + $0xc48] ss:$16 sps:$4 sm:$0xff]  }
 0x3b9   :  { %5359 = vmatpush1.bf16.msra.mxu0 %v12821_v60  ;;  %v12895_v60 = vld [vmem:[#allocation8 + $0xc64] ss:$16 sps:$4 sm:$0xff]  }
 0x3ba   :  { %5505 = vmatpush1.bf16.msra.mxu1 %v12824_v41  ;;  %5360 = vmatprep.subr.bf16.mxu0 %v12829_v25  ;;  %v12896_v41 = vld [vmem:[#allocation8 + $0xc68] ss:$16 sps:$4 sm:$0xff]   ;;  %v12901_v25 = vld [vmem:[#allocation8 + $0xc84] ss:$16 sps:$4 sm:$0xff]  }
 0x3bb   :  { %5506 = vmatprep.subr.bf16.mxu1 %v12832_v8  ;;  %v12904_v8 = vld [vmem:[#allocation8 + $0xc8c] ss:$16 sps:$4 sm:$0xff]  }
 0x3bd   :  { %5361 = vmatpush1.bf16.msra.mxu0 %v12827_v45  ;;  %v12899_v45 = vld [vmem:[#allocation8 + $0xc80] ss:$16 sps:$4 sm:$0xff]  }
 0x3be   :  { %5507 = vmatpush1.bf16.msra.mxu1 %v12830_v16  ;;  %5362 = vmatprep.subr.bf16.mxu0 %v12835_v20  ;;  %v12902_v16 = vld [vmem:[#allocation8 + $0xc88] ss:$16 sps:$4 sm:$0xff]   ;;  %v12907_v20 = vld [vmem:[#allocation8 + $0xca4] ss:$16 sps:$4 sm:$0xff]  }
 0x3bf   :  { %5508 = vmatprep.subr.bf16.mxu1 %v12838_v57  ;;  %v12908_v57 = vld [vmem:[#allocation8 + $0xca8] ss:$16 sps:$4 sm:$0xff]  }
 0x3c1   :  { %5363 = vmatpush1.bf16.msra.mxu0 %v12833_v50  ;;  %v12913_v50 = vld [vmem:[#allocation8 + $0xcc4] ss:$16 sps:$4 sm:$0xff]  }
 0x3c2   :  { %5509 = vmatpush1.bf16.msra.mxu1 %v12836_v24  ;;  %5364 = vmatprep.subr.bf16.mxu0 %v12841_v10  ;;  %v12916_v24 = vld [vmem:[#allocation8 + $0xccc] ss:$16 sps:$4 sm:$0xff]   ;;  %v12911_v10 = vld [vmem:[#allocation8 + $0xcc0] ss:$16 sps:$4 sm:$0xff]  }
 0x3c3   :  { %5510 = vmatprep.subr.bf16.mxu1 %v12844_v30  ;;  %v12914_v30 = vld [vmem:[#allocation8 + $0xcc8] ss:$16 sps:$4 sm:$0xff]  }
 0x3c5   :  { %5365 = vmatpush1.bf16.msra.mxu0 %v12839_v54  ;;  %v12919_v54 = vld [vmem:[#allocation8 + $0xce4] ss:$16 sps:$4 sm:$0xff]  }
 0x3c6   :  { %5511 = vmatpush1.bf16.msra.mxu1 %v12842_v52  ;;  %5366 = vmatprep.subr.bf16.mxu0 %v12847_v35  ;;  %v12920_v52 = vld [vmem:[#allocation8 + $0xce8] ss:$16 sps:$4 sm:$0xff]   ;;  %v12925_v35 = vld [vmem:[#allocation8 + $0xd04] ss:$16 sps:$4 sm:$0xff]  }
 0x3c7   :  { %5512 = vmatprep.subr.bf16.mxu1 %v12850_v32  ;;  %v12928_v32 = vld [vmem:[#allocation8 + $0xd0c] ss:$16 sps:$4 sm:$0xff]  }
 0x3c9   :  { %5367 = vmatpush1.bf16.msra.mxu0 %v12845_v33  ;;  %v12923_v33 = vld [vmem:[#allocation8 + $0xd00] ss:$16 sps:$4 sm:$0xff]  }
 0x3ca   :  { %5513 = vmatpush1.bf16.msra.mxu1 %v12848_v49  ;;  %5368 = vmatprep.subr.bf16.mxu0 %v12853_v0  ;;  %v12926_v49 = vld [vmem:[#allocation8 + $0xd08] ss:$16 sps:$4 sm:$0xff]   ;;  %v12931_v0 = vld [vmem:[#allocation8 + $0xd24] ss:$16 sps:$4 sm:$0xff]  }
 0x3cb   :  { %5514 = vmatprep.subr.bf16.mxu1 %v12856_v40  ;;  %v12929_v40 = vld [vmem:[#allocation8 + $0xd20] ss:$16 sps:$4 sm:$0xff]  }
 0x3cd   :  { %5369 = vmatpush1.bf16.msra.mxu0 %v12851_v11  ;;  %v12937_v11 = vld [vmem:[#allocation8 + $0xd44] ss:$16 sps:$4 sm:$0xff]  }
 0x3ce   :  { %5515 = vmatpush1.bf16.msra.mxu1 %v12854_v38  ;;  %5370 = vmatprep.subr.bf16.mxu0 %v12859_v12  ;;  %v12940_v38 = vld [vmem:[#allocation8 + $0xd4c] ss:$16 sps:$4 sm:$0xff]   ;;  %v12935_v12 = vld [vmem:[#allocation8 + $0xd40] ss:$16 sps:$4 sm:$0xff]  }
 0x3cf   :  { %5516 = vmatprep.subr.bf16.mxu1 %v12862_v34  ;;  %v12938_v34 = vld [vmem:[#allocation8 + $0xd48] ss:$16 sps:$4 sm:$0xff]  }
 0x3d1   :  { %5371 = vmatpush1.bf16.msra.mxu0 %v12857_v56  ;;  %v12943_v56 = vld [vmem:[#allocation8 + $0xd64] ss:$16 sps:$4 sm:$0xff]  }
 0x3d2   :  { %5517 = vmatpush1.bf16.msra.mxu1 %v12860_v43  ;;  %5372 = vmatprep.subr.bf16.mxu0 %v12865_v28  ;;  %v12946_v43 = vld [vmem:[#allocation8 + $0xd6c] ss:$16 sps:$4 sm:$0xff]   ;;  %v12941_v28 = vld [vmem:[#allocation8 + $0xd60] ss:$16 sps:$4 sm:$0xff]  }
 0x3d3   :  { %5518 = vmatprep.subr.bf16.mxu1 %v12868_v48  ;;  %v12944_v48 = vld [vmem:[#allocation8 + $0xd68] ss:$16 sps:$4 sm:$0xff]  }
 0x3d5   :  { %5373 = vmatpush1.bf16.msra.mxu0 %v12863_v55  ;;  %v12949_v55 = vld [vmem:[#allocation8 + $0xd84] ss:$16 sps:$4 sm:$0xff]  }
 0x3d6   :  { %5519 = vmatpush1.bf16.msra.mxu1 %v12866_v58  ;;  %5374 = vmatprep.subr.bf16.mxu0 %v12871_v62  ;;  %v12952_v58 = vld [vmem:[#allocation8 + $0xd8c] ss:$16 sps:$4 sm:$0xff]   ;;  %v12947_v62 = vld [vmem:[#allocation8 + $0xd80] ss:$16 sps:$4 sm:$0xff]  }
 0x3d7   :  { %5520 = vmatprep.subr.bf16.mxu1 %v12874_v19  ;;  %v12950_v19 = vld [vmem:[#allocation8 + $0xd88] ss:$16 sps:$4 sm:$0xff]  }
 0x3d9   :  { %5375 = vmatpush1.bf16.msra.mxu0 %v12869_v44  ;;  %v12955_v44 = vld [vmem:[#allocation8 + $0xda4] ss:$16 sps:$4 sm:$0xff]  }
 0x3da   :  { %5521 = vmatpush1.bf16.msra.mxu1 %v12872_v1  ;;  %6460 = vmatprep.subr.bf16.mxu0 %v12877_v6  ;;  %v12958_v1 = vld [vmem:[#allocation8 + $0xdac] ss:$16 sps:$4 sm:$0xff]   ;;  %v12953_v6 = vld [vmem:[#allocation8 + $0xda0] ss:$16 sps:$4 sm:$0xff]  }
 0x3db   :  { %6606 = vmatprep.subr.bf16.mxu1 %v12880_v42  ;;  %v12956_v42 = vld [vmem:[#allocation8 + $0xda8] ss:$16 sps:$4 sm:$0xff]  }
 0x3dc   :  { %5377 = vmatmul.mubr.bf16.vlgmr.msra.gmra.mrb[32].mxu0 %v14713_v22 }
 0x3dd   :  { %5523 = vmatmul.mubr.bf16.vlgmr.msra.gmra.mrb[64].mxu1 %v14713_v22  ;;  %5386 = vmatprep.mubr.bf16.mxu0 %v14735_v39  ;;  %v12898_v22 = vld [vmem:[#allocation8 + $0xc6c] ss:$16 sps:$4 sm:$0xff]  }
 0x3de   :  { %5532 = vmatprep.mubr.bf16.mxu1 %v14735_v39  ;;  %6461 = vmatpush1.bf16.msra.mxu0 %v12875_v47  ;;  %v12893_v39 = vld [vmem:[#allocation8 + $0xc60] ss:$16 sps:$4 sm:$0xff]   ;;  %v12961_v47 = vld [vmem:[#allocation8 + $0xdc4] ss:$16 sps:$4 sm:$0xff]  }
 0x3df   :  { %6607 = vmatpush1.bf16.msra.mxu1 %v12878_v5  ;;  %6462 = vmatprep.subr.bf16.mxu0 %v12883_v14  ;;  %v12964_v5 = vld [vmem:[#allocation8 + $0xdcc] ss:$16 sps:$4 sm:$0xff]   ;;  %v12959_v14 = vld [vmem:[#allocation8 + $0xdc0] ss:$16 sps:$4 sm:$0xff]  }
 0x3e0   :  { %6608 = vmatprep.subr.bf16.mxu1 %v12886_v18  ;;  %v12962_v18 = vld [vmem:[#allocation8 + $0xdc8] ss:$16 sps:$4 sm:$0xff]  }
 0x3e2   :  { %6463 = vmatpush1.bf16.msra.mxu0 %v12881_v23  ;;  %v12967_v23 = vld [vmem:[#allocation8 + $0xde4] ss:$16 sps:$4 sm:$0xff]  }
 0x3e3   :  { %6609 = vmatpush1.bf16.msra.mxu1 %v12884_v3  ;;  %6464 = vmatprep.subr.bf16.mxu0 %v12889_v17  ;;  %v12970_v3 = vld [vmem:[#allocation8 + $0xdec] ss:$16 sps:$4 sm:$0xff]   ;;  %v12965_v17 = vld [vmem:[#allocation8 + $0xde0] ss:$16 sps:$4 sm:$0xff]  }
 0x3e4   :  { %5387 = vmatmul.mubr.bf16.gmra.mrb[36].mxu0 %v14733_v29  ;;  %6610 = vmatprep.subr.bf16.mxu1 %v12892_v63  ;;  %v12968_v63 = vld [vmem:[#allocation8 + $0xde8] ss:$16 sps:$4 sm:$0xff]  }
 0x3e5   :  { %5533 = vmatmul.mubr.bf16.gmra.mrb[68].mxu1 %v14733_v29  ;;  %5396 = vmatprep.mubr.bf16.mxu0 %v14755_v31  ;;  %v12910_v29 = vld [vmem:[#allocation8 + $0xcac] ss:$16 sps:$4 sm:$0xff]  }
 0x3e6   :  { %5542 = vmatprep.mubr.bf16.mxu1 %v14755_v31  ;;  %6465 = vmatpush1.bf16.msra.mxu0 %v12887_v61  ;;  %v12905_v31 = vld [vmem:[#allocation8 + $0xca0] ss:$16 sps:$4 sm:$0xff]   ;;  %v12973_v61 = vld [vmem:[#allocation8 + $0xe04] ss:$16 sps:$4 sm:$0xff]  }
 0x3e7   :  { %6611 = vmatpush1.bf16.msra.mxu1 %v12890_v37  ;;  %6466 = vmatprep.subr.bf16.mxu0 %v12895_v60  ;;  %v12976_v37 = vld [vmem:[#allocation8 + $0xe0c] ss:$16 sps:$4 sm:$0xff]   ;;  %v12971_v60 = vld [vmem:[#allocation8 + $0xe00] ss:$16 sps:$4 sm:$0xff]  }
 0x3e8   :  { %6612 = vmatprep.subr.bf16.mxu1 %v12898_v22  ;;  %v12974_v22 = vld [vmem:[#allocation8 + $0xe08] ss:$16 sps:$4 sm:$0xff]  }
 0x3ea   :  { %6467 = vmatpush1.bf16.msra.mxu0 %v12893_v39  ;;  %v12979_v39 = vld [vmem:[#allocation8 + $0xe24] ss:$16 sps:$4 sm:$0xff]  }
 0x3eb   :  { %6613 = vmatpush1.bf16.msra.mxu1 %v12896_v41  ;;  %6468 = vmatprep.subr.bf16.mxu0 %v12901_v25  ;;  %v12982_v41 = vld [vmem:[#allocation8 + $0xe2c] ss:$16 sps:$4 sm:$0xff]   ;;  %v12977_v25 = vld [vmem:[#allocation8 + $0xe20] ss:$16 sps:$4 sm:$0xff]  }
 0x3ec   :  { %5397 = vmatmul.mubr.bf16.gmra.mrb[40].mxu0 %v14753_v51  ;;  %6614 = vmatprep.subr.bf16.mxu1 %v12904_v8  ;;  %v12980_v8 = vld [vmem:[#allocation8 + $0xe28] ss:$16 sps:$4 sm:$0xff]  }
 0x3ed   :  { %5543 = vmatmul.mubr.bf16.gmra.mrb[72].mxu1 %v14753_v51  ;;  %5406 = vmatprep.mubr.bf16.mxu0 %v14777_v36  ;;  %v12922_v51 = vld [vmem:[#allocation8 + $0xcec] ss:$16 sps:$4 sm:$0xff]  }
 0x3ee   :  { %5552 = vmatprep.mubr.bf16.mxu1 %v14777_v36  ;;  %6469 = vmatpush1.bf16.msra.mxu0 %v12899_v45  ;;  %v12917_v36 = vld [vmem:[#allocation8 + $0xce0] ss:$16 sps:$4 sm:$0xff]   ;;  %v12985_v45 = vld [vmem:[#allocation8 + $0xe44] ss:$16 sps:$4 sm:$0xff]  }
 0x3ef   :  { %6615 = vmatpush1.bf16.msra.mxu1 %v12902_v16  ;;  %6470 = vmatprep.subr.bf16.mxu0 %v12907_v20  ;;  %v12988_v16 = vld [vmem:[#allocation8 + $0xe4c] ss:$16 sps:$4 sm:$0xff]   ;;  %v12983_v20 = vld [vmem:[#allocation8 + $0xe40] ss:$16 sps:$4 sm:$0xff]  }
 0x3f0   :  { %6616 = vmatprep.subr.bf16.mxu1 %v12910_v29  ;;  %v12986_v29 = vld [vmem:[#allocation8 + $0xe48] ss:$16 sps:$4 sm:$0xff]  }
 0x3f2   :  { %6471 = vmatpush1.bf16.msra.mxu0 %v12905_v31  ;;  %v12991_v31 = vld [vmem:[#allocation8 + $0xe64] ss:$16 sps:$4 sm:$0xff]  }
 0x3f3   :  { %6617 = vmatpush1.bf16.msra.mxu1 %v12908_v57  ;;  %6472 = vmatprep.subr.bf16.mxu0 %v12913_v50  ;;  %v12992_v57 = vld [vmem:[#allocation8 + $0xe68] ss:$16 sps:$4 sm:$0xff]   ;;  %v12997_v50 = vld [vmem:[#allocation8 + $0xe84] ss:$16 sps:$4 sm:$0xff]  }
 0x3f4   :  { %5407 = vmatmul.mubr.bf16.gmra.mrb[44].mxu0 %v14775_v13  ;;  %6618 = vmatprep.subr.bf16.mxu1 %v12916_v24  ;;  %v13000_v24 = vld [vmem:[#allocation8 + $0xe8c] ss:$16 sps:$4 sm:$0xff]  }
 0x3f5   :  { %5553 = vmatmul.mubr.bf16.gmra.mrb[76].mxu1 %v14775_v13  ;;  %6492 = vmatprep.mubr.bf16.mxu0 %v14570_v46  ;;  %v12934_v13 = vld [vmem:[#allocation8 + $0xd2c] ss:$16 sps:$4 sm:$0xff]  }
 0x3f6   :  { %6473 = vmatpush1.bf16.msra.mxu0 %v12911_v10  ;;  %6638 = vmatprep.mubr.bf16.mxu1 %v14570_v46  ;;  %v12932_v46 = vld [vmem:[#allocation8 + $0xd28] ss:$16 sps:$4 sm:$0xff]   ;;  %v12995_v10 = vld [vmem:[#allocation8 + $0xe80] ss:$16 sps:$4 sm:$0xff]  }
 0x3f7   :  { %6619 = vmatpush1.bf16.msra.mxu1 %v12914_v30  ;;  %6474 = vmatprep.subr.bf16.mxu0 %v12919_v54  ;;  %v12998_v30 = vld [vmem:[#allocation8 + $0xe88] ss:$16 sps:$4 sm:$0xff]   ;;  %v13003_v54 = vld [vmem:[#allocation8 + $0xea4] ss:$16 sps:$4 sm:$0xff]  }
 0x3f8   :  { %6620 = vmatprep.subr.bf16.mxu1 %v12922_v51  ;;  %v13001_v51 = vld [vmem:[#allocation8 + $0xea0] ss:$16 sps:$4 sm:$0xff]  }
 0x3fa   :  { %6475 = vmatpush1.bf16.msra.mxu0 %v12917_v36  ;;  %v13004_v36 = vld [vmem:[#allocation8 + $0xea8] ss:$16 sps:$4 sm:$0xff]  }
 0x3fb   :  { %6621 = vmatpush1.bf16.msra.mxu1 %v12920_v52  ;;  %6476 = vmatprep.subr.bf16.mxu0 %v12925_v35  ;;  %v13009_v52 = vld [vmem:[#allocation8 + $0xec4] ss:$16 sps:$4 sm:$0xff]   ;;  %v13012_v35 = vld [vmem:[#allocation8 + $0xecc] ss:$16 sps:$4 sm:$0xff]  }
 0x3fc   :  { %6622 = vmatprep.subr.bf16.mxu1 %v12928_v32  ;;  %v10995_v32 = vcombine.low %v14687_v59, %v15071_v9 }
 0x3fe   :  { %6477 = vmatpush1.bf16.msra.mxu0 %v12923_v33  ;;  %v13007_v33 = vld [vmem:[#allocation8 + $0xec0] ss:$16 sps:$4 sm:$0xff]  }
 0x3ff   :  { %6623 = vmatpush1.bf16.msra.mxu1 %v12926_v49  ;;  %6478 = vmatprep.subr.bf16.mxu0 %v12931_v0  ;;  %v13010_v49 = vld [vmem:[#allocation8 + $0xec8] ss:$16 sps:$4 sm:$0xff]   ;;  %v13015_v0 = vld [vmem:[#allocation8 + $0xee4] ss:$16 sps:$4 sm:$0xff]  }
 0x400   :  { %6624 = vmatprep.subr.bf16.mxu1 %v12934_v13  ;;  %v13013_v13 = vld [vmem:[#allocation8 + $0xee0] ss:$16 sps:$4 sm:$0xff]  }
 0x402   :  { %6479 = vmatpush1.bf16.msra.mxu0 %v12929_v40  ;;  %v13016_v40 = vld [vmem:[#allocation8 + $0xee8] ss:$16 sps:$4 sm:$0xff]  }
 0x403   :  { %6625 = vmatpush1.bf16.msra.mxu1 %v12932_v46  ;;  %6480 = vmatprep.subr.bf16.mxu0 %v12937_v11  ;;  %v13021_v46 = vld [vmem:[#allocation8 + $0xf04] ss:$16 sps:$4 sm:$0xff]   ;;  %v13019_v11 = vld [vmem:[#allocation8 + $0xf00] ss:$16 sps:$4 sm:$0xff]  }
 0x404   :  { %6626 = vmatprep.subr.bf16.mxu1 %v12940_v38  ;;  %v13022_v38 = vld [vmem:[#allocation8 + $0xf08] ss:$16 sps:$4 sm:$0xff]  }
 0x406   :  { %6481 = vmatpush1.bf16.msra.mxu0 %v12935_v12  ;;  %v13027_v12 = vld [vmem:[#allocation8 + $0xf24] ss:$16 sps:$4 sm:$0xff]  }
 0x407   :  { %6627 = vmatpush1.bf16.msra.mxu1 %v12938_v34  ;;  %6482 = vmatprep.subr.bf16.mxu0 %v12943_v56  ;;  %v13030_v34 = vld [vmem:[#allocation8 + $0xf2c] ss:$16 sps:$4 sm:$0xff]   ;;  %v13025_v56 = vld [vmem:[#allocation8 + $0xf20] ss:$16 sps:$4 sm:$0xff]  }
 0x408   :  { %6628 = vmatprep.subr.bf16.mxu1 %v12946_v43  ;;  %v13033_v43 = vld [vmem:[#allocation8 + $0xf44] ss:$16 sps:$4 sm:$0xff]  }
 0x40a   :  { %6483 = vmatpush1.bf16.msra.mxu0 %v12941_v28  ;;  %v13036_v28 = vld [vmem:[#allocation8 + $0xf4c] ss:$16 sps:$4 sm:$0xff]  }
 0x40b   :  { %6629 = vmatpush1.bf16.msra.mxu1 %v12944_v48  ;;  %6484 = vmatprep.subr.bf16.mxu0 %v12949_v55  ;;  %v13031_v48 = vld [vmem:[#allocation8 + $0xf40] ss:$16 sps:$4 sm:$0xff]   ;;  %v13034_v55 = vld [vmem:[#allocation8 + $0xf48] ss:$16 sps:$4 sm:$0xff]  }
 0x40c   :  { %6630 = vmatprep.subr.bf16.mxu1 %v12952_v58  ;;  %v13039_v58 = vld [vmem:[#allocation8 + $0xf64] ss:$16 sps:$4 sm:$0xff]  }
 0x40e   :  { %6485 = vmatpush1.bf16.msra.mxu0 %v12947_v62  ;;  %v13042_v62 = vld [vmem:[#allocation8 + $0xf6c] ss:$16 sps:$4 sm:$0xff]  }
 0x40f   :  { %6631 = vmatpush1.bf16.msra.mxu1 %v12950_v19  ;;  %6486 = vmatprep.subr.bf16.mxu0 %v12955_v44  ;;  %v13037_v19 = vld [vmem:[#allocation8 + $0xf60] ss:$16 sps:$4 sm:$0xff]   ;;  %v13040_v44 = vld [vmem:[#allocation8 + $0xf68] ss:$16 sps:$4 sm:$0xff]  }
 0x410   :  { %6632 = vmatprep.subr.bf16.mxu1 %v12958_v1  ;;  %v13045_v1 = vld [vmem:[#allocation8 + $0xf84] ss:$16 sps:$4 sm:$0xff]  }
 0x412   :  { %6487 = vmatpush1.bf16.msra.mxu0 %v12953_v6  ;;  %v13048_v6 = vld [vmem:[#allocation8 + $0xf8c] ss:$16 sps:$4 sm:$0xff]  }
 0x413   :  { %6633 = vmatpush1.bf16.msra.mxu1 %v12956_v42  ;;  %6488 = vmatprep.subr.bf16.mxu0 %v12961_v47  ;;  %v13043_v42 = vld [vmem:[#allocation8 + $0xf80] ss:$16 sps:$4 sm:$0xff]   ;;  %v13046_v47 = vld [vmem:[#allocation8 + $0xf88] ss:$16 sps:$4 sm:$0xff]  }
 0x414   :  { %6634 = vmatprep.subr.bf16.mxu1 %v12964_v5  ;;  %v13051_v5 = vld [vmem:[#allocation8 + $0xfa4] ss:$16 sps:$4 sm:$0xff]  }
 0x416   :  { %6489 = vmatpush1.bf16.msra.mxu0 %v12959_v14  ;;  %v13054_v14 = vld [vmem:[#allocation8 + $0xfac] ss:$16 sps:$4 sm:$0xff]  }
 0x417   :  { %6635 = vmatpush1.bf16.msra.mxu1 %v12962_v18  ;;  %6490 = vmatprep.subr.bf16.mxu0 %v12967_v23  ;;  %v13049_v18 = vld [vmem:[#allocation8 + $0xfa0] ss:$16 sps:$4 sm:$0xff]   ;;  %v13052_v23 = vld [vmem:[#allocation8 + $0xfa8] ss:$16 sps:$4 sm:$0xff]  }
 0x418   :  { %6636 = vmatprep.subr.bf16.mxu1 %v12970_v3  ;;  %v13057_v3 = vld [vmem:[#allocation8 + $0xfc4] ss:$16 sps:$4 sm:$0xff]  }
 0x41a   :  { %6491 = vmatpush1.bf16.msra.mxu0 %v12965_v17  ;;  %v13060_v17 = vld [vmem:[#allocation8 + $0xfcc] ss:$16 sps:$4 sm:$0xff]  }
 0x41b   :  { %6637 = vmatpush1.bf16.msra.mxu1 %v12968_v63  ;;  %6533 = vmatprep.subr.bf16.mxu0 %v12973_v61  ;;  %v13055_v63 = vld [vmem:[#allocation8 + $0xfc0] ss:$16 sps:$4 sm:$0xff]   ;;  %v13058_v61 = vld [vmem:[#allocation8 + $0xfc8] ss:$16 sps:$4 sm:$0xff]  }
 0x41c   :  { %6679 = vmatprep.subr.bf16.mxu1 %v12976_v37  ;;  %v13063_v37 = vld [vmem:[#allocation8 + $0xfe4] ss:$16 sps:$4 sm:$0xff]  }
 0x41d   :  { %6493 = vmatmul.mubr.bf16.vlgmr.msra.gmra.mrb[32].mxu0 %v14566_v7 }
 0x41e   :  { %6639 = vmatmul.mubr.bf16.vlgmr.msra.gmra.mrb[64].mxu1 %v14566_v7  ;;  %6502 = vmatprep.mubr.bf16.mxu0 %v14626_v4  ;;  %v12994_v7 = vld [vmem:[#allocation8 + $0xe6c] ss:$16 sps:$4 sm:$0xff]  }
 0x41f   :  { %6534 = vmatpush1.bf16.msra.mxu0 %v12971_v60  ;;  %6648 = vmatprep.mubr.bf16.mxu1 %v14626_v4  ;;  %v12989_v4 = vld [vmem:[#allocation8 + $0xe60] ss:$16 sps:$4 sm:$0xff]   ;;  %v13066_v60 = vld [vmem:[#allocation8 + $0xfec] ss:$16 sps:$4 sm:$0xff]  }
 0x420   :  { %6680 = vmatpush1.bf16.msra.mxu1 %v12974_v22  ;;  %6535 = vmatprep.subr.bf16.mxu0 %v12979_v39  ;;  %v13061_v22 = vld [vmem:[#allocation8 + $0xfe0] ss:$16 sps:$4 sm:$0xff]   ;;  %v13064_v39 = vld [vmem:[#allocation8 + $0xfe8] ss:$16 sps:$4 sm:$0xff]  }
 0x421   :  { %6681 = vmatprep.subr.bf16.mxu1 %v12982_v41  ;;  %v13069_v41 = vld [vmem:[#allocation11 + $0x204] ss:$8 sps:$4 sm:$0xff]  }
 0x423   :  { %6536 = vmatpush1.bf16.msra.mxu0 %v12977_v25  ;;  %v13067_v25 = vld [vmem:[#allocation11 + $0x200] ss:$8 sps:$4 sm:$0xff]  }
 0x424   :  { %6682 = vmatpush1.bf16.msra.mxu1 %v12980_v8  ;;  %6537 = vmatprep.subr.bf16.mxu0 %v12985_v45  ;;  %v13072_v8 = vld [vmem:[#allocation11 + $0x214] ss:$8 sps:$4 sm:$0xff]   ;;  %v15072_v45 = vld [vmem:[#allocation30_spill] sm:$0xff] }
 0x425   :  { %6503 = vmatmul.mubr.bf16.gmra.mrb[36].mxu0 %v14624_v21  ;;  %6683 = vmatprep.subr.bf16.mxu1 %v12988_v16  ;;  %v13070_v16 = vld [vmem:[#allocation11 + $0x210] ss:$8 sps:$4 sm:$0xff]  }
 0x426   :  { %6649 = vmatmul.mubr.bf16.gmra.mrb[68].mxu1 %v14624_v21  ;;  %6512 = vmatprep.mubr.bf16.mxu0 %v14672_v26  ;;  %v10996_v21 = vcombine.high %v14687_v59, %v15071_v9  ;;  %v13024_v59 = vld [vmem:[#allocation8 + $0xf0c] ss:$16 sps:$4 sm:$0xff]  }
 0x427   :  { %6538 = vmatpush1.bf16.msra.mxu0 %v12983_v20  ;;  %6658 = vmatprep.mubr.bf16.mxu1 %v14672_v26  ;;  %v13006_v26 = vld [vmem:[#allocation8 + $0xeac] ss:$16 sps:$4 sm:$0xff]   ;;  %v13075_v20 = vld [vmem:[#allocation11 + $0x224] ss:$8 sps:$4 sm:$0xff]  }
 0x428   :  { %6684 = vmatpush1.bf16.msra.mxu1 %v12986_v29  ;;  %6539 = vmatprep.subr.bf16.mxu0 %v12991_v31  ;;  %v13073_v29 = vld [vmem:[#allocation11 + $0x220] ss:$8 sps:$4 sm:$0xff]   ;;  %v13078_v31 = vld [vmem:[#allocation11 + $0x234] ss:$8 sps:$4 sm:$0xff]  }
 0x429   :  { %6685 = vmatprep.subr.bf16.mxu1 %v12994_v7  ;;  %v15073_v7 = vld [vmem:[#allocation29_spill] sm:$0xff] }
 0x42b   :  { %6540 = vmatpush1.bf16.msra.mxu0 %v12989_v4  ;;  %v15074_v4 = vld [vmem:[#allocation32_spill] sm:$0xff] }
 0x42c   :  { %6686 = vmatpush1.bf16.msra.mxu1 %v12992_v57  ;;  %6541 = vmatprep.subr.bf16.mxu0 %v12997_v50  ;;  %v13081_v57 = vld [vmem:[#allocation11 + $0x244] ss:$8 sps:$4 sm:$0xff]   ;;  %v13079_v50 = vld [vmem:[#allocation11 + $0x240] ss:$8 sps:$4 sm:$0xff]  }
 0x42d   :  { %6513 = vmatmul.mubr.bf16.gmra.mrb[40].mxu0 %v14670_v2  ;;  %6687 = vmatprep.subr.bf16.mxu1 %v13000_v24  ;;  %v10998_v24 = vcombine.high %v14773_v53, %v15071_v9 }
 0x42e   :  { %6659 = vmatmul.mubr.bf16.gmra.mrb[72].mxu1 %v14670_v2  ;;  %6522 = vmatprep.mubr.bf16.mxu0 %v10996_v21  ;;  %v13018_v2 = vld [vmem:[#allocation8 + $0xeec] ss:$16 sps:$4 sm:$0xff]  }
 0x42f   :  { %6542 = vmatpush1.bf16.msra.mxu0 %v12995_v10  ;;  %6668 = vmatprep.mubr.bf16.mxu1 %v10996_v21  ;;  %v13084_v10 = vld [vmem:[#allocation11 + $0x254] ss:$8 sps:$4 sm:$0xff]   ;;  %v13082_v21 = vld [vmem:[#allocation11 + $0x250] ss:$8 sps:$4 sm:$0xff]  }
 0x430   :  { %6688 = vmatpush1.bf16.msra.mxu1 %v12998_v30  ;;  %6543 = vmatprep.subr.bf16.mxu0 %v13003_v54  ;;  %v15075_v30 = vld [vmem:[#allocation31_spill] sm:$0xff] }
 0x431   :  { %6689 = vmatprep.subr.bf16.mxu1 %v13006_v26  ;;  %v13087_v54 = vld [vmem:[#allocation11 + $0x264] ss:$8 sps:$4 sm:$0xff]   ;;  %v10997_v26 = vcombine.low %v14773_v53, %v15071_v9  ;;  %v13097_v53 = vld [vmem:[#allocation11 + $0x2a0] ss:$8 sps:$4 sm:$0xff]  }
 0x433   :  { %6544 = vmatpush1.bf16.msra.mxu0 %v13001_v51  ;;  %v13085_v51 = vld [vmem:[#allocation11 + $0x260] ss:$8 sps:$4 sm:$0xff]  }
 0x434   :  { %6690 = vmatpush1.bf16.msra.mxu1 %v13004_v36  ;;  %6545 = vmatprep.subr.bf16.mxu0 %v13009_v52  ;;  %v13090_v36 = vld [vmem:[#allocation11 + $0x274] ss:$8 sps:$4 sm:$0xff]   ;;  %v13088_v52 = vld [vmem:[#allocation11 + $0x270] ss:$8 sps:$4 sm:$0xff]  }
 0x435   :  { %6523 = vmatmul.mubr.bf16.gmra.mrb[44].mxu0 %v10995_v32  ;;  %6691 = vmatprep.subr.bf16.mxu1 %v13012_v35  ;;  %v13093_v35 = vld [vmem:[#allocation11 + $0x284] ss:$8 sps:$4 sm:$0xff]  }
 0x436   :  { %6669 = vmatmul.mubr.bf16.gmra.mrb[76].mxu1 %v10995_v32  ;;  %6565 = vmatprep.mubr.bf16.mxu0 %v14723_v27  ;;  %v13091_v32 = vld [vmem:[#allocation11 + $0x280] ss:$8 sps:$4 sm:$0xff]  }
 0x437   :  { %6546 = vmatpush1.bf16.msra.mxu0 %v13007_v33  ;;  %6711 = vmatprep.mubr.bf16.mxu1 %v14723_v27  ;;  %v13028_v27 = vld [vmem:[#allocation8 + $0xf28] ss:$16 sps:$4 sm:$0xff]  }
 0x438   :  { %6692 = vmatpush1.bf16.msra.mxu1 %v13010_v49  ;;  %6547 = vmatprep.subr.bf16.mxu0 %v13015_v0  ;;  %v13096_v33 = vld [vmem:[#allocation11 + $0x294] ss:$8 sps:$4 sm:$0xff]   ;;  %v13094_v49 = vld [vmem:[#allocation11 + $0x290] ss:$8 sps:$4 sm:$0xff]   ;;  %v13099_v0 = vld [vmem:[#allocation11 + $0x2a4] ss:$8 sps:$4 sm:$0xff]  }
 0x439   :  { %6693 = vmatprep.subr.bf16.mxu1 %v13018_v2  ;;  %v13102_v2 = vld [vmem:[#allocation11 + $0x2b4] ss:$8 sps:$4 sm:$0xff]  }
 0x43b   :  { %6548 = vmatpush1.bf16.msra.mxu0 %v13013_v13  ;;  %v13100_v13 = vld [vmem:[#allocation11 + $0x2b0] ss:$8 sps:$4 sm:$0xff]  }
 0x43c   :  { %6694 = vmatpush1.bf16.msra.mxu1 %v13016_v40  ;;  %6549 = vmatprep.subr.bf16.mxu0 %v13021_v46  ;;  %v13105_v40 = vld [vmem:[#allocation11 + $0x2c4] ss:$8 sps:$4 sm:$0xff]   ;;  %v13103_v46 = vld [vmem:[#allocation11 + $0x2c0] ss:$8 sps:$4 sm:$0xff]  }
 0x43d   :  { %6695 = vmatprep.subr.bf16.mxu1 %v13024_v59  ;;  %v13108_v59 = vld [vmem:[#allocation11 + $0x2d4] ss:$8 sps:$4 sm:$0xff]  }
 0x43f   :  { %6550 = vmatpush1.bf16.msra.mxu0 %v13019_v11  ;;  %v13106_v11 = vld [vmem:[#allocation11 + $0x2d0] ss:$8 sps:$4 sm:$0xff]  }
 0x440   :  { %6696 = vmatpush1.bf16.msra.mxu1 %v13022_v38  ;;  %6551 = vmatprep.subr.bf16.mxu0 %v13027_v12  ;;  %v13111_v38 = vld [vmem:[#allocation11 + $0x2e4] ss:$8 sps:$4 sm:$0xff]   ;;  %v13109_v12 = vld [vmem:[#allocation11 + $0x2e0] ss:$8 sps:$4 sm:$0xff]  }
 0x441   :  { %6697 = vmatprep.subr.bf16.mxu1 %v13030_v34  ;;  %v13114_v34 = vld [vmem:[#allocation11 + $0x2f4] ss:$8 sps:$4 sm:$0xff]  }
 0x443   :  { %6552 = vmatpush1.bf16.msra.mxu0 %v13025_v56  ;;  %v13112_v56 = vld [vmem:[#allocation11 + $0x2f0] ss:$8 sps:$4 sm:$0xff]  }
 0x444   :  { %6698 = vmatpush1.bf16.msra.mxu1 %v13028_v27  ;;  %6553 = vmatprep.subr.bf16.mxu0 %v13033_v43  ;;  %v13117_v27 = vld [vmem:[#allocation11 + $0x304] ss:$8 sps:$4 sm:$0xff]   ;;  %v6784_v43 = vld [vmem:[#allocation9] sm:$0xf] }
 0x445   :  { %6699 = vmatprep.subr.bf16.mxu1 %v13036_v28  ;;  %v15076_v28 = vld [vmem:[#allocation26_spill] sm:$0xff] }
 0x447   :  { %6554 = vmatpush1.bf16.msra.mxu0 %v13031_v48  ;;  %v15077_v48 = vsub.s32 2, %v15076_v28 }
 0x448   :  { %6700 = vmatpush1.bf16.msra.mxu1 %v13034_v55  ;;  %6555 = vmatprep.subr.bf16.mxu0 %v13039_v58 }
 0x449   :  { %6701 = vmatprep.subr.bf16.mxu1 %v13042_v62  ;;  %v14877_v55 = vrot.slane %v6784_v43, %v15077_v48  ;;  %v15078_v62 = vld [vmem:[#allocation27_spill] sm:$0xff] }
 0x44b   :  { %6556 = vmatpush1.bf16.msra.mxu0 %v13037_v19  ;;  %v14880_v19 = vrot.slane %v6784_v43, %v15078_v62 }
 0x44c   :  { %6702 = vmatpush1.bf16.msra.mxu1 %v13040_v44  ;;  %6557 = vmatprep.subr.bf16.mxu0 %v13045_v1 }
 0x44d   :  { %6703 = vmatprep.subr.bf16.mxu1 %v13048_v6 }
 0x44f   :  { %6558 = vmatpush1.bf16.msra.mxu0 %v13043_v42  ;;  %v15079_v42 = vld [vmem:[#allocation28_spill] sm:$0xff] }
 0x450   :  { %6704 = vmatpush1.bf16.msra.mxu1 %v13046_v47  ;;  %6559 = vmatprep.subr.bf16.mxu0 %v13051_v5  ;;  %v14884_v47 = vrot.slane %v6784_v43, %v15079_v42 }
 0x451   :  { %6705 = vmatprep.subr.bf16.mxu1 %v13054_v14 }
 0x453   :  { %6560 = vmatpush1.bf16.msra.mxu0 %v13049_v18  ;;  %v15080_v18 = vsub.s32 3, %v15076_v28 }
 0x454   :  { %6706 = vmatpush1.bf16.msra.mxu1 %v13052_v23  ;;  %6561 = vmatprep.subr.bf16.mxu0 %v13057_v3 }
 0x455   :  { %6707 = vmatprep.subr.bf16.mxu1 %v13060_v17  ;;  %v14888_v23 = vrot.slane %v6784_v43, %v15080_v18 }
 0x457   :  { %6562 = vmatpush1.bf16.msra.mxu0 %v13055_v63 }
 0x458   :  { %6708 = vmatpush1.bf16.msra.mxu1 %v13058_v61  ;;  %6563 = vmatprep.subr.bf16.mxu0 %v13063_v37 }
 0x459   :  { %6709 = vmatprep.subr.bf16.mxu1 %v13066_v60 }
 0x45b   :  { %6564 = vmatpush1.bf16.msra.mxu0 %v13061_v22 }
 0x45c   :  { %6710 = vmatpush1.bf16.msra.mxu1 %v13064_v39  ;;  %7492 = vmatprep.subr.bf16.mxu0 %v13069_v41 }
 0x45e   :  { %6566 = vmatmul.mubr.bf16.vlgmr.msra.gmra.mrb[32].mxu0 %v14721_v15 }
 0x45f   :  { %6712 = vmatmul.mubr.bf16.vlgmr.msra.gmra.mrb[64].mxu1 %v14721_v15  ;;  %6575 = vmatprep.mubr.bf16.mxu0 %v15072_v45  ;;  %v13076_v15 = vld [vmem:[#allocation11 + $0x230] ss:$8 sps:$4 sm:$0xff]  }
 0x460   :  { %6721 = vmatprep.mubr.bf16.mxu1 %v15072_v45  ;;  %7493 = vmatpush1.bf16.msra.mxu0 %v13067_v25 }
 0x461   :  { %7494 = vmatprep.subr.bf16.mxu0 %v13072_v8 }
 0x464   :  { %7495 = vmatpush1.bf16.msra.mxu0 %v13070_v16 }
 0x465   :  { %7496 = vmatprep.subr.bf16.mxu0 %v13075_v20 }
 0x466   :  { %6576 = vmatmul.mubr.bf16.gmra.mrb[36].mxu0 %v15073_v7 }
 0x467   :  { %6722 = vmatmul.mubr.bf16.gmra.mrb[68].mxu1 %v15073_v7  ;;  %6585 = vmatprep.mubr.bf16.mxu0 %v15074_v4 }
 0x468   :  { %6731 = vmatprep.mubr.bf16.mxu1 %v15074_v4  ;;  %7497 = vmatpush1.bf16.msra.mxu0 %v13073_v29 }
 0x469   :  { %7498 = vmatprep.subr.bf16.mxu0 %v13078_v31 }
 0x46c   :  { %7499 = vmatpush1.bf16.msra.mxu0 %v13076_v15 }
 0x46d   :  { %7500 = vmatprep.subr.bf16.mxu0 %v13081_v57 }
 0x46e   :  { %6586 = vmatmul.mubr.bf16.gmra.mrb[40].mxu0 %v15075_v30 }
 0x46f   :  { %6732 = vmatmul.mubr.bf16.gmra.mrb[72].mxu1 %v15075_v30  ;;  %6595 = vmatprep.mubr.bf16.mxu0 %v10998_v24 }
 0x470   :  { %6741 = vmatprep.mubr.bf16.mxu1 %v10998_v24  ;;  %7501 = vmatpush1.bf16.msra.mxu0 %v13079_v50 }
 0x471   :  { %7502 = vmatprep.subr.bf16.mxu0 %v13084_v10 }
 0x474   :  { %7503 = vmatpush1.bf16.msra.mxu0 %v13082_v21 }
 0x475   :  { %7504 = vmatprep.subr.bf16.mxu0 %v13087_v54 }
 0x476   :  { %6596 = vmatmul.mubr.bf16.gmra.mrb[44].mxu0 %v10997_v26 }
 0x477   :  { %6742 = vmatmul.mubr.bf16.gmra.mrb[76].mxu1 %v10997_v26 }
 0x478   :  { %7505 = vmatpush1.bf16.msra.mxu0 %v13085_v51 }
 0x479   :  { %7506 = vmatprep.subr.bf16.mxu0 %v13090_v36 }
 0x47c   :  { %7507 = vmatpush1.bf16.msra.mxu0 %v13088_v52 }
 0x47d   :  { %7508 = vmatprep.subr.bf16.mxu0 %v13093_v35 }
 0x480   :  { %7509 = vmatpush1.bf16.msra.mxu0 %v13091_v32 }
 0x481   :  { %7510 = vmatprep.subr.bf16.mxu0 %v13096_v33 }
 0x484   :  { %7511 = vmatpush1.bf16.msra.mxu0 %v13094_v49 }
 0x485   :  { %7512 = vmatprep.subr.bf16.mxu0 %v13099_v0 }
 0x488   :  { %7513 = vmatpush1.bf16.msra.mxu0 %v13097_v53 }
 0x489   :  { %7514 = vmatprep.subr.bf16.mxu0 %v13102_v2 }
 0x48c   :  { %7515 = vmatpush1.bf16.msra.mxu0 %v13100_v13 }
 0x48d   :  { %7516 = vmatprep.subr.bf16.mxu0 %v13105_v40 }
 0x490   :  { %7517 = vmatpush1.bf16.msra.mxu0 %v13103_v46 }
 0x491   :  { %7518 = vmatprep.subr.bf16.mxu0 %v13108_v59 }
 0x494   :  { %7519 = vmatpush1.bf16.msra.mxu0 %v13106_v11 }
 0x495   :  { %7520 = vmatprep.subr.bf16.mxu0 %v13111_v38 }
 0x498   :  { %7521 = vmatpush1.bf16.msra.mxu0 %v13109_v12 }
 0x499   :  { %7522 = vmatprep.subr.bf16.mxu0 %v13114_v34 }
 0x49c   :  { %7523 = vmatpush1.bf16.msra.mxu0 %v13112_v56 }
 0x49d   :  { %7545 = vmatprep.subr.bf16.mxu0 %v13117_v27  ;;  %v13115_v27 = vld [vmem:[#allocation11 + $0x300] ss:$8 sps:$4 sm:$0xff]  }
 0x531   :  { %v6567_v58 = vpop.f32.mrb[32].mxu0 }
 0x532   :  { %v6713_v44 = vpop.f32.mrb[64].mxu1  ;;  %v6569_v1 = vpop.f32.mrb[33].mxu0  ;;  %v6806_v22 = vadd.f32 %v14880_v19, %v6567_v58  ;;  %v13120_v58 = vld [vmem:[#allocation11 + $0x314] ss:$8 sps:$4 sm:$0xff]  }
 0x533   :  { %v6808_v6 = vadd.f32 %v14877_v55, %v6713_v44  ;;  %v6715_v5 = vpop.f32.mrb[65].mxu1  ;;  %v6571_v14 = vpop.f32.mrb[34].mxu0  ;;  %v6807_v25 = vadd.f32 %v14884_v47, %v6569_v1 }
 0x534   :  { %v6810_v3 = vadd.f32 %v14880_v19, %v6571_v14  ;;  %v6717_v17 = vpop.f32.mrb[66].mxu1  ;;  %v6573_v63 = vpop.f32.mrb[35].mxu0  ;;  %v6809_v16 = vadd.f32 %v14888_v23, %v6715_v5  ;;  %v6838_v7 = vmax.f32 %v6806_v22, 0.0 }
 0x535   :  { %v6812_v61 = vadd.f32 %v14877_v55, %v6717_v17  ;;  %v6811_v37 = vadd.f32 %v14884_v47, %v6573_v63  ;;  %v6719_v60 = vpop.f32.mrb[67].mxu1  ;;  %v6840_v24 = vmax.f32 %v6808_v6, 0.0  ;;  %v6839_v10 = vmax.f32 %v6807_v25, 0.0 }
 0x536   :  { %v6842_v39 = vmax.f32 %v6810_v3, 0.0  ;;  %v6813_v41 = vadd.f32 %v14888_v23, %v6719_v60  ;;  %v6841_v51 = vmax.f32 %v6809_v16, 0.0  ;;  %v13118_v60 = vld [vmem:[#allocation11 + $0x310] ss:$8 sps:$4 sm:$0xff]  }
 0x537   :  { %v6844_v8 = vmax.f32 %v6812_v61, 0.0  ;;  %v6843_v45 = vmax.f32 %v6811_v37, 0.0 }
 0x538   :  { %v6845_v20 = vmax.f32 %v6813_v41, 0.0 }
 0x539   :  { %v14897_v29 = vpack.c.bf16 %v6843_v45, %v6842_v39  ;;  %v6577_v31 = vpop.f32.mrb[36].mxu0 }
 0x53a   :  { %v14899_v4 = vpack.c.bf16 %v6845_v20, %v6844_v8  ;;  %v6814_v15 = vadd.f32 %v14880_v19, %v6577_v31  ;;  %v6723_v57 = vpop.f32.mrb[68].mxu1  ;;  %v6579_v50 = vpop.f32.mrb[37].mxu0 }
 0x53b   :  { %v6816_v30 = vadd.f32 %v14877_v55, %v6723_v57  ;;  %v6815_v21 = vadd.f32 %v14884_v47, %v6579_v50  ;;  %v6725_v54 = vpop.f32.mrb[69].mxu1  ;;  %v6581_v26 = vpop.f32.mrb[38].mxu0 }
 0x53c   :  { %v6846_v36 = vmax.f32 %v6814_v15, 0.0  ;;  %v6817_v52 = vadd.f32 %v14888_v23, %v6725_v54  ;;  %v6818_v35 = vadd.f32 %v14880_v19, %v6581_v26  ;;  %v6727_v32 = vpop.f32.mrb[70].mxu1  ;;  %v6583_v33 = vpop.f32.mrb[39].mxu0 }
 0x53d   :  { %v6848_v49 = vmax.f32 %v6816_v30, 0.0  ;;  %v6847_v0 = vmax.f32 %v6815_v21, 0.0  ;;  %v6820_v53 = vadd.f32 %v14877_v55, %v6727_v32  ;;  %v6819_v2 = vadd.f32 %v14884_v47, %v6583_v33  ;;  %v6729_v13 = vpop.f32.mrb[71].mxu1  ;;  %v13126_v32 = vld [vmem:[#allocation11 + $0x334] ss:$8 sps:$4 sm:$0xff]  }
 0x53e   :  { %v11680_v40 = vpack.c.bf16 %v6846_v36, %v6838_v7  ;;  %v6849_v46 = vmax.f32 %v6817_v52, 0.0  ;;  %v6850_v59 = vmax.f32 %v6818_v35, 0.0  ;;  %v6821_v11 = vadd.f32 %v14888_v23, %v6729_v13 }
 0x53f   :  { %v14909_v38 = vpack.c.bf16 %v6848_v49, %v6840_v24  ;;  %v11681_v12 = vpack.c.bf16 %v6847_v0, %v6839_v10  ;;  %v6852_v34 = vmax.f32 %v6820_v53, 0.0  ;;  %v6851_v56 = vmax.f32 %v6819_v2, 0.0 }
 0x540   :  { %v14911_v43 = vpack.c.bf16 %v6849_v46, %v6841_v51  ;;  %v14913_v28 = vpack.c.bf16 %v6850_v59, %v6842_v39  ;;  %v6853_v48 = vmax.f32 %v6821_v11, 0.0  ;;  %v13121_v51 = vld [vmem:[#allocation11 + $0x320] ss:$8 sps:$4 sm:$0xff]  }
 0x541   :  { %v14915_v44 = vpack.c.bf16 %v6852_v34, %v6844_v8  ;;  %v14917_v1 = vpack.c.bf16 %v6851_v56, %v6843_v45  ;;  %v6587_v6 = vpop.f32.mrb[40].mxu0  ;;  %7524 = vmatprep.mubr.bf16.mxu0 %v11681_v12  ;;  %v13123_v45 = vld [vmem:[#allocation11 + $0x324] ss:$8 sps:$4 sm:$0xff]  }
 0x542   :  { %v14919_v5 = vpack.c.bf16 %v6853_v48, %v6845_v20  ;;  %v14922_v14 = vadd.f32 %v14880_v19, %v6587_v6  ;;  %v6733_v18 = vpop.f32.mrb[72].mxu1  ;;  %v6589_v3 = vpop.f32.mrb[41].mxu0  ;;  %7525 = vmatmul.mubr.bf16.vlgmr.msra.gmra.mrb[48].mxu0 %v11680_v40 }
 0x543   :  { %v14925_v17 = vadd.f32 %v14877_v55, %v6733_v18  ;;  %v14928_v63 = vadd.f32 %v14884_v47, %v6589_v3  ;;  %v6735_v61 = vpop.f32.mrb[73].mxu1  ;;  %7546 = vmatpush1.bf16.msra.mxu0 %v13115_v27  ;;  %v6591_v37 = vpop.f32.mrb[42].mxu0  ;;  %v13124_v27 = vld [vmem:[#allocation11 + $0x330] ss:$8 sps:$4 sm:$0xff]  }
 0x544   :  { %v6854_v22 = vmax.f32 %v14922_v14, 0.0  ;;  %v14932_v39 = vadd.f32 %v14888_v23, %v6735_v61  ;;  %v14935_v41 = vadd.f32 %v14880_v19, %v6591_v37  ;;  %v6737_v25 = vpop.f32.mrb[74].mxu1  ;;  %v6593_v8 = vpop.f32.mrb[43].mxu0  ;;  %7547 = vmatprep.subr.bf16.mxu0 %v13120_v58  ;;  %v13129_v14 = vld [vmem:[#allocation11 + $0x344] ss:$8 sps:$4 sm:$0xff]  }
 0x545   :  { %v6856_v16 = vmax.f32 %v14925_v17, 0.0  ;;  %v6855_v20 = vmax.f32 %v14928_v63, 0.0  ;;  %v6828_v31 = vadd.f32 %v14877_v55, %v6737_v25  ;;  %v6827_v7 = vadd.f32 %v14884_v47, %v6593_v8  ;;  %v6739_v15 = vpop.f32.mrb[75].mxu1 }
 0x546   :  { %v14941_v57 = vpack.c.bf16 %v6854_v22, %v6846_v36  ;;  %v6857_v50 = vmax.f32 %v14932_v39, 0.0  ;;  %v6858_v24 = vmax.f32 %v14935_v41, 0.0  ;;  %v6829_v10 = vadd.f32 %v14888_v23, %v6739_v15 }
 0x547   :  { %v14946_v30 = vpack.c.bf16 %v6856_v16, %v6848_v49  ;;  %v14948_v21 = vpack.c.bf16 %v6855_v20, %v6847_v0  ;;  %v6860_v54 = vmax.f32 %v6828_v31, 0.0  ;;  %v6859_v26 = vmax.f32 %v6827_v7, 0.0  ;;  %7548 = vmatpush1.bf16.msra.mxu0 %v13118_v60  ;;  %v13127_v31 = vld [vmem:[#allocation11 + $0x340] ss:$8 sps:$4 sm:$0xff]  }
 0x548   :  { %v14950_v52 = vpack.c.bf16 %v6857_v50, %v6849_v46  ;;  %v14952_v35 = vpack.c.bf16 %v6858_v24, %v6850_v59  ;;  %v6861_v36 = vmax.f32 %v6829_v10, 0.0  ;;  %7549 = vmatprep.subr.bf16.mxu0 %v13123_v45 }
 0x549   :  { %v14954_v33 = vpack.c.bf16 %v6860_v54, %v6852_v34  ;;  %v14956_v53 = vpack.c.bf16 %v6859_v26, %v6851_v56  ;;  %v6597_v2 = vpop.f32.mrb[44].mxu0 }
 0x54a   :  { %v14958_v49 = vpack.c.bf16 %v6861_v36, %v6853_v48  ;;  %v6830_v0 = vadd.f32 %v14880_v19, %v6597_v2  ;;  %v6743_v13 = vpop.f32.mrb[76].mxu1  ;;  %v6599_v40 = vpop.f32.mrb[45].mxu0  ;;  %v13141_v2 = vld [vmem:[#allocation11 + $0x384] ss:$8 sps:$4 sm:$0xff]  }
 0x54b   :  { %v6832_v11 = vadd.f32 %v14877_v55, %v6743_v13  ;;  %v6831_v46 = vadd.f32 %v14884_v47, %v6599_v40  ;;  %v6745_v59 = vpop.f32.mrb[77].mxu1  ;;  %7550 = vmatpush1.bf16.msra.mxu0 %v13121_v51  ;;  %v6601_v12 = vpop.f32.mrb[46].mxu0  ;;  %v13147_v13 = vld [vmem:[#allocation11 + $0x3a4] ss:$8 sps:$4 sm:$0xff]   ;;  %v13150_v40 = vld [vmem:[#allocation11 + $0x3b4] ss:$8 sps:$4 sm:$0xff]  }
 0x54c   :  { %v6862_v58 = vmax.f32 %v6830_v0, 0.0  ;;  %v6833_v34 = vadd.f32 %v14888_v23, %v6745_v59  ;;  %v6834_v56 = vadd.f32 %v14880_v19, %v6601_v12  ;;  %v6747_v6 = vpop.f32.mrb[78].mxu1  ;;  %v6603_v48 = vpop.f32.mrb[47].mxu0  ;;  %7551 = vmatprep.subr.bf16.mxu0 %v13126_v32  ;;  %v13138_v32 = vld [vmem:[#allocation11 + $0x374] ss:$8 sps:$4 sm:$0xff]  }
 0x54d   :  { %v6864_v18 = vmax.f32 %v6832_v11, 0.0  ;;  %v6863_v3 = vmax.f32 %v6831_v46, 0.0  ;;  %v6836_v17 = vadd.f32 %v14877_v55, %v6747_v6  ;;  %v6835_v63 = vadd.f32 %v14884_v47, %v6603_v48  ;;  %v6749_v61 = vpop.f32.mrb[79].mxu1  ;;  %v13144_v0 = vld [vmem:[#allocation11 + $0x394] ss:$8 sps:$4 sm:$0xff]  }
 0x54e   :  { %v11684_v37 = vpack.c.bf16 %v6862_v58, %v6854_v22  ;;  %v6865_v60 = vmax.f32 %v6833_v34, 0.0  ;;  %v6866_v39 = vmax.f32 %v6834_v56, 0.0  ;;  %v6837_v41 = vadd.f32 %v14888_v23, %v6749_v61  ;;  %v13132_v22 = vld [vmem:[#allocation11 + $0x354] ss:$8 sps:$4 sm:$0xff]   ;;  %v13148_v11 = vld [vmem:[#allocation11 + $0x3b0] ss:$8 sps:$4 sm:$0xff]  }
 0x54f   :  { %v14968_v25 = vpack.c.bf16 %v6864_v18, %v6856_v16  ;;  %v14970_v8 = vpack.c.bf16 %v6863_v3, %v6862_v58  ;;  %v11685_v19 = vpack.c.bf16 %v6863_v3, %v6855_v20  ;;  %v6868_v45 = vmax.f32 %v6836_v17, 0.0  ;;  %7552 = vmatpush1.bf16.msra.mxu0 %v13124_v27  ;;  %v13130_v20 = vld [vmem:[#allocation11 + $0x350] ss:$8 sps:$4 sm:$0xff]   ;;  %v13153_v46 = vld [vmem:[#allocation11 + $0x3c4] ss:$8 sps:$4 sm:$0xff]  }
 0x550   :  { %v14972_v7 = vpack.c.bf16 %v6865_v60, %v6864_v18  ;;  %v11687_v15 = vpack.c.bf16 %v6865_v60, %v6857_v50  ;;  %v14974_v55 = vpack.c.bf16 %v6866_v39, %v6858_v24  ;;  %v6867_v47 = vmax.f32 %v6835_v63, 0.0  ;;  %7553 = vmatprep.subr.bf16.mxu0 %v13129_v14  ;;  %v13135_v50 = vld [vmem:[#allocation11 + $0x364] ss:$8 sps:$4 sm:$0xff]   ;;  %v13133_v24 = vld [vmem:[#allocation11 + $0x360] ss:$8 sps:$4 sm:$0xff]  }
 0x551   :  { %v14976_v10 = vpack.c.bf16 %v6868_v45, %v6860_v54  ;;  %v6869_v51 = vmax.f32 %v6837_v41, 0.0  ;;  %7534 = vmatprep.mubr.bf16.mxu0 %v11685_v19  ;;  %v13136_v54 = vld [vmem:[#allocation11 + $0x370] ss:$8 sps:$4 sm:$0xff]   ;;  %v13151_v59 = vld [vmem:[#allocation11 + $0x3c0] ss:$8 sps:$4 sm:$0xff]  }
 0x552   :  { %v14978_v23 = vpack.c.bf16 %v6867_v47, %v6859_v26  ;;  %7535 = vmatmul.mubr.bf16.gmra.mrb[52].mxu0 %v11684_v37  ;;  %v13139_v26 = vld [vmem:[#allocation11 + $0x380] ss:$8 sps:$4 sm:$0xff]   ;;  %v13156_v12 = vld [vmem:[#allocation11 + $0x3d4] ss:$8 sps:$4 sm:$0xff]   ;;  %v13154_v27 = vld [vmem:[#allocation11 + $0x3d0] ss:$8 sps:$4 sm:$0xff]   ;;  %v11216_v37 = vcombine.high %v15071_v9, %v14897_v29 }
 0x553   :  { %v14980_v16 = vpack.c.bf16 %v6869_v51, %v6861_v36  ;;  %7554 = vmatpush1.bf16.msra.mxu0 %v13127_v31  ;;  %7577 = vmatprep.mubr.bf16.mxu0 %v14911_v43  ;;  %v13142_v36 = vld [vmem:[#allocation11 + $0x390] ss:$8 sps:$4 sm:$0xff]   ;;  %v13145_v43 = vld [vmem:[#allocation11 + $0x3a0] ss:$8 sps:$4 sm:$0xff]   ;;  %v13159_v58 = vld [vmem:[#allocation11 + $0x3e4] ss:$8 sps:$4 sm:$0xff]  }
 0x554   :  { %7555 = vmatprep.subr.bf16.mxu0 %v13132_v22  ;;  %v13157_v34 = vld [vmem:[#allocation11 + $0x3e0] ss:$8 sps:$4 sm:$0xff]   ;;  %v13162_v56 = vld [vmem:[#allocation11 + $0x3f4] ss:$8 sps:$4 sm:$0xff]   ;;  %v13160_v6 = vld [vmem:[#allocation11 + $0x3f0] ss:$8 sps:$4 sm:$0xff]  }
 0x555   :  { %v13165_v48 = vld [vmem:[#allocation11 + $0x4] ss:$8 sps:$4 sm:$0xff]   ;;  %v13163_v14 = vld [vmem:[#allocation11] ss:$8 sps:$4 sm:$0xff]   ;;  %v13168_v18 = vld [vmem:[#allocation11 + $0x14] ss:$8 sps:$4 sm:$0xff]  }
 0x556   :  { %v13166_v3 = vld [vmem:[#allocation11 + $0x10] ss:$8 sps:$4 sm:$0xff]   ;;  %v13171_v17 = vld [vmem:[#allocation11 + $0x24] ss:$8 sps:$4 sm:$0xff]   ;;  %v13169_v63 = vld [vmem:[#allocation11 + $0x20] ss:$8 sps:$4 sm:$0xff]  }
 0x557   :  { %7556 = vmatpush1.bf16.msra.mxu0 %v13130_v20  ;;  %v13174_v61 = vld [vmem:[#allocation11 + $0x34] ss:$8 sps:$4 sm:$0xff]   ;;  %v13172_v60 = vld [vmem:[#allocation11 + $0x30] ss:$8 sps:$4 sm:$0xff]   ;;  %v13177_v39 = vld [vmem:[#allocation11 + $0x44] ss:$8 sps:$4 sm:$0xff]  }
 0x558   :  { %7557 = vmatprep.subr.bf16.mxu0 %v13135_v50  ;;  %v13180_v41 = vld [vmem:[#allocation11 + $0x54] ss:$8 sps:$4 sm:$0xff]   ;;  %v13178_v19 = vld [vmem:[#allocation11 + $0x50] ss:$8 sps:$4 sm:$0xff]   ;;  %v13183_v45 = vld [vmem:[#allocation11 + $0x64] ss:$8 sps:$4 sm:$0xff]  }
 0x559   :  { %v13181_v31 = vld [vmem:[#allocation11 + $0x60] ss:$8 sps:$4 sm:$0xff]   ;;  %v13184_v47 = vld [vmem:[#allocation11 + $0x70] ss:$8 sps:$4 sm:$0xff]   ;;  %v13192_v51 = vld [vmem:[#allocation11 + $0x94] ss:$8 sps:$4 sm:$0xff]  }
 0x55a   :  { %v13187_v22 = vld [vmem:[#allocation11 + $0x80] ss:$8 sps:$4 sm:$0xff]   ;;  %v13190_v20 = vld [vmem:[#allocation11 + $0x90] ss:$8 sps:$4 sm:$0xff]   ;;  %v13195_v50 = vld [vmem:[#allocation11 + $0xa4] ss:$8 sps:$4 sm:$0xff]  }
 0x55b   :  { %7558 = vmatpush1.bf16.msra.mxu0 %v13133_v24  ;;  %v13193_v24 = vld [vmem:[#allocation11 + $0xa0] ss:$8 sps:$4 sm:$0xff]  }
 0x55c   :  { %7559 = vmatprep.subr.bf16.mxu0 %v13138_v32  ;;  %v13198_v32 = vld [vmem:[#allocation11 + $0xb4] ss:$8 sps:$4 sm:$0xff]  }
 0x55f   :  { %7560 = vmatpush1.bf16.msra.mxu0 %v13136_v54  ;;  %v13196_v54 = vld [vmem:[#allocation11 + $0xb0] ss:$8 sps:$4 sm:$0xff]  }
 0x560   :  { %7561 = vmatprep.subr.bf16.mxu0 %v13141_v2  ;;  %v13201_v2 = vld [vmem:[#allocation11 + $0xc4] ss:$8 sps:$4 sm:$0xff]  }
 0x563   :  { %7562 = vmatpush1.bf16.msra.mxu0 %v13139_v26  ;;  %v13199_v26 = vld [vmem:[#allocation11 + $0xc0] ss:$8 sps:$4 sm:$0xff]  }
 0x564   :  { %7563 = vmatprep.subr.bf16.mxu0 %v13144_v0  ;;  %v13204_v0 = vld [vmem:[#allocation11 + $0xd4] ss:$8 sps:$4 sm:$0xff]  }
 0x567   :  { %7564 = vmatpush1.bf16.msra.mxu0 %v13142_v36  ;;  %v13202_v36 = vld [vmem:[#allocation11 + $0xd0] ss:$8 sps:$4 sm:$0xff]  }
 0x568   :  { %7565 = vmatprep.subr.bf16.mxu0 %v13147_v13  ;;  %v13207_v13 = vld [vmem:[#allocation11 + $0xe4] ss:$8 sps:$4 sm:$0xff]  }
 0x56b   :  { %7566 = vmatpush1.bf16.msra.mxu0 %v13145_v43  ;;  %v13205_v43 = vld [vmem:[#allocation11 + $0xe0] ss:$8 sps:$4 sm:$0xff]  }
 0x56c   :  { %7567 = vmatprep.subr.bf16.mxu0 %v13150_v40  ;;  %v13210_v40 = vld [vmem:[#allocation11 + $0xf4] ss:$8 sps:$4 sm:$0xff]  }
 0x56f   :  { %7568 = vmatpush1.bf16.msra.mxu0 %v13148_v11  ;;  %v13208_v11 = vld [vmem:[#allocation11 + $0xf0] ss:$8 sps:$4 sm:$0xff]  }
 0x570   :  { %7569 = vmatprep.subr.bf16.mxu0 %v13153_v46  ;;  %v13213_v46 = vld [vmem:[#allocation11 + $0x104] ss:$8 sps:$4 sm:$0xff]  }
 0x573   :  { %7570 = vmatpush1.bf16.msra.mxu0 %v13151_v59  ;;  %v13211_v59 = vld [vmem:[#allocation11 + $0x100] ss:$8 sps:$4 sm:$0xff]  }
 0x574   :  { %7571 = vmatprep.subr.bf16.mxu0 %v13156_v12  ;;  %v11215_v12 = vcombine.low %v15071_v9, %v14897_v29  ;;  %v13220_v29 = vld [vmem:[#allocation11 + $0x130] ss:$8 sps:$4 sm:$0xff]  }
 0x577   :  { %7572 = vmatpush1.bf16.msra.mxu0 %v13154_v27  ;;  %v13216_v27 = vld [vmem:[#allocation11 + $0x114] ss:$8 sps:$4 sm:$0xff]  }
 0x578   :  { %7573 = vmatprep.subr.bf16.mxu0 %v13159_v58  ;;  %v13214_v58 = vld [vmem:[#allocation11 + $0x110] ss:$8 sps:$4 sm:$0xff]  }
 0x57b   :  { %7574 = vmatpush1.bf16.msra.mxu0 %v13157_v34  ;;  %v13219_v34 = vld [vmem:[#allocation11 + $0x124] ss:$8 sps:$4 sm:$0xff]  }
 0x57c   :  { %7575 = vmatprep.subr.bf16.mxu0 %v13162_v56  ;;  %v13217_v56 = vld [vmem:[#allocation11 + $0x120] ss:$8 sps:$4 sm:$0xff]  }
 0x57f   :  { %7576 = vmatpush1.bf16.msra.mxu0 %v13160_v6  ;;  %v13222_v6 = vld [vmem:[#allocation11 + $0x134] ss:$8 sps:$4 sm:$0xff]  }
 0x580   :  { %7958 = vmatprep.subr.bf16.mxu0 %v13165_v48  ;;  %v11218_v48 = vcombine.high %v15071_v9, %v14899_v4 }
 0x582   :  { %7578 = vmatmul.mubr.bf16.vlgmr.msra.gmra.mrb[48].mxu0 %v14909_v38  ;;  %v13175_v38 = vld [vmem:[#allocation11 + $0x40] ss:$8 sps:$4 sm:$0xff]  }
 0x583   :  { %7587 = vmatprep.mubr.bf16.mxu0 %v11687_v15  ;;  %7959 = vmatpush1.bf16.msra.mxu0 %v13163_v14  ;;  %v13186_v15 = vld [vmem:[#allocation11 + $0x74] ss:$8 sps:$4 sm:$0xff]   ;;  %v13225_v14 = vld [vmem:[#allocation11 + $0x144] ss:$8 sps:$4 sm:$0xff]  }
 0x584   :  { %7960 = vmatprep.subr.bf16.mxu0 %v13168_v18  ;;  %v13228_v18 = vld [vmem:[#allocation11 + $0x154] ss:$8 sps:$4 sm:$0xff]  }
 0x587   :  { %7961 = vmatpush1.bf16.msra.mxu0 %v13166_v3  ;;  %v13226_v3 = vld [vmem:[#allocation11 + $0x150] ss:$8 sps:$4 sm:$0xff]  }
 0x588   :  { %7962 = vmatprep.subr.bf16.mxu0 %v13171_v17  ;;  %v13231_v17 = vld [vmem:[#allocation11 + $0x164] ss:$8 sps:$4 sm:$0xff]  }
 0x58a   :  { %7588 = vmatmul.mubr.bf16.gmra.mrb[52].mxu0 %v14968_v25  ;;  %v13189_v25 = vld [vmem:[#allocation11 + $0x84] ss:$8 sps:$4 sm:$0xff]  }
 0x58b   :  { %7963 = vmatpush1.bf16.msra.mxu0 %v13169_v63  ;;  %7990 = vmatprep.mubr.bf16.mxu0 %v11216_v37  ;;  %v13229_v63 = vld [vmem:[#allocation11 + $0x160] ss:$8 sps:$4 sm:$0xff]   ;;  %v13232_v37 = vld [vmem:[#allocation11 + $0x170] ss:$8 sps:$4 sm:$0xff]  }
 0x58c   :  { %7964 = vmatprep.subr.bf16.mxu0 %v13174_v61  ;;  %v13234_v61 = vld [vmem:[#allocation11 + $0x174] ss:$8 sps:$4 sm:$0xff]  }
 0x58f   :  { %7965 = vmatpush1.bf16.msra.mxu0 %v13172_v60  ;;  %v13235_v60 = vld [vmem:[#allocation11 + $0x180] ss:$8 sps:$4 sm:$0xff]  }
 0x590   :  { %7966 = vmatprep.subr.bf16.mxu0 %v13177_v39  ;;  %v13240_v39 = vld [vmem:[#allocation11 + $0x194] ss:$8 sps:$4 sm:$0xff]  }
 0x593   :  { %7967 = vmatpush1.bf16.msra.mxu0 %v13175_v38  ;;  %v13238_v38 = vld [vmem:[#allocation11 + $0x190] ss:$8 sps:$4 sm:$0xff]  }
 0x594   :  { %7968 = vmatprep.subr.bf16.mxu0 %v13180_v41  ;;  %v13243_v41 = vld [vmem:[#allocation11 + $0x1a4] ss:$8 sps:$4 sm:$0xff]  }
 0x597   :  { %7969 = vmatpush1.bf16.msra.mxu0 %v13178_v19  ;;  %v13241_v19 = vld [vmem:[#allocation11 + $0x1a0] ss:$8 sps:$4 sm:$0xff]  }
 0x598   :  { %7970 = vmatprep.subr.bf16.mxu0 %v13183_v45  ;;  %v13246_v45 = vld [vmem:[#allocation11 + $0x1b4] ss:$8 sps:$4 sm:$0xff]  }
 0x59b   :  { %7971 = vmatpush1.bf16.msra.mxu0 %v13181_v31  ;;  %v13244_v31 = vld [vmem:[#allocation11 + $0x1b0] ss:$8 sps:$4 sm:$0xff]  }
 0x59c   :  { %7972 = vmatprep.subr.bf16.mxu0 %v13186_v15  ;;  %v13249_v15 = vld [vmem:[#allocation11 + $0x1c4] ss:$8 sps:$4 sm:$0xff]  }
 0x59f   :  { %7973 = vmatpush1.bf16.msra.mxu0 %v13184_v47  ;;  %v13247_v47 = vld [vmem:[#allocation11 + $0x1c0] ss:$8 sps:$4 sm:$0xff]  }
 0x5a0   :  { %7974 = vmatprep.subr.bf16.mxu0 %v13189_v25  ;;  %v13252_v25 = vld [vmem:[#allocation11 + $0x1d4] ss:$8 sps:$4 sm:$0xff]  }
 0x5a3   :  { %7975 = vmatpush1.bf16.msra.mxu0 %v13187_v22  ;;  %v13250_v22 = vld [vmem:[#allocation11 + $0x1d0] ss:$8 sps:$4 sm:$0xff]  }
 0x5a4   :  { %7976 = vmatprep.subr.bf16.mxu0 %v13192_v51  ;;  %v13255_v51 = vld [vmem:[#allocation11 + $0x1e4] ss:$8 sps:$4 sm:$0xff]  }
 0x5a7   :  { %7977 = vmatpush1.bf16.msra.mxu0 %v13190_v20  ;;  %v13253_v20 = vld [vmem:[#allocation11 + $0x1e0] ss:$8 sps:$4 sm:$0xff]  }
 0x5a8   :  { %7978 = vmatprep.subr.bf16.mxu0 %v13195_v50  ;;  %v13258_v50 = vld [vmem:[#allocation11 + $0x1f4] ss:$8 sps:$4 sm:$0xff]  }
 0x5ab   :  { %7979 = vmatpush1.bf16.msra.mxu0 %v13193_v24  ;;  %v13256_v24 = vld [vmem:[#allocation11 + $0x1f0] ss:$8 sps:$4 sm:$0xff]  }
 0x5ac   :  { %7980 = vmatprep.subr.bf16.mxu0 %v13198_v32  ;;  %v13261_v32 = vld [vmem:[#allocation11 + $0x404] ss:$8 sps:$4 sm:$0xff]  }
 0x5af   :  { %7981 = vmatpush1.bf16.msra.mxu0 %v13196_v54  ;;  %v13259_v54 = vld [vmem:[#allocation11 + $0x400] ss:$8 sps:$4 sm:$0xff]  }
 0x5b0   :  { %7982 = vmatprep.subr.bf16.mxu0 %v13201_v2  ;;  %v11217_v2 = vcombine.low %v15071_v9, %v14899_v4  ;;  %v13273_v4 = vld [vmem:[#allocation11 + $0x444] ss:$8 sps:$4 sm:$0xff]  }
 0x5b3   :  { %7983 = vmatpush1.bf16.msra.mxu0 %v13199_v26  ;;  %v13264_v26 = vld [vmem:[#allocation11 + $0x414] ss:$8 sps:$4 sm:$0xff]  }
 0x5b4   :  { %7984 = vmatprep.subr.bf16.mxu0 %v13204_v0  ;;  %v13262_v0 = vld [vmem:[#allocation11 + $0x410] ss:$8 sps:$4 sm:$0xff]  }
 0x5b7   :  { %7985 = vmatpush1.bf16.msra.mxu0 %v13202_v36  ;;  %v13267_v36 = vld [vmem:[#allocation11 + $0x424] ss:$8 sps:$4 sm:$0xff]  }
 0x5b8   :  { %7986 = vmatprep.subr.bf16.mxu0 %v13207_v13  ;;  %v13265_v13 = vld [vmem:[#allocation11 + $0x420] ss:$8 sps:$4 sm:$0xff]  }
 0x5bb   :  { %7987 = vmatpush1.bf16.msra.mxu0 %v13205_v43  ;;  %v13270_v43 = vld [vmem:[#allocation11 + $0x434] ss:$8 sps:$4 sm:$0xff]  }
 0x5bc   :  { %7988 = vmatprep.subr.bf16.mxu0 %v13210_v40  ;;  %v13268_v40 = vld [vmem:[#allocation11 + $0x430] ss:$8 sps:$4 sm:$0xff]  }
 0x5bf   :  { %7989 = vmatpush1.bf16.msra.mxu0 %v13208_v11  ;;  %v13271_v11 = vld [vmem:[#allocation11 + $0x440] ss:$8 sps:$4 sm:$0xff]  }
 0x5c0   :  { %8011 = vmatprep.subr.bf16.mxu0 %v13213_v46  ;;  %v13274_v46 = vld [vmem:[#allocation11 + $0x450] ss:$8 sps:$4 sm:$0xff]  }
 0x5c2   :  { %7991 = vmatmul.mubr.bf16.vlgmr.msra.gmra.mrb[48].mxu0 %v11215_v12  ;;  %v13277_v12 = vld [vmem:[#allocation11 + $0x460] ss:$8 sps:$4 sm:$0xff]  }
 0x5c3   :  { %8000 = vmatprep.mubr.bf16.mxu0 %v14956_v53  ;;  %8012 = vmatpush1.bf16.msra.mxu0 %v13211_v59  ;;  %v13223_v53 = vld [vmem:[#allocation11 + $0x140] ss:$8 sps:$4 sm:$0xff]   ;;  %v13279_v59 = vld [vmem:[#allocation11 + $0x464] ss:$8 sps:$4 sm:$0xff]  }
 0x5c4   :  { %8013 = vmatprep.subr.bf16.mxu0 %v13216_v27  ;;  %v13282_v27 = vld [vmem:[#allocation11 + $0x474] ss:$8 sps:$4 sm:$0xff]  }
 0x5c7   :  { %8014 = vmatpush1.bf16.msra.mxu0 %v13214_v58  ;;  %v13285_v58 = vld [vmem:[#allocation11 + $0x484] ss:$8 sps:$4 sm:$0xff]  }
 0x5c8   :  { %8015 = vmatprep.subr.bf16.mxu0 %v13219_v34  ;;  %v13288_v34 = vld [vmem:[#allocation11 + $0x494] ss:$8 sps:$4 sm:$0xff]  }
 0x5ca   :  { %8001 = vmatmul.mubr.bf16.gmra.mrb[52].mxu0 %v14952_v35  ;;  %v13237_v35 = vld [vmem:[#allocation11 + $0x184] ss:$8 sps:$4 sm:$0xff]  }
 0x5cb   :  { %8016 = vmatpush1.bf16.msra.mxu0 %v13217_v56  ;;  %8043 = vmatprep.mubr.bf16.mxu0 %v11218_v48  ;;  %v13286_v56 = vld [vmem:[#allocation11 + $0x490] ss:$8 sps:$4 sm:$0xff]   ;;  %v13289_v48 = vld [vmem:[#allocation11 + $0x4a0] ss:$8 sps:$4 sm:$0xff]  }
 0x5cc   :  { %8017 = vmatprep.subr.bf16.mxu0 %v13222_v6  ;;  %v13291_v6 = vld [vmem:[#allocation11 + $0x4a4] ss:$8 sps:$4 sm:$0xff]  }
 0x5cf   :  { %8018 = vmatpush1.bf16.msra.mxu0 %v13220_v29  ;;  %v13294_v29 = vld [vmem:[#allocation11 + $0x4b4] ss:$8 sps:$4 sm:$0xff]  }
 0x5d0   :  { %8019 = vmatprep.subr.bf16.mxu0 %v13225_v14  ;;  %v13292_v14 = vld [vmem:[#allocation11 + $0x4b0] ss:$8 sps:$4 sm:$0xff]  }
 0x5d3   :  { %8020 = vmatpush1.bf16.msra.mxu0 %v13223_v53  ;;  %v13297_v53 = vld [vmem:[#allocation11 + $0x4c4] ss:$8 sps:$4 sm:$0xff]  }
 0x5d4   :  { %8021 = vmatprep.subr.bf16.mxu0 %v13228_v18  ;;  %v13295_v18 = vld [vmem:[#allocation11 + $0x4c0] ss:$8 sps:$4 sm:$0xff]  }
 0x5d7   :  { %8022 = vmatpush1.bf16.msra.mxu0 %v13226_v3  ;;  %v13300_v3 = vld [vmem:[#allocation11 + $0x4d4] ss:$8 sps:$4 sm:$0xff]  }
 0x5d8   :  { %8023 = vmatprep.subr.bf16.mxu0 %v13231_v17  ;;  %v13298_v17 = vld [vmem:[#allocation11 + $0x4d0] ss:$8 sps:$4 sm:$0xff]  }
 0x5db   :  { %8024 = vmatpush1.bf16.msra.mxu0 %v13229_v63  ;;  %v13303_v63 = vld [vmem:[#allocation11 + $0x4e4] ss:$8 sps:$4 sm:$0xff]  }
 0x5dc   :  { %8025 = vmatprep.subr.bf16.mxu0 %v13234_v61  ;;  %v13301_v61 = vld [vmem:[#allocation11 + $0x4e0] ss:$8 sps:$4 sm:$0xff]  }
 0x5df   :  { %8026 = vmatpush1.bf16.msra.mxu0 %v13232_v37  ;;  %v13306_v37 = vld [vmem:[#allocation11 + $0x4f4] ss:$8 sps:$4 sm:$0xff]  }
 0x5e0   :  { %8027 = vmatprep.subr.bf16.mxu0 %v13237_v35  ;;  %v13304_v35 = vld [vmem:[#allocation11 + $0x4f0] ss:$8 sps:$4 sm:$0xff]  }
 0x5e3   :  { %8028 = vmatpush1.bf16.msra.mxu0 %v13235_v60  ;;  %v13309_v60 = vld [vmem:[#allocation11 + $0x504] ss:$8 sps:$4 sm:$0xff]  }
 0x5e4   :  { %8029 = vmatprep.subr.bf16.mxu0 %v13240_v39  ;;  %v13307_v39 = vld [vmem:[#allocation11 + $0x500] ss:$8 sps:$4 sm:$0xff]  }
 0x5e7   :  { %8030 = vmatpush1.bf16.msra.mxu0 %v13238_v38  ;;  %v13312_v38 = vld [vmem:[#allocation11 + $0x514] ss:$8 sps:$4 sm:$0xff]  }
 0x5e8   :  { %8031 = vmatprep.subr.bf16.mxu0 %v13243_v41  ;;  %v13310_v41 = vld [vmem:[#allocation11 + $0x510] ss:$8 sps:$4 sm:$0xff]  }
 0x5eb   :  { %8032 = vmatpush1.bf16.msra.mxu0 %v13241_v19  ;;  %v13315_v19 = vld [vmem:[#allocation11 + $0x524] ss:$8 sps:$4 sm:$0xff]  }
 0x5ec   :  { %8033 = vmatprep.subr.bf16.mxu0 %v13246_v45  ;;  %v13313_v45 = vld [vmem:[#allocation11 + $0x520] ss:$8 sps:$4 sm:$0xff]  }
 0x5ef   :  { %8034 = vmatpush1.bf16.msra.mxu0 %v13244_v31  ;;  %v13318_v31 = vld [vmem:[#allocation11 + $0x534] ss:$8 sps:$4 sm:$0xff]  }
 0x5f0   :  { %8035 = vmatprep.subr.bf16.mxu0 %v13249_v15  ;;  %v13316_v15 = vld [vmem:[#allocation11 + $0x530] ss:$8 sps:$4 sm:$0xff]  }
 0x5f3   :  { %8036 = vmatpush1.bf16.msra.mxu0 %v13247_v47  ;;  %v13321_v47 = vld [vmem:[#allocation11 + $0x544] ss:$8 sps:$4 sm:$0xff]  }
 0x5f4   :  { %8037 = vmatprep.subr.bf16.mxu0 %v13252_v25  ;;  %v13322_v25 = vld [vmem:[#allocation11 + $0x550] ss:$8 sps:$4 sm:$0xff]  }
 0x5f7   :  { %8038 = vmatpush1.bf16.msra.mxu0 %v13250_v22  ;;  %v13327_v22 = vld [vmem:[#allocation11 + $0x564] ss:$8 sps:$4 sm:$0xff]  }
 0x5f8   :  { %8039 = vmatprep.subr.bf16.mxu0 %v13255_v51  ;;  %v13325_v51 = vld [vmem:[#allocation11 + $0x560] ss:$8 sps:$4 sm:$0xff]  }
 0x5fb   :  { %8040 = vmatpush1.bf16.msra.mxu0 %v13253_v20  ;;  %v13330_v20 = vld [vmem:[#allocation11 + $0x574] ss:$8 sps:$4 sm:$0xff]  }
 0x5fc   :  { %8041 = vmatprep.subr.bf16.mxu0 %v13258_v50  ;;  %v13333_v50 = vld [vmem:[#allocation11 + $0x584] ss:$8 sps:$4 sm:$0xff]  }
 0x5ff   :  { %8042 = vmatpush1.bf16.msra.mxu0 %v13256_v24  ;;  %v13336_v24 = vld [vmem:[#allocation11 + $0x594] ss:$8 sps:$4 sm:$0xff]  }
 0x600   :  { %8497 = vmatprep.subr.bf16.mxu0 %v13261_v32  ;;  %v13334_v32 = vld [vmem:[#allocation11 + $0x590] ss:$8 sps:$4 sm:$0xff]  }
 0x602   :  { %8044 = vmatmul.mubr.bf16.vlgmr.msra.gmra.mrb[48].mxu0 %v11217_v2  ;;  %v13337_v2 = vld [vmem:[#allocation11 + $0x5a0] ss:$8 sps:$4 sm:$0xff]  }
 0x603   :  { %8053 = vmatprep.mubr.bf16.mxu0 %v14958_v49  ;;  %8498 = vmatpush1.bf16.msra.mxu0 %v13259_v54  ;;  %v13276_v49 = vld [vmem:[#allocation11 + $0x454] ss:$8 sps:$4 sm:$0xff]   ;;  %v13339_v54 = vld [vmem:[#allocation11 + $0x5a4] ss:$8 sps:$4 sm:$0xff]  }
 0x604   :  { %8499 = vmatprep.subr.bf16.mxu0 %v13264_v26  ;;  %v13342_v26 = vld [vmem:[#allocation11 + $0x5b4] ss:$8 sps:$4 sm:$0xff]  }
 0x607   :  { %8500 = vmatpush1.bf16.msra.mxu0 %v13262_v0  ;;  %v13340_v0 = vld [vmem:[#allocation11 + $0x5b0] ss:$8 sps:$4 sm:$0xff]  }
 0x608   :  { %8501 = vmatprep.subr.bf16.mxu0 %v13267_v36  ;;  %v13345_v36 = vld [vmem:[#allocation11 + $0x5c4] ss:$8 sps:$4 sm:$0xff]  }
 0x60a   :  { %8054 = vmatmul.mubr.bf16.gmra.mrb[52].mxu0 %v14954_v33  ;;  %v13280_v33 = vld [vmem:[#allocation11 + $0x470] ss:$8 sps:$4 sm:$0xff]  }
 0x60b   :  { %8502 = vmatpush1.bf16.msra.mxu0 %v13265_v13  ;;  %8529 = vmatprep.mubr.bf16.mxu0 %v14917_v1  ;;  %v13283_v1 = vld [vmem:[#allocation11 + $0x480] ss:$8 sps:$4 sm:$0xff]  }
 0x60c   :  { %8503 = vmatprep.subr.bf16.mxu0 %v13270_v43  ;;  %v13343_v13 = vld [vmem:[#allocation11 + $0x5c0] ss:$8 sps:$4 sm:$0xff]   ;;  %v13348_v43 = vld [vmem:[#allocation11 + $0x5d4] ss:$8 sps:$4 sm:$0xff]  }
 0x60f   :  { %8504 = vmatpush1.bf16.msra.mxu0 %v13268_v40  ;;  %v13346_v40 = vld [vmem:[#allocation11 + $0x5d0] ss:$8 sps:$4 sm:$0xff]  }
 0x610   :  { %8505 = vmatprep.subr.bf16.mxu0 %v13273_v4  ;;  %v13351_v4 = vld [vmem:[#allocation11 + $0x5e4] ss:$8 sps:$4 sm:$0xff]  }
 0x613   :  { %8506 = vmatpush1.bf16.msra.mxu0 %v13271_v11  ;;  %v13349_v11 = vld [vmem:[#allocation11 + $0x5e0] ss:$8 sps:$4 sm:$0xff]  }
 0x614   :  { %8507 = vmatprep.subr.bf16.mxu0 %v13276_v49  ;;  %v13354_v49 = vld [vmem:[#allocation11 + $0x5f4] ss:$8 sps:$4 sm:$0xff]  }
 0x617   :  { %8508 = vmatpush1.bf16.msra.mxu0 %v13274_v46  ;;  %v13352_v46 = vld [vmem:[#allocation11 + $0x5f0] ss:$8 sps:$4 sm:$0xff]  }
 0x618   :  { %8509 = vmatprep.subr.bf16.mxu0 %v13279_v59  ;;  %v13357_v59 = vld [vmem:[#allocation11 + $0x604] ss:$8 sps:$4 sm:$0xff]  }
 0x61b   :  { %8510 = vmatpush1.bf16.msra.mxu0 %v13277_v12  ;;  %v13355_v12 = vld [vmem:[#allocation11 + $0x600] ss:$8 sps:$4 sm:$0xff]  }
 0x61c   :  { %8511 = vmatprep.subr.bf16.mxu0 %v13282_v27  ;;  %v13360_v27 = vld [vmem:[#allocation11 + $0x614] ss:$8 sps:$4 sm:$0xff]  }
 0x61f   :  { %8512 = vmatpush1.bf16.msra.mxu0 %v13280_v33  ;;  %v13358_v33 = vld [vmem:[#allocation11 + $0x610] ss:$8 sps:$4 sm:$0xff]  }
 0x620   :  { %8513 = vmatprep.subr.bf16.mxu0 %v13285_v58  ;;  %v13363_v58 = vld [vmem:[#allocation11 + $0x624] ss:$8 sps:$4 sm:$0xff]  }
 0x623   :  { %8514 = vmatpush1.bf16.msra.mxu0 %v13283_v1  ;;  %v13361_v1 = vld [vmem:[#allocation11 + $0x620] ss:$8 sps:$4 sm:$0xff]  }
 0x624   :  { %8515 = vmatprep.subr.bf16.mxu0 %v13288_v34  ;;  %v13366_v34 = vld [vmem:[#allocation11 + $0x634] ss:$8 sps:$4 sm:$0xff]  }
 0x627   :  { %8516 = vmatpush1.bf16.msra.mxu0 %v13286_v56  ;;  %v13451_v56 = vld [vmem:[#allocation14 + $0x100] ss:$8 sps:$4 sm:$0xff]  }
 0x628   :  { %8517 = vmatprep.subr.bf16.mxu0 %v13291_v6  ;;  %v13453_v6 = vld [vmem:[#allocation14 + $0x104] ss:$8 sps:$4 sm:$0xff]  }
 0x629   :  { %9421 = vmatprep.subr.bf16.mxu1 %v13453_v6  ;;  %v13409_v6 = vld [vmem:[#allocation11 + $0x720] ss:$8 sps:$4 sm:$0xff]  }
 0x62a   :  { %9422 = vmatpush1.bf16.msra.mxu1 %v13451_v56  ;;  %v13411_v56 = vld [vmem:[#allocation11 + $0x724] ss:$8 sps:$4 sm:$0xff]  }
 0x62b   :  { %8518 = vmatpush1.bf16.msra.mxu0 %v13289_v48  ;;  %v13364_v48 = vld [vmem:[#allocation11 + $0x630] ss:$8 sps:$4 sm:$0xff]  }
 0x62c   :  { %8519 = vmatprep.subr.bf16.mxu0 %v13294_v29  ;;  %v13456_v29 = vld [vmem:[#allocation14 + $0x114] ss:$8 sps:$4 sm:$0xff]  }
 0x62d   :  { %9423 = vmatprep.subr.bf16.mxu1 %v13456_v29  ;;  %v13414_v29 = vld [vmem:[#allocation11 + $0x734] ss:$8 sps:$4 sm:$0xff]  }
 0x62f   :  { %8520 = vmatpush1.bf16.msra.mxu0 %v13292_v14  ;;  %v13459_v14 = vld [vmem:[#allocation14 + $0x124] ss:$8 sps:$4 sm:$0xff]  }
 0x630   :  { %8521 = vmatprep.subr.bf16.mxu0 %v13297_v53  ;;  %v13367_v53 = vld [vmem:[#allocation11 + $0x640] ss:$8 sps:$4 sm:$0xff]  }
 0x633   :  { %8522 = vmatpush1.bf16.msra.mxu0 %v13295_v18  ;;  %v13372_v18 = vld [vmem:[#allocation11 + $0x654] ss:$8 sps:$4 sm:$0xff]  }
 0x634   :  { %8523 = vmatprep.subr.bf16.mxu0 %v13300_v3  ;;  %v13462_v3 = vld [vmem:[#allocation14 + $0x134] ss:$8 sps:$4 sm:$0xff]  }
 0x637   :  { %8524 = vmatpush1.bf16.msra.mxu0 %v13298_v17  ;;  %v13370_v17 = vld [vmem:[#allocation11 + $0x650] ss:$8 sps:$4 sm:$0xff]  }
 0x638   :  { %8525 = vmatprep.subr.bf16.mxu0 %v13303_v63  ;;  %v13460_v63 = vld [vmem:[#allocation14 + $0x130] ss:$8 sps:$4 sm:$0xff]  }
 0x63b   :  { %8526 = vmatpush1.bf16.msra.mxu0 %v13301_v61  ;;  %v13465_v61 = vld [vmem:[#allocation14 + $0x144] ss:$8 sps:$4 sm:$0xff]  }
 0x63c   :  { %8527 = vmatprep.subr.bf16.mxu0 %v13306_v37  ;;  %v13373_v37 = vld [vmem:[#allocation11 + $0x660] ss:$8 sps:$4 sm:$0xff]  }
 0x63f   :  { %8528 = vmatpush1.bf16.msra.mxu0 %v13304_v35  ;;  %v13378_v35 = vld [vmem:[#allocation11 + $0x674] ss:$8 sps:$4 sm:$0xff]  }
 0x640   :  { %8550 = vmatprep.subr.bf16.mxu0 %v13309_v60  ;;  %v13463_v60 = vld [vmem:[#allocation14 + $0x140] ss:$8 sps:$4 sm:$0xff]  }
 0x642   :  { %8530 = vmatmul.mubr.bf16.vlgmr.msra.gmra.mrb[48].mxu0 %v14913_v28  ;;  %v13319_v28 = vld [vmem:[#allocation11 + $0x540] ss:$8 sps:$4 sm:$0xff]  }
 0x643   :  { %8539 = vmatprep.mubr.bf16.mxu0 %v14978_v23  ;;  %8551 = vmatpush1.bf16.msra.mxu0 %v13307_v39  ;;  %v13324_v23 = vld [vmem:[#allocation11 + $0x554] ss:$8 sps:$4 sm:$0xff]  }
 0x644   :  { %8552 = vmatprep.subr.bf16.mxu0 %v13312_v38  ;;  %v13468_v39 = vld [vmem:[#allocation14 + $0x154] ss:$8 sps:$4 sm:$0xff]  }
 0x645   :  { %v13376_v38 = vld [vmem:[#allocation11 + $0x670] ss:$8 sps:$4 sm:$0xff]  }
 0x647   :  { %8553 = vmatpush1.bf16.msra.mxu0 %v13310_v41  ;;  %v13381_v41 = vld [vmem:[#allocation11 + $0x684] ss:$8 sps:$4 sm:$0xff]  }
 0x648   :  { %8554 = vmatprep.subr.bf16.mxu0 %v13315_v19  ;;  %v13466_v19 = vld [vmem:[#allocation14 + $0x150] ss:$8 sps:$4 sm:$0xff]  }
 0x64a   :  { %8540 = vmatmul.mubr.bf16.gmra.mrb[52].mxu0 %v14974_v55  ;;  %v13328_v55 = vld [vmem:[#allocation11 + $0x570] ss:$8 sps:$4 sm:$0xff]  }
 0x64b   :  { %8555 = vmatpush1.bf16.msra.mxu0 %v13313_v45  ;;  %8582 = vmatprep.mubr.bf16.mxu0 %v14919_v5  ;;  %v13331_v5 = vld [vmem:[#allocation11 + $0x580] ss:$8 sps:$4 sm:$0xff]  }
 0x64c   :  { %8556 = vmatprep.subr.bf16.mxu0 %v13318_v31  ;;  %v13471_v45 = vld [vmem:[#allocation14 + $0x164] ss:$8 sps:$4 sm:$0xff]  }
 0x64d   :  { %v13379_v31 = vld [vmem:[#allocation11 + $0x680] ss:$8 sps:$4 sm:$0xff]  }
 0x64f   :  { %8557 = vmatpush1.bf16.msra.mxu0 %v13316_v15  ;;  %v13384_v15 = vld [vmem:[#allocation11 + $0x694] ss:$8 sps:$4 sm:$0xff]  }
 0x650   :  { %8558 = vmatprep.subr.bf16.mxu0 %v13321_v47  ;;  %v13469_v47 = vld [vmem:[#allocation14 + $0x160] ss:$8 sps:$4 sm:$0xff]  }
 0x653   :  { %8559 = vmatpush1.bf16.msra.mxu0 %v13319_v28  ;;  %v13474_v28 = vld [vmem:[#allocation14 + $0x174] ss:$8 sps:$4 sm:$0xff]  }
 0x654   :  { %8560 = vmatprep.subr.bf16.mxu0 %v13324_v23  ;;  %v13382_v23 = vld [vmem:[#allocation11 + $0x690] ss:$8 sps:$4 sm:$0xff]  }
 0x657   :  { %8561 = vmatpush1.bf16.msra.mxu0 %v13322_v25  ;;  %v13387_v25 = vld [vmem:[#allocation11 + $0x6a4] ss:$8 sps:$4 sm:$0xff]  }
 0x658   :  { %8562 = vmatprep.subr.bf16.mxu0 %v13327_v22  ;;  %v13472_v22 = vld [vmem:[#allocation14 + $0x170] ss:$8 sps:$4 sm:$0xff]  }
 0x65b   :  { %8563 = vmatpush1.bf16.msra.mxu0 %v13325_v51  ;;  %v13477_v51 = vld [vmem:[#allocation14 + $0x184] ss:$8 sps:$4 sm:$0xff]  }
 0x65c   :  { %8564 = vmatprep.subr.bf16.mxu0 %v13330_v20  ;;  %v13385_v20 = vld [vmem:[#allocation11 + $0x6a0] ss:$8 sps:$4 sm:$0xff]  }
 0x65f   :  { %8565 = vmatpush1.bf16.msra.mxu0 %v13328_v55  ;;  %v13390_v55 = vld [vmem:[#allocation11 + $0x6b4] ss:$8 sps:$4 sm:$0xff]  }
 0x660   :  { %8566 = vmatprep.subr.bf16.mxu0 %v13333_v50  ;;  %v13475_v50 = vld [vmem:[#allocation14 + $0x180] ss:$8 sps:$4 sm:$0xff]  }
 0x663   :  { %8567 = vmatpush1.bf16.msra.mxu0 %v13331_v5  ;;  %v13480_v5 = vld [vmem:[#allocation14 + $0x194] ss:$8 sps:$4 sm:$0xff]  }
 0x664   :  { %8568 = vmatprep.subr.bf16.mxu0 %v13336_v24  ;;  %v13388_v24 = vld [vmem:[#allocation11 + $0x6b0] ss:$8 sps:$4 sm:$0xff]  }
 0x667   :  { %8569 = vmatpush1.bf16.msra.mxu0 %v13334_v32  ;;  %v13393_v32 = vld [vmem:[#allocation11 + $0x6c4] ss:$8 sps:$4 sm:$0xff]  }
 0x668   :  { %8570 = vmatprep.subr.bf16.mxu0 %v13339_v54  ;;  %v13478_v54 = vld [vmem:[#allocation14 + $0x190] ss:$8 sps:$4 sm:$0xff]  }
 0x66b   :  { %8571 = vmatpush1.bf16.msra.mxu0 %v13337_v2  ;;  %v13483_v2 = vld [vmem:[#allocation14 + $0x1a4] ss:$8 sps:$4 sm:$0xff]  }
 0x66c   :  { %8572 = vmatprep.subr.bf16.mxu0 %v13342_v26  ;;  %v13391_v26 = vld [vmem:[#allocation11 + $0x6c0] ss:$8 sps:$4 sm:$0xff]  }
 0x66f   :  { %8573 = vmatpush1.bf16.msra.mxu0 %v13340_v0  ;;  %v13396_v0 = vld [vmem:[#allocation11 + $0x6d4] ss:$8 sps:$4 sm:$0xff]  }
 0x670   :  { %8574 = vmatprep.subr.bf16.mxu0 %v13345_v36  ;;  %v13481_v36 = vld [vmem:[#allocation14 + $0x1a0] ss:$8 sps:$4 sm:$0xff]  }
 0x673   :  { %8575 = vmatpush1.bf16.msra.mxu0 %v13343_v13  ;;  %v13486_v13 = vld [vmem:[#allocation14 + $0x1b4] ss:$8 sps:$4 sm:$0xff]  }
 0x674   :  { %8576 = vmatprep.subr.bf16.mxu0 %v13348_v43  ;;  %v13394_v43 = vld [vmem:[#allocation11 + $0x6d0] ss:$8 sps:$4 sm:$0xff]  }
 0x677   :  { %8577 = vmatpush1.bf16.msra.mxu0 %v13346_v40  ;;  %v13399_v40 = vld [vmem:[#allocation11 + $0x6e4] ss:$8 sps:$4 sm:$0xff]  }
 0x678   :  { %8578 = vmatprep.subr.bf16.mxu0 %v13351_v4  ;;  %v13484_v4 = vld [vmem:[#allocation14 + $0x1b0] ss:$8 sps:$4 sm:$0xff]  }
 0x67b   :  { %8579 = vmatpush1.bf16.msra.mxu0 %v13349_v11  ;;  %v13489_v11 = vld [vmem:[#allocation14 + $0x1c4] ss:$8 sps:$4 sm:$0xff]  }
 0x67c   :  { %8580 = vmatprep.subr.bf16.mxu0 %v13354_v49  ;;  %v13397_v49 = vld [vmem:[#allocation11 + $0x6e0] ss:$8 sps:$4 sm:$0xff]  }
 0x67f   :  { %8581 = vmatpush1.bf16.msra.mxu0 %v13352_v46  ;;  %v13402_v46 = vld [vmem:[#allocation11 + $0x6f4] ss:$8 sps:$4 sm:$0xff]  }
 0x680   :  { %9044 = vmatprep.subr.bf16.mxu0 %v13357_v59  ;;  %v13487_v59 = vld [vmem:[#allocation14 + $0x1c0] ss:$8 sps:$4 sm:$0xff]  }
 0x682   :  { %8583 = vmatmul.mubr.bf16.vlgmr.msra.gmra.mrb[48].mxu0 %v14915_v44  ;;  %v13369_v44 = vld [vmem:[#allocation11 + $0x644] ss:$8 sps:$4 sm:$0xff]  }
 0x683   :  { %8592 = vmatprep.mubr.bf16.mxu0 %v14980_v16  ;;  %9045 = vmatpush1.bf16.msra.mxu0 %v13355_v12  ;;  %v13454_v16 = vld [vmem:[#allocation14 + $0x110] ss:$8 sps:$4 sm:$0xff]  }
 0x684   :  { %9046 = vmatprep.subr.bf16.mxu0 %v13360_v27  ;;  %9424 = vmatpush1.bf16.msra.mxu1 %v13454_v16  ;;  %v13400_v12 = vld [vmem:[#allocation11 + $0x6f0] ss:$8 sps:$4 sm:$0xff]   ;;  %v13405_v27 = vld [vmem:[#allocation11 + $0x704] ss:$8 sps:$4 sm:$0xff]  }
 0x685   :  { %9425 = vmatprep.subr.bf16.mxu1 %v13459_v14  ;;  %v13417_v16 = vld [vmem:[#allocation11 + $0x744] ss:$8 sps:$4 sm:$0xff]   ;;  %v13420_v14 = vld [vmem:[#allocation11 + $0x754] ss:$8 sps:$4 sm:$0xff]  }
 0x687   :  { %9047 = vmatpush1.bf16.msra.mxu0 %v13358_v33  ;;  %v13403_v33 = vld [vmem:[#allocation11 + $0x700] ss:$8 sps:$4 sm:$0xff]  }
 0x688   :  { %9048 = vmatprep.subr.bf16.mxu0 %v13363_v58  ;;  %v13408_v58 = vld [vmem:[#allocation11 + $0x714] ss:$8 sps:$4 sm:$0xff]  }
 0x68a   :  { %8593 = vmatmul.mubr.bf16.gmra.mrb[52].mxu0 %v14976_v10  ;;  %v13457_v10 = vld [vmem:[#allocation14 + $0x120] ss:$8 sps:$4 sm:$0xff]  }
 0x68b   :  { %9049 = vmatpush1.bf16.msra.mxu0 %v13361_v1  ;;  %9076 = vmatprep.mubr.bf16.mxu0 %v14948_v21  ;;  %v13375_v21 = vld [vmem:[#allocation11 + $0x664] ss:$8 sps:$4 sm:$0xff]   ;;  %v11364_v1 = vcombine.high %v14970_v8, %v15071_v9 }
 0x68c   :  { %9050 = vmatprep.subr.bf16.mxu0 %v13366_v34  ;;  %9426 = vmatpush1.bf16.msra.mxu1 %v13457_v10  ;;  %v13406_v34 = vld [vmem:[#allocation11 + $0x710] ss:$8 sps:$4 sm:$0xff]   ;;  %v13421_v10 = vld [vmem:[#allocation11 + $0x760] ss:$8 sps:$4 sm:$0xff]  }
 0x68d   :  { %9427 = vmatprep.subr.bf16.mxu1 %v13462_v3  ;;  %v13424_v3 = vld [vmem:[#allocation11 + $0x770] ss:$8 sps:$4 sm:$0xff]  }
 0x68f   :  { %9051 = vmatpush1.bf16.msra.mxu0 %v13364_v48  ;;  %v11363_v48 = vcombine.low %v14970_v8, %v15071_v9  ;;  %v13426_v8 = vld [vmem:[#allocation11 + $0x774] ss:$8 sps:$4 sm:$0xff]  }
 0x690   :  { %9052 = vmatprep.subr.bf16.mxu0 %v13369_v44  ;;  %9428 = vmatpush1.bf16.msra.mxu1 %v13460_v63  ;;  %v13412_v44 = vld [vmem:[#allocation11 + $0x730] ss:$8 sps:$4 sm:$0xff]  }
 0x691   :  { %9429 = vmatprep.subr.bf16.mxu1 %v13465_v61  ;;  %v13430_v63 = vld [vmem:[#allocation11 + $0x790] ss:$8 sps:$4 sm:$0xff]   ;;  %v13435_v61 = vld [vmem:[#allocation11 + $0x7a4] ss:$8 sps:$4 sm:$0xff]  }
 0x693   :  { %9053 = vmatpush1.bf16.msra.mxu0 %v13367_v53  ;;  %v13418_v53 = vld [vmem:[#allocation11 + $0x750] ss:$8 sps:$4 sm:$0xff]  }
 0x694   :  { %9054 = vmatprep.subr.bf16.mxu0 %v13372_v18  ;;  %9430 = vmatpush1.bf16.msra.mxu1 %v13463_v60  ;;  %v13423_v18 = vld [vmem:[#allocation11 + $0x764] ss:$8 sps:$4 sm:$0xff]   ;;  %v13436_v60 = vld [vmem:[#allocation11 + $0x7b0] ss:$8 sps:$4 sm:$0xff]  }
 0x695   :  { %9431 = vmatprep.subr.bf16.mxu1 %v13468_v39  ;;  %v13441_v39 = vld [vmem:[#allocation11 + $0x7c4] ss:$8 sps:$4 sm:$0xff]  }
 0x697   :  { %9055 = vmatpush1.bf16.msra.mxu0 %v13370_v17  ;;  %v13429_v17 = vld [vmem:[#allocation11 + $0x784] ss:$8 sps:$4 sm:$0xff]  }
 0x698   :  { %9056 = vmatprep.subr.bf16.mxu0 %v13375_v21  ;;  %9432 = vmatpush1.bf16.msra.mxu1 %v13466_v19  ;;  %v13432_v21 = vld [vmem:[#allocation11 + $0x794] ss:$8 sps:$4 sm:$0xff]   ;;  %v13442_v19 = vld [vmem:[#allocation11 + $0x7d0] ss:$8 sps:$4 sm:$0xff]  }
 0x699   :  { %9433 = vmatprep.subr.bf16.mxu1 %v13471_v45  ;;  %v13447_v45 = vld [vmem:[#allocation11 + $0x7e4] ss:$8 sps:$4 sm:$0xff]  }
 0x69b   :  { %9057 = vmatpush1.bf16.msra.mxu0 %v13373_v37  ;;  %v13433_v37 = vld [vmem:[#allocation11 + $0x7a0] ss:$8 sps:$4 sm:$0xff]  }
 0x69c   :  { %9058 = vmatprep.subr.bf16.mxu0 %v13378_v35  ;;  %9434 = vmatpush1.bf16.msra.mxu1 %v13469_v47  ;;  %v13438_v35 = vld [vmem:[#allocation11 + $0x7b4] ss:$8 sps:$4 sm:$0xff]   ;;  %v13448_v47 = vld [vmem:[#allocation11 + $0x7f0] ss:$8 sps:$4 sm:$0xff]  }
 0x69d   :  { %9435 = vmatprep.subr.bf16.mxu1 %v13474_v28  ;;  %v11366_v28 = vcombine.high %v14972_v7, %v15071_v9 }
 0x69f   :  { %9059 = vmatpush1.bf16.msra.mxu0 %v13376_v38  ;;  %v13439_v38 = vld [vmem:[#allocation11 + $0x7c0] ss:$8 sps:$4 sm:$0xff]  }
 0x6a0   :  { %9060 = vmatprep.subr.bf16.mxu0 %v13381_v41  ;;  %9436 = vmatpush1.bf16.msra.mxu1 %v13472_v22  ;;  %v13444_v41 = vld [vmem:[#allocation11 + $0x7d4] ss:$8 sps:$4 sm:$0xff]  }
 0x6a1   :  { %9437 = vmatprep.subr.bf16.mxu1 %v13477_v51  ;;  %v13490_v22 = vld [vmem:[#allocation14 + $0x1d0] ss:$8 sps:$4 sm:$0xff]   ;;  %v13495_v51 = vld [vmem:[#allocation14 + $0x1e4] ss:$8 sps:$4 sm:$0xff]  }
 0x6a3   :  { %9061 = vmatpush1.bf16.msra.mxu0 %v13379_v31  ;;  %v13445_v31 = vld [vmem:[#allocation11 + $0x7e0] ss:$8 sps:$4 sm:$0xff]  }
 0x6a4   :  { %9062 = vmatprep.subr.bf16.mxu0 %v13384_v15  ;;  %9438 = vmatpush1.bf16.msra.mxu1 %v13475_v50  ;;  %v13450_v15 = vld [vmem:[#allocation11 + $0x7f4] ss:$8 sps:$4 sm:$0xff]  }
 0x6a5   :  { %9439 = vmatprep.subr.bf16.mxu1 %v13480_v5  ;;  %v13496_v50 = vld [vmem:[#allocation14 + $0x1f0] ss:$8 sps:$4 sm:$0xff]   ;;  %v13501_v5 = vld [vmem:[#allocation14 + $0x4] ss:$8 sps:$4 sm:$0xff]  }
 0x6a7   :  { %9063 = vmatpush1.bf16.msra.mxu0 %v13382_v23  ;;  %v11365_v23 = vcombine.low %v14972_v7, %v15071_v9 }
 0x6a8   :  { %9064 = vmatprep.subr.bf16.mxu0 %v13387_v25  ;;  %9440 = vmatpush1.bf16.msra.mxu1 %v13478_v54  ;;  %v13492_v25 = vld [vmem:[#allocation14 + $0x1d4] ss:$8 sps:$4 sm:$0xff]  }
 0x6a9   :  { %9441 = vmatprep.subr.bf16.mxu1 %v13483_v2 }
 0x6ab   :  { %9065 = vmatpush1.bf16.msra.mxu0 %v13385_v20  ;;  %v13493_v20 = vld [vmem:[#allocation14 + $0x1e0] ss:$8 sps:$4 sm:$0xff]  }
 0x6ac   :  { %9066 = vmatprep.subr.bf16.mxu0 %v13390_v55  ;;  %9442 = vmatpush1.bf16.msra.mxu1 %v13481_v36  ;;  %v13498_v55 = vld [vmem:[#allocation14 + $0x1f4] ss:$8 sps:$4 sm:$0xff]  }
 0x6ad   :  { %9443 = vmatprep.subr.bf16.mxu1 %v13486_v13 }
 0x6af   :  { %9067 = vmatpush1.bf16.msra.mxu0 %v13388_v24 }
 0x6b0   :  { %9068 = vmatprep.subr.bf16.mxu0 %v13393_v32  ;;  %9444 = vmatpush1.bf16.msra.mxu1 %v13484_v4 }
 0x6b1   :  { %9445 = vmatprep.subr.bf16.mxu1 %v13489_v11 }
 0x6b3   :  { %9069 = vmatpush1.bf16.msra.mxu0 %v13391_v26 }
 0x6b4   :  { %9070 = vmatprep.subr.bf16.mxu0 %v13396_v0  ;;  %9446 = vmatpush1.bf16.msra.mxu1 %v13487_v59 }
 0x6b5   :  { %9447 = vmatprep.subr.bf16.mxu1 %v13492_v25  ;;  %v13532_v25 = vld [vmem:[#allocation14 + $0xb0] ss:$8 sps:$4 sm:$0xff]  }
 0x6b7   :  { %9071 = vmatpush1.bf16.msra.mxu0 %v13394_v43 }
 0x6b8   :  { %9072 = vmatprep.subr.bf16.mxu0 %v13399_v40  ;;  %9448 = vmatpush1.bf16.msra.mxu1 %v13490_v22  ;;  %v13537_v22 = vld [vmem:[#allocation14 + $0xc4] ss:$8 sps:$4 sm:$0xff]  }
 0x6b9   :  { %9449 = vmatprep.subr.bf16.mxu1 %v13495_v51  ;;  %v13535_v51 = vld [vmem:[#allocation14 + $0xc0] ss:$8 sps:$4 sm:$0xff]  }
 0x6bb   :  { %9073 = vmatpush1.bf16.msra.mxu0 %v13397_v49 }
 0x6bc   :  { %9074 = vmatprep.subr.bf16.mxu0 %v13402_v46  ;;  %9450 = vmatpush1.bf16.msra.mxu1 %v13493_v20  ;;  %v13540_v20 = vld [vmem:[#allocation14 + $0xd4] ss:$8 sps:$4 sm:$0xff]  }
 0x6bd   :  { %9451 = vmatprep.subr.bf16.mxu1 %v13498_v55  ;;  %v13538_v55 = vld [vmem:[#allocation14 + $0xd0] ss:$8 sps:$4 sm:$0xff]  }
 0x6bf   :  { %9075 = vmatpush1.bf16.msra.mxu0 %v13400_v12 }
 0x6c0   :  { %9097 = vmatprep.subr.bf16.mxu0 %v13405_v27  ;;  %9452 = vmatpush1.bf16.msra.mxu1 %v13496_v50  ;;  %v13543_v50 = vld [vmem:[#allocation14 + $0xe4] ss:$8 sps:$4 sm:$0xff]  }
 0x6c1   :  { %9622 = vmatprep.subr.bf16.mxu1 %v13501_v5  ;;  %v13541_v5 = vld [vmem:[#allocation14 + $0xe0] ss:$8 sps:$4 sm:$0xff]  }
 0x6c2   :  { %9077 = vmatmul.mubr.bf16.vlgmr.msra.gmra.mrb[48].mxu0 %v14941_v57  ;;  %v13415_v57 = vld [vmem:[#allocation11 + $0x740] ss:$8 sps:$4 sm:$0xff]  }
 0x6c3   :  { %9086 = vmatprep.mubr.bf16.mxu0 %v11364_v1  ;;  %9098 = vmatpush1.bf16.msra.mxu0 %v13403_v33 }
 0x6c4   :  { %9099 = vmatprep.subr.bf16.mxu0 %v13408_v58 }
 0x6c7   :  { %9100 = vmatpush1.bf16.msra.mxu0 %v13406_v34  ;;  %v13499_v34 = vld [vmem:[#allocation14] ss:$8 sps:$4 sm:$0xff]  }
 0x6c8   :  { %9101 = vmatprep.subr.bf16.mxu0 %v13411_v56 }
 0x6ca   :  { %9087 = vmatmul.mubr.bf16.gmra.mrb[52].mxu0 %v11363_v48 }
 0x6cb   :  { %9102 = vmatpush1.bf16.msra.mxu0 %v13409_v6  ;;  %9129 = vmatprep.mubr.bf16.mxu0 %v14950_v52  ;;  %v13427_v52 = vld [vmem:[#allocation11 + $0x780] ss:$8 sps:$4 sm:$0xff]  }
 0x6cc   :  { %9103 = vmatprep.subr.bf16.mxu0 %v13414_v29  ;;  %v13504_v29 = vld [vmem:[#allocation14 + $0x14] ss:$8 sps:$4 sm:$0xff]  }
 0x6cf   :  { %9104 = vmatpush1.bf16.msra.mxu0 %v13412_v44 }
 0x6d0   :  { %9105 = vmatprep.subr.bf16.mxu0 %v13417_v16 }
 0x6d3   :  { %9106 = vmatpush1.bf16.msra.mxu0 %v13415_v57 }
 0x6d4   :  { %9107 = vmatprep.subr.bf16.mxu0 %v13420_v14 }
 0x6d7   :  { %9108 = vmatpush1.bf16.msra.mxu0 %v13418_v53 }
 0x6d8   :  { %9109 = vmatprep.subr.bf16.mxu0 %v13423_v18  ;;  %v13502_v18 = vld [vmem:[#allocation14 + $0x10] ss:$8 sps:$4 sm:$0xff]  }
 0x6db   :  { %9110 = vmatpush1.bf16.msra.mxu0 %v13421_v10 }
 0x6dc   :  { %9111 = vmatprep.subr.bf16.mxu0 %v13426_v8  ;;  %v13507_v8 = vld [vmem:[#allocation14 + $0x24] ss:$8 sps:$4 sm:$0xff]  }
 0x6df   :  { %9112 = vmatpush1.bf16.msra.mxu0 %v13424_v3 }
 0x6e0   :  { %9113 = vmatprep.subr.bf16.mxu0 %v13429_v17  ;;  %v13505_v17 = vld [vmem:[#allocation14 + $0x20] ss:$8 sps:$4 sm:$0xff]  }
 0x6e3   :  { %9114 = vmatpush1.bf16.msra.mxu0 %v13427_v52  ;;  %v13510_v52 = vld [vmem:[#allocation14 + $0x34] ss:$8 sps:$4 sm:$0xff]  }
 0x6e4   :  { %9115 = vmatprep.subr.bf16.mxu0 %v13432_v21  ;;  %v13508_v21 = vld [vmem:[#allocation14 + $0x30] ss:$8 sps:$4 sm:$0xff]  }
 0x6e7   :  { %9116 = vmatpush1.bf16.msra.mxu0 %v13430_v63  ;;  %v13513_v63 = vld [vmem:[#allocation14 + $0x44] ss:$8 sps:$4 sm:$0xff]  }
 0x6e8   :  { %9117 = vmatprep.subr.bf16.mxu0 %v13435_v61  ;;  %v13511_v61 = vld [vmem:[#allocation14 + $0x40] ss:$8 sps:$4 sm:$0xff]  }
 0x6eb   :  { %9118 = vmatpush1.bf16.msra.mxu0 %v13433_v37  ;;  %v13516_v37 = vld [vmem:[#allocation14 + $0x54] ss:$8 sps:$4 sm:$0xff]  }
 0x6ec   :  { %9119 = vmatprep.subr.bf16.mxu0 %v13438_v35  ;;  %v13514_v35 = vld [vmem:[#allocation14 + $0x50] ss:$8 sps:$4 sm:$0xff]  }
 0x6ef   :  { %9120 = vmatpush1.bf16.msra.mxu0 %v13436_v60  ;;  %v13519_v60 = vld [vmem:[#allocation14 + $0x64] ss:$8 sps:$4 sm:$0xff]  }
 0x6f0   :  { %9121 = vmatprep.subr.bf16.mxu0 %v13441_v39  ;;  %v13517_v39 = vld [vmem:[#allocation14 + $0x60] ss:$8 sps:$4 sm:$0xff]  }
 0x6f3   :  { %9122 = vmatpush1.bf16.msra.mxu0 %v13439_v38  ;;  %v13522_v38 = vld [vmem:[#allocation14 + $0x74] ss:$8 sps:$4 sm:$0xff]  }
 0x6f4   :  { %9123 = vmatprep.subr.bf16.mxu0 %v13444_v41  ;;  %v13520_v41 = vld [vmem:[#allocation14 + $0x70] ss:$8 sps:$4 sm:$0xff]  }
 0x6f7   :  { %9124 = vmatpush1.bf16.msra.mxu0 %v13442_v19  ;;  %v13525_v19 = vld [vmem:[#allocation14 + $0x84] ss:$8 sps:$4 sm:$0xff]  }
 0x6f8   :  { %9125 = vmatprep.subr.bf16.mxu0 %v13447_v45  ;;  %v13523_v45 = vld [vmem:[#allocation14 + $0x80] ss:$8 sps:$4 sm:$0xff]  }
 0x6fb   :  { %9126 = vmatpush1.bf16.msra.mxu0 %v13445_v31  ;;  %v13528_v31 = vld [vmem:[#allocation14 + $0x94] ss:$8 sps:$4 sm:$0xff]  }
 0x6fc   :  { %9127 = vmatprep.subr.bf16.mxu0 %v13450_v15  ;;  %v13526_v15 = vld [vmem:[#allocation14 + $0x90] ss:$8 sps:$4 sm:$0xff]  }
 0x6ff   :  { %9128 = vmatpush1.bf16.msra.mxu0 %v13448_v47  ;;  %v13531_v47 = vld [vmem:[#allocation14 + $0xa4] ss:$8 sps:$4 sm:$0xff]  }
 0x702   :  { %9130 = vmatmul.mubr.bf16.vlgmr.msra.gmra.mrb[48].mxu0 %v14946_v30  ;;  %v9158_v30 = vld [vmem:[#allocation12] sm:$0x3] }
 0x703   :  { %9139 = vmatprep.mubr.bf16.mxu0 %v11366_v28  ;;  %v9163_v24 = vrot.slane %v9158_v30, %v15078_v62  ;;  %v9167_v9 = vrot.slane %v9158_v30, %v15079_v42  ;;  %v13529_v28 = vld [vmem:[#allocation14 + $0xa0] ss:$8 sps:$4 sm:$0xff]   ;;  %v13546_v30 = vld [vmem:[#allocation14 + $0xf4] ss:$8 sps:$4 sm:$0xff]  }
 0x70a   :  { %9140 = vmatmul.mubr.bf16.gmra.mrb[52].mxu0 %v11365_v23  ;;  %v13534_v23 = vld [vmem:[#allocation14 + $0xb4] ss:$8 sps:$4 sm:$0xff]  }
 0x7d5   :  { %v9131_v7 = vpop.f32.mrb[48].mxu0 }
 0x7d6   :  { %v9170_v32 = vadd.f32 %v9163_v24, %v9131_v7  ;;  %v9133_v54 = vpop.f32.mrb[49].mxu0  ;;  %v13547_v7 = vld [vmem:[#allocation14 + $0x200] ss:$8 sps:$4 sm:$0xff]  }
 0x7d7   :  { %v9171_v2 = vadd.f32 %v9167_v9, %v9133_v54  ;;  %v9135_v26 = vpop.f32.mrb[50].mxu0  ;;  %v13550_v54 = vld [vmem:[#allocation14 + $0x210] ss:$8 sps:$4 sm:$0xff]  }
 0x7d8   :  { %v9172_v0 = vadd.f32 %v9163_v24, %v9135_v26  ;;  %v9137_v36 = vpop.f32.mrb[51].mxu0  ;;  %v9178_v43 = vmax.f32 %v9170_v32, 0.0  ;;  %v13552_v32 = vld [vmem:[#allocation14 + $0x214] ss:$8 sps:$4 sm:$0xff]   ;;  %v13553_v26 = vld [vmem:[#allocation14 + $0x220] ss:$8 sps:$4 sm:$0xff]  }
 0x7d9   :  { %v9173_v13 = vadd.f32 %v9167_v9, %v9137_v36  ;;  %v9179_v4 = vmax.f32 %v9171_v2, 0.0  ;;  %v13555_v2 = vld [vmem:[#allocation14 + $0x224] ss:$8 sps:$4 sm:$0xff]   ;;  %v13556_v36 = vld [vmem:[#allocation14 + $0x230] ss:$8 sps:$4 sm:$0xff]  }
 0x7da   :  { %v9180_v40 = vmax.f32 %v9172_v0, 0.0  ;;  %v13558_v0 = vld [vmem:[#allocation14 + $0x234] ss:$8 sps:$4 sm:$0xff]  }
 0x7db   :  { %v9181_v11 = vmax.f32 %v9173_v13, 0.0  ;;  %v13561_v13 = vld [vmem:[#allocation14 + $0x244] ss:$8 sps:$4 sm:$0xff]  }
 0x7dc   :  { %v15019_v49 = vpack.c.bf16 %v9180_v40, %v9178_v43  ;;  %v13559_v43 = vld [vmem:[#allocation14 + $0x240] ss:$8 sps:$4 sm:$0xff]   ;;  %v13564_v40 = vld [vmem:[#allocation14 + $0x254] ss:$8 sps:$4 sm:$0xff]  }
 0x7dd   :  { %v9187_v46 = vpack.c.bf16 %v9181_v11, %v9179_v4  ;;  %v9141_v59 = vpop.f32.mrb[52].mxu0  ;;  %v13562_v4 = vld [vmem:[#allocation14 + $0x250] ss:$8 sps:$4 sm:$0xff]   ;;  %v13567_v11 = vld [vmem:[#allocation14 + $0x264] ss:$8 sps:$4 sm:$0xff]  }
 0x7de   :  { %v9174_v12 = vadd.f32 %v9163_v24, %v9141_v59  ;;  %v9143_v27 = vpop.f32.mrb[53].mxu0  ;;  %v9257_v56 = vrot.slane %v15019_v49, 4  ;;  %v13568_v59 = vld [vmem:[#allocation14 + $0x270] ss:$8 sps:$4 sm:$0xff]  }
 0x7df   :  { %v9175_v33 = vadd.f32 %v9167_v9, %v9143_v27  ;;  %v9145_v58 = vpop.f32.mrb[54].mxu0  ;;  %v9258_v1 = vrot.slane %v9187_v46, 4  ;;  %v13571_v27 = vld [vmem:[#allocation14 + $0x280] ss:$8 sps:$4 sm:$0xff]  }
 0x7e0   :  { %v9176_v6 = vadd.f32 %v9163_v24, %v9145_v58  ;;  %v9147_v48 = vpop.f32.mrb[55].mxu0  ;;  %v9182_v16 = vmax.f32 %v9174_v12, 0.0  ;;  %v13544_v24 = vld [vmem:[#allocation14 + $0xf0] ss:$8 sps:$4 sm:$0xff]   ;;  %v13573_v12 = vld [vmem:[#allocation14 + $0x284] ss:$8 sps:$4 sm:$0xff]  }
 0x7e1   :  { %v9177_v44 = vadd.f32 %v9167_v9, %v9147_v48  ;;  %9453 = vmatprep.mubr.bf16.mxu1 %v9258_v1  ;;  %v9183_v14 = vmax.f32 %v9175_v33, 0.0  ;;  %v13549_v9 = vld [vmem:[#allocation14 + $0x204] ss:$8 sps:$4 sm:$0xff]   ;;  %v13576_v33 = vld [vmem:[#allocation14 + $0x294] ss:$8 sps:$4 sm:$0xff]  }
 0x7e2   :  { %v9184_v57 = vmax.f32 %v9176_v6, 0.0  ;;  %9454 = vmatmul.mubr.bf16.vlgmr.msra.gmra.mrb[80].mxu1 %v9257_v56  ;;  %v13574_v58 = vld [vmem:[#allocation14 + $0x290] ss:$8 sps:$4 sm:$0xff]   ;;  %v13579_v1 = vld [vmem:[#allocation14 + $0x2a4] ss:$8 sps:$4 sm:$0xff]  }
 0x7e3   :  { %v9185_v53 = vmax.f32 %v9177_v44, 0.0  ;;  %9623 = vmatpush1.bf16.msra.mxu1 %v13499_v34  ;;  %9654 = vmatprep.mubr.bf16.mxu1 %v9187_v46  ;;  %v13570_v46 = vld [vmem:[#allocation14 + $0x274] ss:$8 sps:$4 sm:$0xff]   ;;  %v13577_v34 = vld [vmem:[#allocation14 + $0x2a0] ss:$8 sps:$4 sm:$0xff]  }
 0x7e4   :  { %v15022_v10 = vpack.c.bf16 %v9184_v57, %v9182_v16  ;;  %9624 = vmatprep.subr.bf16.mxu1 %v13504_v29  ;;  %v13582_v56 = vld [vmem:[#allocation14 + $0x2b4] ss:$8 sps:$4 sm:$0xff]   ;;  %v13580_v6 = vld [vmem:[#allocation14 + $0x2b0] ss:$8 sps:$4 sm:$0xff]   ;;  %v13585_v48 = vld [vmem:[#allocation14 + $0x2c4] ss:$8 sps:$4 sm:$0xff]  }
 0x7e5   :  { %v15024_v3 = vpack.c.bf16 %v9185_v53, %v9183_v14  ;;  %v13583_v29 = vld [vmem:[#allocation14 + $0x2c0] ss:$8 sps:$4 sm:$0xff]   ;;  %v13588_v44 = vld [vmem:[#allocation14 + $0x2d4] ss:$8 sps:$4 sm:$0xff]   ;;  %v13586_v16 = vld [vmem:[#allocation14 + $0x2d0] ss:$8 sps:$4 sm:$0xff]  }
 0x7e6   :  { %v13591_v57 = vld [vmem:[#allocation14 + $0x2e4] ss:$8 sps:$4 sm:$0xff]   ;;  %v13589_v14 = vld [vmem:[#allocation14 + $0x2e0] ss:$8 sps:$4 sm:$0xff]   ;;  %v13594_v53 = vld [vmem:[#allocation14 + $0x2f4] ss:$8 sps:$4 sm:$0xff]  }
 0x7e7   :  { %9625 = vmatpush1.bf16.msra.mxu1 %v13502_v18  ;;  %v13592_v18 = vld [vmem:[#allocation14 + $0x2f0] ss:$8 sps:$4 sm:$0xff]  }
 0x7e8   :  { %9626 = vmatprep.subr.bf16.mxu1 %v13507_v8  ;;  %v13597_v8 = vld [vmem:[#allocation14 + $0x304] ss:$8 sps:$4 sm:$0xff]  }
 0x7eb   :  { %9627 = vmatpush1.bf16.msra.mxu1 %v13505_v17  ;;  %v13595_v17 = vld [vmem:[#allocation14 + $0x300] ss:$8 sps:$4 sm:$0xff]  }
 0x7ec   :  { %9628 = vmatprep.subr.bf16.mxu1 %v13510_v52  ;;  %v13600_v52 = vld [vmem:[#allocation14 + $0x314] ss:$8 sps:$4 sm:$0xff]  }
 0x7ef   :  { %9629 = vmatpush1.bf16.msra.mxu1 %v13508_v21  ;;  %v9935_v21 = vrot.slane %v15024_v3, 4 }
 0x7f0   :  { %9630 = vmatprep.subr.bf16.mxu1 %v13513_v63  ;;  %v13598_v63 = vld [vmem:[#allocation14 + $0x310] ss:$8 sps:$4 sm:$0xff]  }
 0x7f3   :  { %9631 = vmatpush1.bf16.msra.mxu1 %v13511_v61  ;;  %v13603_v61 = vld [vmem:[#allocation14 + $0x324] ss:$8 sps:$4 sm:$0xff]  }
 0x7f4   :  { %9632 = vmatprep.subr.bf16.mxu1 %v13516_v37  ;;  %v13601_v37 = vld [vmem:[#allocation14 + $0x320] ss:$8 sps:$4 sm:$0xff]  }
 0x7f7   :  { %9633 = vmatpush1.bf16.msra.mxu1 %v13514_v35  ;;  %v13606_v35 = vld [vmem:[#allocation14 + $0x334] ss:$8 sps:$4 sm:$0xff]  }
 0x7f8   :  { %9634 = vmatprep.subr.bf16.mxu1 %v13519_v60  ;;  %v13604_v60 = vld [vmem:[#allocation14 + $0x330] ss:$8 sps:$4 sm:$0xff]  }
 0x7fb   :  { %9635 = vmatpush1.bf16.msra.mxu1 %v13517_v39  ;;  %v13609_v39 = vld [vmem:[#allocation14 + $0x344] ss:$8 sps:$4 sm:$0xff]  }
 0x7fc   :  { %9636 = vmatprep.subr.bf16.mxu1 %v13522_v38  ;;  %v13607_v38 = vld [vmem:[#allocation14 + $0x340] ss:$8 sps:$4 sm:$0xff]  }
 0x7ff   :  { %9637 = vmatpush1.bf16.msra.mxu1 %v13520_v41  ;;  %v13612_v41 = vld [vmem:[#allocation14 + $0x354] ss:$8 sps:$4 sm:$0xff]  }
 0x800   :  { %9638 = vmatprep.subr.bf16.mxu1 %v13525_v19  ;;  %v13615_v19 = vld [vmem:[#allocation14 + $0x364] ss:$8 sps:$4 sm:$0xff]  }
 0x803   :  { %9639 = vmatpush1.bf16.msra.mxu1 %v13523_v45  ;;  %v13613_v45 = vld [vmem:[#allocation14 + $0x360] ss:$8 sps:$4 sm:$0xff]  }
 0x804   :  { %9640 = vmatprep.subr.bf16.mxu1 %v13528_v31  ;;  %v13618_v31 = vld [vmem:[#allocation14 + $0x374] ss:$8 sps:$4 sm:$0xff]  }
 0x807   :  { %9641 = vmatpush1.bf16.msra.mxu1 %v13526_v15  ;;  %v13616_v15 = vld [vmem:[#allocation14 + $0x370] ss:$8 sps:$4 sm:$0xff]  }
 0x808   :  { %9642 = vmatprep.subr.bf16.mxu1 %v13531_v47  ;;  %v13621_v47 = vld [vmem:[#allocation14 + $0x384] ss:$8 sps:$4 sm:$0xff]  }
 0x80b   :  { %9643 = vmatpush1.bf16.msra.mxu1 %v13529_v28  ;;  %v13619_v28 = vld [vmem:[#allocation14 + $0x380] ss:$8 sps:$4 sm:$0xff]  }
 0x80c   :  { %9644 = vmatprep.subr.bf16.mxu1 %v13534_v23  ;;  %v13624_v23 = vld [vmem:[#allocation14 + $0x394] ss:$8 sps:$4 sm:$0xff]  }
 0x80f   :  { %9645 = vmatpush1.bf16.msra.mxu1 %v13532_v25  ;;  %v13622_v25 = vld [vmem:[#allocation14 + $0x390] ss:$8 sps:$4 sm:$0xff]  }
 0x810   :  { %9646 = vmatprep.subr.bf16.mxu1 %v13537_v22  ;;  %v13627_v22 = vld [vmem:[#allocation14 + $0x3a4] ss:$8 sps:$4 sm:$0xff]  }
 0x813   :  { %9647 = vmatpush1.bf16.msra.mxu1 %v13535_v51  ;;  %v13625_v51 = vld [vmem:[#allocation14 + $0x3a0] ss:$8 sps:$4 sm:$0xff]  }
 0x814   :  { %9648 = vmatprep.subr.bf16.mxu1 %v13540_v20  ;;  %v13630_v20 = vld [vmem:[#allocation14 + $0x3b4] ss:$8 sps:$4 sm:$0xff]  }
 0x817   :  { %9649 = vmatpush1.bf16.msra.mxu1 %v13538_v55  ;;  %v13628_v55 = vld [vmem:[#allocation14 + $0x3b0] ss:$8 sps:$4 sm:$0xff]  }
 0x818   :  { %9650 = vmatprep.subr.bf16.mxu1 %v13543_v50  ;;  %v13633_v50 = vld [vmem:[#allocation14 + $0x3c4] ss:$8 sps:$4 sm:$0xff]  }
 0x81b   :  { %9651 = vmatpush1.bf16.msra.mxu1 %v13541_v5  ;;  %v13631_v5 = vld [vmem:[#allocation14 + $0x3c0] ss:$8 sps:$4 sm:$0xff]  }
 0x81c   :  { %9652 = vmatprep.subr.bf16.mxu1 %v13546_v30  ;;  %v13636_v30 = vld [vmem:[#allocation14 + $0x3d4] ss:$8 sps:$4 sm:$0xff]  }
 0x81f   :  { %9653 = vmatpush1.bf16.msra.mxu1 %v13544_v24  ;;  %v13634_v24 = vld [vmem:[#allocation14 + $0x3d0] ss:$8 sps:$4 sm:$0xff]  }
 0x820   :  { %9856 = vmatprep.subr.bf16.mxu1 %v13549_v9  ;;  %v13639_v9 = vld [vmem:[#allocation14 + $0x3e4] ss:$8 sps:$4 sm:$0xff]  }
 0x822   :  { %9655 = vmatmul.mubr.bf16.vlgmr.msra.gmra.mrb[84].mxu1 %v15019_v49  ;;  %v13565_v49 = vld [vmem:[#allocation14 + $0x260] ss:$8 sps:$4 sm:$0xff]  }
 0x823   :  { %9857 = vmatpush1.bf16.msra.mxu1 %v13547_v7  ;;  %9888 = vmatprep.mubr.bf16.mxu1 %v15024_v3  ;;  %v13610_v3 = vld [vmem:[#allocation14 + $0x350] ss:$8 sps:$4 sm:$0xff]   ;;  %v13637_v7 = vld [vmem:[#allocation14 + $0x3e0] ss:$8 sps:$4 sm:$0xff]  }
 0x824   :  { %9858 = vmatprep.subr.bf16.mxu1 %v13552_v32  ;;  %v13642_v32 = vld [vmem:[#allocation14 + $0x3f4] ss:$8 sps:$4 sm:$0xff]  }
 0x827   :  { %9859 = vmatpush1.bf16.msra.mxu1 %v13550_v54  ;;  %v13640_v54 = vld [vmem:[#allocation14 + $0x3f0] ss:$8 sps:$4 sm:$0xff]  }
 0x828   :  { %9860 = vmatprep.subr.bf16.mxu1 %v13555_v2  ;;  %v9934_v2 = vrot.slane %v15022_v10, 4 }
 0x82b   :  { %9861 = vmatpush1.bf16.msra.mxu1 %v13553_v26 }
 0x82c   :  { %9862 = vmatprep.subr.bf16.mxu1 %v13558_v0 }
 0x82f   :  { %9863 = vmatpush1.bf16.msra.mxu1 %v13556_v36 }
 0x830   :  { %9864 = vmatprep.subr.bf16.mxu1 %v13561_v13 }
 0x833   :  { %9865 = vmatpush1.bf16.msra.mxu1 %v13559_v43  ;;  %v13643_v43 = vld [vmem:[#allocation17 + $0x40] sm:$0xff]  }
 0x834   :  { %9866 = vmatprep.subr.bf16.mxu1 %v13564_v40  ;;  %v13644_v40 = vld [vmem:[#allocation17] sm:$0xff]  }
 0x837   :  { %9867 = vmatpush1.bf16.msra.mxu1 %v13562_v4  ;;  %v13645_v4 = vld [vmem:[#allocation17 + $0x48] sm:$0xff]  }
 0x838   :  { %9868 = vmatprep.subr.bf16.mxu1 %v13567_v11  ;;  %v13646_v11 = vld [vmem:[#allocation17 + $0x8] sm:$0xff]  }
 0x83b   :  { %9869 = vmatpush1.bf16.msra.mxu1 %v13565_v49  ;;  %v13647_v49 = vld [vmem:[#allocation17 + $0x50] sm:$0xff]  }
 0x83c   :  { %9870 = vmatprep.subr.bf16.mxu1 %v13570_v46  ;;  %v13648_v46 = vld [vmem:[#allocation17 + $0x10] sm:$0xff]  }
 0x83f   :  { %9871 = vmatpush1.bf16.msra.mxu1 %v13568_v59  ;;  %v13649_v59 = vld [vmem:[#allocation17 + $0x58] sm:$0xff]  }
 0x840   :  { %9872 = vmatprep.subr.bf16.mxu1 %v13573_v12  ;;  %v13650_v12 = vld [vmem:[#allocation17 + $0x18] sm:$0xff]  }
 0x843   :  { %9873 = vmatpush1.bf16.msra.mxu1 %v13571_v27  ;;  %v13652_v27 = vld [vmem:[#allocation17 + $0x20] sm:$0xff]  }
 0x844   :  { %9874 = vmatprep.subr.bf16.mxu1 %v13576_v33  ;;  %v13653_v33 = vld [vmem:[#allocation17 + $0x68] sm:$0xff]  }
 0x847   :  { %9875 = vmatpush1.bf16.msra.mxu1 %v13574_v58 }
 0x848   :  { %9876 = vmatprep.subr.bf16.mxu1 %v13579_v1 }
 0x84b   :  { %9877 = vmatpush1.bf16.msra.mxu1 %v13577_v34 }
 0x84c   :  { %9878 = vmatprep.subr.bf16.mxu1 %v13582_v56  ;;  %v13654_v56 = vld [vmem:[#allocation17 + $0x28] sm:$0xff]  }
 0x84f   :  { %9879 = vmatpush1.bf16.msra.mxu1 %v13580_v6 }
 0x850   :  { %9880 = vmatprep.subr.bf16.mxu1 %v13585_v48 }
 0x853   :  { %9881 = vmatpush1.bf16.msra.mxu1 %v13583_v29 }
 0x854   :  { %9882 = vmatprep.subr.bf16.mxu1 %v13588_v44  ;;  %v13655_v44 = vld [vmem:[#allocation17 + $0x70] sm:$0xff]  }
 0x857   :  { %9883 = vmatpush1.bf16.msra.mxu1 %v13586_v16  ;;  %v13656_v16 = vld [vmem:[#allocation17 + $0x30] sm:$0xff]  }
 0x858   :  { %9884 = vmatprep.subr.bf16.mxu1 %v13591_v57  ;;  %v13657_v57 = vld [vmem:[#allocation17 + $0x78] sm:$0xff]  }
 0x85b   :  { %9885 = vmatpush1.bf16.msra.mxu1 %v13589_v14  ;;  %v13658_v14 = vld [vmem:[#allocation17 + $0x38] sm:$0xff]  }
 0x85c   :  { %9886 = vmatprep.subr.bf16.mxu1 %v13594_v53 }
 0x85f   :  { %9887 = vmatpush1.bf16.msra.mxu1 %v13592_v18 }
 0x860   :  { %10098 = vmatprep.subr.bf16.mxu1 %v13597_v8 }
 0x862   :  { %9889 = vmatmul.mubr.bf16.vlgmr.msra.gmra.mrb[88].mxu1 %v15022_v10  ;;  %v13651_v10 = vld [vmem:[#allocation17 + $0x60] sm:$0xff]  }
 0x863   :  { %10099 = vmatpush1.bf16.msra.mxu1 %v13595_v17  ;;  %10130 = vmatprep.mubr.bf16.mxu1 %v9935_v21 }
 0x864   :  { %10100 = vmatprep.subr.bf16.mxu1 %v13600_v52 }
 0x867   :  { %10101 = vmatpush1.bf16.msra.mxu1 %v13598_v63  ;;  %v10141_v63 = vld [vmem:[#allocation15] sm:$0x3] }
 0x868   :  { %10102 = vmatprep.subr.bf16.mxu1 %v13603_v61  ;;  %v10146_v61 = vrot.slane %v10141_v63, %v15078_v62 }
 0x86b   :  { %10103 = vmatpush1.bf16.msra.mxu1 %v13601_v37 }
 0x86c   :  { %10104 = vmatprep.subr.bf16.mxu1 %v13606_v35  ;;  %v10150_v35 = vrot.slane %v10141_v63, %v15079_v42 }
 0x86f   :  { %10105 = vmatpush1.bf16.msra.mxu1 %v13604_v60 }
 0x870   :  { %10106 = vmatprep.subr.bf16.mxu1 %v13609_v39 }
 0x873   :  { %10107 = vmatpush1.bf16.msra.mxu1 %v13607_v38 }
 0x874   :  { %10108 = vmatprep.subr.bf16.mxu1 %v13612_v41 }
 0x877   :  { %10109 = vmatpush1.bf16.msra.mxu1 %v13610_v3 }
 0x878   :  { %10110 = vmatprep.subr.bf16.mxu1 %v13615_v19 }
 0x87b   :  { %10111 = vmatpush1.bf16.msra.mxu1 %v13613_v45 }
 0x87c   :  { %10112 = vmatprep.subr.bf16.mxu1 %v13618_v31 }
 0x87f   :  { %10113 = vmatpush1.bf16.msra.mxu1 %v13616_v15 }
 0x880   :  { %10114 = vmatprep.subr.bf16.mxu1 %v13621_v47 }
 0x883   :  { %10115 = vmatpush1.bf16.msra.mxu1 %v13619_v28 }
 0x884   :  { %10116 = vmatprep.subr.bf16.mxu1 %v13624_v23  ;;  %v15081_v23 = vlaneseq }
 0x887   :  { %10117 = vmatpush1.bf16.msra.mxu1 %v13622_v25  ;;  %v10335_v25 = vand.u32 127, %v15081_v23 }
 0x888   :  { %10118 = vmatprep.subr.bf16.mxu1 %v13627_v22 }
 0x889   :  { %vm10336_vm1 = vcmp.lt.s32.totalorder %v10335_v25, 10 }
 0x88b   :  { %10119 = vmatpush1.bf16.msra.mxu1 %v13625_v51  ;;  %v11559_v51 = vld [vmem:[#allocation18] ss:$0 sm:$0xff] }
 0x88c   :  { %10120 = vmatprep.subr.bf16.mxu1 %v13630_v20 }
 0x88f   :  { %10121 = vmatpush1.bf16.msra.mxu1 %v13628_v55 }
 0x890   :  { %10122 = vmatprep.subr.bf16.mxu1 %v13633_v50 }
 0x893   :  { %10123 = vmatpush1.bf16.msra.mxu1 %v13631_v5 }
 0x894   :  { %10124 = vmatprep.subr.bf16.mxu1 %v13636_v30 }
 0x897   :  { %10125 = vmatpush1.bf16.msra.mxu1 %v13634_v24 }
 0x898   :  { %10126 = vmatprep.subr.bf16.mxu1 %v13639_v9 }
 0x89b   :  { %10127 = vmatpush1.bf16.msra.mxu1 %v13637_v7 }
 0x89c   :  { %10128 = vmatprep.subr.bf16.mxu1 %v13642_v32 }
 0x89f   :  { %10129 = vmatpush1.bf16.msra.mxu1 %v13640_v54 }
 0x8a0   :  { %11704 = vmatprep.subr.bf16.mxu1 %v13643_v43 }
 0x8a2   :  { %10131 = vmatmul.mubr.bf16.vlgmr.msra.gmra.mrb[92].mxu1 %v9934_v2 }
 0x8a3   :  { %11705 = vmatpush3.bf16.msra.mxu1 %v13644_v40 }
 0x8a4   :  { %11706 = vmatprep.subr.bf16.mxu1 %v13645_v4 }
 0x8a7   :  { %11707 = vmatpush3.bf16.msra.mxu1 %v13646_v11 }
 0x8a8   :  { %11708 = vmatprep.subr.bf16.mxu1 %v13647_v49 }
 0x8ab   :  { %11709 = vmatpush3.bf16.msra.mxu1 %v13648_v46 }
 0x8ac   :  { %11710 = vmatprep.subr.bf16.mxu1 %v13649_v59 }
 0x8af   :  { %11711 = vmatpush3.bf16.msra.mxu1 %v13650_v12 }
 0x8b0   :  { %11712 = vmatprep.subr.bf16.mxu1 %v13651_v10 }
 0x8b3   :  { %11713 = vmatpush3.bf16.msra.mxu1 %v13652_v27 }
 0x8b4   :  { %11714 = vmatprep.subr.bf16.mxu1 %v13653_v33 }
 0x8b5   :  { %v9455_v26 = vpop.f32.mrb[80].mxu1 }
 0x8b6   :  { %v9457_v0 = vpop.f32.mrb[81].mxu1 }
 0x8b7   :  { %v9459_v36 = vpop.f32.mrb[82].mxu1  ;;  %11715 = vmatpush3.bf16.msra.mxu1 %v13654_v56 }
 0x8b8   :  { %v9460_v13 = vpop.f32.mrb[83].mxu1  ;;  %11716 = vmatprep.subr.bf16.mxu1 %v13655_v44 }
 0x8bb   :  { %11717 = vmatpush3.bf16.msra.mxu1 %v13656_v16 }
 0x8bc   :  { %11718 = vmatprep.subr.bf16.mxu1 %v13657_v57 }
 0x8bf   :  { %11719 = vmatpush3.bf16.msra.mxu1 %v13658_v14 }
 0x8f5   :  { %v9656_v58 = vpop.f32.mrb[84].mxu1 }
 0x8f6   :  { %v9657_v1 = vadd.f32 %v9656_v58, %v9455_v26  ;;  %v9658_v34 = vpop.f32.mrb[85].mxu1 }
 0x8f7   :  { %v9659_v6 = vadd.f32 %v9658_v34, %v9457_v0  ;;  %v9660_v48 = vpop.f32.mrb[86].mxu1 }
 0x8f8   :  { %v9661_v29 = vpop.f32.mrb[87].mxu1 }
 0x935   :  { %v9890_v53 = vpop.f32.mrb[88].mxu1 }
 0x936   :  { %v9897_v18 = vadd.f32 %v9890_v53, %v9657_v1  ;;  %v9892_v8 = vpop.f32.mrb[89].mxu1 }
 0x937   :  { %v9898_v17 = vadd.f32 %v9892_v8, %v9659_v6  ;;  %v9894_v52 = vpop.f32.mrb[90].mxu1 }
 0x938   :  { %v9895_v21 = vpop.f32.mrb[91].mxu1 }
 0x975   :  { %v10132_v37 = vpop.f32.mrb[92].mxu1 }
 0x976   :  { %v10139_v60 = vadd.f32 %v10132_v37, %v9897_v18  ;;  %v10134_v39 = vpop.f32.mrb[93].mxu1 }
 0x977   :  { %v10140_v38 = vadd.f32 %v10134_v39, %v9898_v17  ;;  %v10136_v41 = vpop.f32.mrb[94].mxu1 }
 0x978   :  { %v10153_v3 = vadd.f32 %v10146_v61, %v10139_v60  ;;  %v10137_v19 = vpop.f32.mrb[95].mxu1 }
 0x979   :  { %v10154_v45 = vadd.f32 %v10150_v35, %v10140_v38 }
 0x97a   :  { %v10155_v31 = vmax.f32 %v10153_v3, 0.0 }
 0x97b   :  { %v10156_v15 = vmax.f32 %v10154_v45, 0.0 }
 0x97c   :  { %v10157_v28 = vpack.c.bf16 %v10155_v31, %v10155_v31 }
 0x97d   :  { %v10158_v47 = vpack.c.bf16 %v10156_v15, %v10156_v15 }
 0x97f   :  { %10326 = vmatprep.mubr.bf16.mxu1 %v10158_v47 }
 0x980   :  { %10327 = vmatmul.mubr.bf16.vlgmr.msra.gmra.mrb[96].mxu1 %v10157_v28 }
 0xa53   :  { %v11720_v22 = vpop.f32.mrb[96].mxu1 }
 0xa54   :  { %v11721_v62 = vpop.f32.mrb[97].mxu1 }
 0xa55   :  { %v11722_v20 = vadd.f32 %v11721_v62, %v11720_v22  ;;  %v11723_v42 = vpop.f32.mrb[98].mxu1 }
 0xa56   :  { %v11724_v55 = vpop.f32.mrb[99].mxu1 }
 0xa57   :  { %v10329_v50 = vadd.f32 %v11722_v20, %v11559_v51 }
 0xa59   :  { %v10337_v5 = vsel %vm10336_vm1, %v10329_v50, -1e+30 }
 0xa5a   :  { %10338 = vmax.xlane.f32.xlu0 %v10337_v5 }
 0xae7   :  { %v10339_v30 = vpop.xlane.xlu0 %10338 }
 0xae8   :  { %v10340_v24 = vsub.f32 %v10337_v5, %v10339_v30 }
 0xaea   :  { %v10341_v9 = vmul.f32 1.442695, %v10340_v24 }
 0xaec   :  { %13659 = vpow2.f32 %v10341_v9 }
 0xaf6   :  { %v13660_v7 = vpop.eup %13659 }
 0xaf7   :  { %10343 = vadd.xlane.f32.xlu0 %v13660_v7 }
 0xb84   :  { %v10344_v32 = vpop.xlane.xlu0 %10343 }
 0xb85   :  { %13661 = vlog2.f32 %v10344_v32 }
 0xb8f   :  { %v13662_v54 = vpop.eup %13661 }
 0xb90   :  { %v10346_v2 = vmul.f32 0.6931472, %v13662_v54 }
 0xb92   :  { %v10347_v26 = vsub.f32 %v10340_v24, %v10346_v2 }
 0xb94   :  { %10348 = vst [vmem:[%s15048_s11] sm:$0xff] %v10347_v26 }
 0xb95   :  { %10353 = vsyncpa [#allocation5], 1 }
 0xb96   :  { %10354 = vsyncpa [#allocation7], 1 }
 0xb97   :  { %10355 = vsyncpa [#allocation10], 1 }
 0xb98   :  { %10356 = vsyncpa [#allocation13], 1 }
 0xb99   :  { %10357 = vsyncpa [#allocation16], 1 }
 0xb9a   :  { %10358 = vsyncpa [#allocation19], 1 }

</bundles_post_ra>
